<compile_context>
chip_gen: v5e
topology: v5e:2x2
jax: 0.10.0
libtpu: 0.0.40
codegen_flags: <defaults>
</compile_context>

<pallas_src>
import functools

import jax
import jax.numpy as jnp
from jax import lax
from jax.experimental import pallas as pl
from jax.experimental.pallas import tpu as pltpu


# ------------------------------ fused kernel --------------------------------

def _relation_kernel(x_ref, w1_ref, t1_ref, w2_ref, t2_ref,
                     fw1_ref, fb1_ref, fw2_ref, fb2_ref, o_ref,
                     y1_scr, u1_scr, y2_scr, *, H, W):
    f32, bf16 = jnp.float32, jnp.bfloat16
    Co = w1_ref.shape[2]

    # ---- layer1: conv3x3 (Cin->Co) as 9 shifted matmuls + folded BN + ReLU ----
    # x_ref is the row-flattened NHWC image: flat index f = h*W + w.
    # Valid conv output (i, j) lives at flat index i*W + j (edge rows are
    # harmless garbage that the pooling never reads).
    M1 = (H - 2) * W - 2
    acc1 = jnp.zeros((M1, Co), f32)
    for t in range(9):
        di, dj = divmod(t, 3)
        a = x_ref[pl.ds(di * W + dj, M1), :].astype(bf16)
        acc1 = acc1 + jnp.dot(a, w1_ref[t], preferred_element_type=f32)
    y1_scr[...] = jnp.maximum(acc1 + t1_ref[...], 0.0)

    # ---- maxpool 2x2 (kept on the stride-W flat grid, no compaction) ----
    # pooled1 value for pool position (pi, pj) sits at u1_scr[2*W*pi + 2*pj].
    MU1 = M1 - W - 1
    u1_scr[...] = jnp.maximum(
        jnp.maximum(y1_scr[pl.ds(0, MU1), :], y1_scr[pl.ds(1, MU1), :]),
        jnp.maximum(y1_scr[pl.ds(W, MU1), :], y1_scr[pl.ds(W + 1, MU1), :]))

    P1h, P1w = (H - 2) // 2, (W - 2) // 2
    H2, W2 = P1h - 2, P1w - 2                  # conv2 valid output spatial

    # ---- layer2: conv3x3 (Co->Co) on the strided pooled grid + BN + ReLU ----
    # conv2 output (i, j) lives at y2_scr[2*W*i + 2*j].
    G = 2 * W * (H2 - 1) + 2 * (W2 - 1) + 1
    acc2 = jnp.zeros((G, Co), f32)
    for t in range(9):
        di, dj = divmod(t, 3)
        a = u1_scr[pl.ds(2 * W * di + 2 * dj, G), :].astype(bf16)
        acc2 = acc2 + jnp.dot(a, w2_ref[t], preferred_element_type=f32)
    y2_scr[...] = jnp.maximum(acc2 + t2_ref[...], 0.0)

    # ---- maxpool 2x2 -> 3x3 features, fused with the fc1 contraction ----
    P2h, P2w = H2 // 2, W2 // 2
    h = fb1_ref[...]                           # (1, hidden)
    for pi in range(P2h):
        for pj in range(P2w):
            g = 4 * W * pi + 4 * pj
            feat = jnp.maximum(
                jnp.maximum(y2_scr[pl.ds(g, 1), :],
                            y2_scr[pl.ds(g + 2, 1), :]),
                jnp.maximum(y2_scr[pl.ds(g + 2 * W, 1), :],
                            y2_scr[pl.ds(g + 2 * W + 2, 1), :]))
            s = pi * P2w + pj                  # spatial index h*3 + w
            h = h + jnp.dot(feat, fw1_ref[s], preferred_element_type=f32)

    # ---- relu(fc1) -> sigmoid(fc2) ----
    h = jnp.maximum(h, 0.0)
    z = jnp.sum(h * fw2_ref[...], axis=1, keepdims=True) + fb2_ref[...]
    o_ref[0] = 1.0 / (1.0 + jnp.exp(-z))


# ------------------------------ host wrapper ---------------------------------

def _fold_bn_conv(w_oihw, b, gamma, beta, mean, var, eps=1e-5):
    # eval-mode BN folded into the conv: scale into the weight columns,
    # remaining per-channel shift applied in the kernel epilogue.
    s = gamma / jnp.sqrt(var + eps)                       # (Cout,)
    shift = beta + s * (b - mean)                         # (Cout,)
    cout, cin = w_oihw.shape[0], w_oihw.shape[1]
    w_taps = jnp.transpose(w_oihw, (2, 3, 1, 0)).reshape(9, cin, cout)
    w_taps = w_taps * s[None, None, :]
    return w_taps.astype(jnp.bfloat16), shift.reshape(1, -1).astype(jnp.float32)


def relation_network_forward(x_nchw, params):
    N, Cin, H, W = x_nchw.shape
    Co = params["conv1_w"].shape[0]
    hid = params["fc1_b"].shape[0]

    # NCHW -> NHWC, flatten spatial so channels sit on the 128-lane axis.
    x = jnp.transpose(x_nchw, (0, 2, 3, 1)).reshape(N, H * W, Cin)

    w1, t1 = _fold_bn_conv(params["conv1_w"], params["conv1_b"], params["bn1_g"],
                           params["bn1_b"], params["bn1_m"], params["bn1_v"])
    w2, t2 = _fold_bn_conv(params["conv2_w"], params["conv2_b"], params["bn2_g"],
                           params["bn2_b"], params["bn2_m"], params["bn2_v"])

    # fc1 weight rearranged per spatial position so the kernel contracts the
    # NHWC (3,3,64) feature map while matching PyTorch's NCHW flatten order.
    fw1 = (params["fc1_w"].reshape(hid, Co, 3, 3)
           .transpose(2, 3, 1, 0).reshape(9, Co, hid).astype(jnp.float32))
    fb1 = params["fc1_b"].reshape(1, hid)
    fw2 = params["fc2_w"].reshape(1, hid)
    fb2 = params["fc2_b"].reshape(1, 1)

    # Static geometry (19x19 -> 17x17 -> 8x8 -> 6x6 -> 3x3 for input_size=64).
    M1 = (H - 2) * W - 2
    MU1 = M1 - W - 1
    H2, W2 = (H - 2) // 2 - 2, (W - 2) // 2 - 2
    G = 2 * W * (H2 - 1) + 2 * (W2 - 1) + 1
    assert 4 * W + 4 + G <= MU1          # conv2 reads stay inside u1 scratch
    assert params["fc1_w"].shape[1] == Co * 3 * 3

    kernel = functools.partial(_relation_kernel, H=H, W=W)

    out = pl.pallas_call(
        kernel,
        out_shape=jax.ShapeDtypeStruct((N, 1, 1), jnp.float32),
        grid_spec=pltpu.PrefetchScalarGridSpec(
            num_scalar_prefetch=0,
            grid=(N,),
            in_specs=[
                pl.BlockSpec((None, H * W, Cin), lambda n: (n, 0, 0)),  # image
                pl.BlockSpec((9, Cin, Co), lambda n: (0, 0, 0)),        # conv1 taps
                pl.BlockSpec((1, Co), lambda n: (0, 0)),                # BN1 shift
                pl.BlockSpec((9, Co, Co), lambda n: (0, 0, 0)),         # conv2 taps
                pl.BlockSpec((1, Co), lambda n: (0, 0)),                # BN2 shift
                pl.BlockSpec((9, Co, hid), lambda n: (0, 0, 0)),        # fc1 w
                pl.BlockSpec((1, hid), lambda n: (0, 0)),               # fc1 b
                pl.BlockSpec((1, hid), lambda n: (0, 0)),               # fc2 w
                pl.BlockSpec((1, 1), lambda n: (0, 0)),                 # fc2 b
            ],
            out_specs=pl.BlockSpec((1, 1, 1), lambda n: (n, 0, 0)),
            scratch_shapes=[
                pltpu.VMEM((M1, Co), jnp.float32),   # conv1 + BN + ReLU
                pltpu.VMEM((MU1, Co), jnp.float32),  # pool1 (strided layout)
                pltpu.VMEM((G, Co), jnp.float32),    # conv2 + BN + ReLU
            ],
        ),
        compiler_params=pltpu.CompilerParams(
            dimension_semantics=("parallel",)),
    )(x, w1, t1, w2, t2, fw1, fb1, fw2, fb2)
    return out.reshape(N, 1)


# --------------------------- pure-JAX reference -------------------------------

def reference_forward(x, params, eps=1e-5):
    def block(y, w, b, g, be, m, v):
        y = lax.conv_general_dilated(y, w, (1, 1), "VALID",
                                     dimension_numbers=("NCHW", "OIHW", "NCHW"))
        s = (g / jnp.sqrt(v + eps)).reshape(1, -1, 1, 1)
        y = s * (y + b.reshape(1, -1, 1, 1) - m.reshape(1, -1, 1, 1)) \
            + be.reshape(1, -1, 1, 1)
        y = jnp.maximum(y, 0.0)
        n, c, hh, ww = y.shape
        y = y[:, :, : hh // 2 * 2, : ww // 2 * 2]
        return y.reshape(n, c, hh // 2, 2, ww // 2, 2).max(axis=(3, 5))

    y = block(x, params["conv1_w"], params["conv1_b"], params["bn1_g"],
              params["bn1_b"], params["bn1_m"], params["bn1_v"])
    y = block(y, params["conv2_w"], params["conv2_b"], params["bn2_g"],
              params["bn2_b"], params["bn2_m"], params["bn2_v"])
    f = y.reshape(y.shape[0], -1)
    h = jnp.maximum(f @ params["fc1_w"].T + params["fc1_b"], 0.0)
    z = h @ params["fc2_w"].T + params["fc2_b"]
    return 1.0 / (1.0 + jnp.exp(-z))


# --------------------------------- params -------------------------------------

def init_params(key, input_size=64, hidden_size=8):
    ks = jax.random.split(key, 16)

    def nrm(k, shape, fan_in):
        return jax.random.normal(k, shape, jnp.float32) / jnp.sqrt(fan_in)

    return {
        "conv1_w": nrm(ks[0], (64, 128, 3, 3), 128 * 9),
        "conv1_b": 0.01 * jax.random.normal(ks[1], (64,), jnp.float32),
        "bn1_g": 1.0 + 0.1 * jax.random.normal(ks[2], (64,), jnp.float32),
        "bn1_b": 0.1 * jax.random.normal(ks[3], (64,), jnp.float32),
        "bn1_m": 0.1 * jax.random.normal(ks[4], (64,), jnp.float32),
        "bn1_v": jax.random.uniform(ks[5], (64,), jnp.float32, 0.5, 1.5),
        "conv2_w": nrm(ks[6], (64, 64, 3, 3), 64 * 9),
        "conv2_b": 0.01 * jax.random.normal(ks[7], (64,), jnp.float32),
        "bn2_g": 1.0 + 0.1 * jax.random.normal(ks[8], (64,), jnp.float32),
        "bn2_b": 0.1 * jax.random.normal(ks[9], (64,), jnp.float32),
        "bn2_m": 0.1 * jax.random.normal(ks[10], (64,), jnp.float32),
        "bn2_v": jax.random.uniform(ks[11], (64,), jnp.float32, 0.5, 1.5),
        "fc1_w": nrm(ks[12], (hidden_size, input_size * 3 * 3), input_size * 9),
        "fc1_b": 0.01 * jax.random.normal(ks[13], (hidden_size,), jnp.float32),
        "fc2_w": nrm(ks[14], (1, hidden_size), hidden_size),
        "fc2_b": 0.01 * jax.random.normal(ks[15], (1,), jnp.float32),
    }


if __name__ == "__main__":
    key = jax.random.PRNGKey(0)
    kx, kp = jax.random.split(key)
    # NCHW input like the PyTorch module; 19x19 spatial -> 3x3 after the two
    # conv+pool stages, matching fc1 = Linear(input_size*3*3, hidden_size).
    x = jax.random.normal(kx, (2, 128, 19, 19), jnp.float32)
    params = init_params(kp, input_size=64, hidden_size=8)

    out = jax.jit(relation_network_forward)(x, params)
    jax.block_until_ready(out)
    assert out.shape == (2, 1) and out.dtype == jnp.float32
    assert bool(jnp.all((out >= 0.0) & (out <= 1.0)))

    ref = jax.jit(reference_forward)(x, params)
    jax.block_until_ready(ref)
    assert bool(jnp.all(jnp.abs(out - ref) < 2e-2))   # bf16 MXU tolerance

    print("KERNEL_OK")
</pallas_src>

<mosaic_0001>
module attributes {stable_mosaic.version = 11 : i64} {
  func.func @_relation_kernel(%arg0: i32, %arg1: memref<1x361x128xf32, #tpu.memory_space<vmem>>, %arg2: memref<9x128x64xbf16, #tpu.memory_space<vmem>>, %arg3: memref<1x64xf32, #tpu.memory_space<vmem>>, %arg4: memref<9x64x64xbf16, #tpu.memory_space<vmem>>, %arg5: memref<1x64xf32, #tpu.memory_space<vmem>>, %arg6: memref<9x64x8xf32, #tpu.memory_space<vmem>>, %arg7: memref<1x8xf32, #tpu.memory_space<vmem>>, %arg8: memref<1x8xf32, #tpu.memory_space<vmem>>, %arg9: memref<1x1xf32, #tpu.memory_space<vmem>>, %arg10: memref<1x1x1xf32, #tpu.memory_space<vmem>>, %arg11: memref<321x64xf32, #tpu.memory_space<vmem>>, %arg12: memref<301x64xf32, #tpu.memory_space<vmem>>, %arg13: memref<201x64xf32, #tpu.memory_space<vmem>>) attributes {dimension_semantics = [#tpu.dimension_semantics<parallel>], iteration_bounds = array<i64: 2>, scalar_prefetch = 0 : i64, scratch_operands = 3 : i64, tpu.core_type = #tpu.core_type<tc>, window_params = [{transform_indices = @transform_0, window_bounds = array<i64: 1, 361, 128>}, {pipeline_mode = #tpu.pipeline_mode<synchronous>, transform_indices = @transform_1, window_bounds = array<i64: 9, 128, 64>}, {pipeline_mode = #tpu.pipeline_mode<synchronous>, transform_indices = @transform_2, window_bounds = array<i64: 1, 64>}, {pipeline_mode = #tpu.pipeline_mode<synchronous>, transform_indices = @transform_3, window_bounds = array<i64: 9, 64, 64>}, {pipeline_mode = #tpu.pipeline_mode<synchronous>, transform_indices = @transform_4, window_bounds = array<i64: 1, 64>}, {pipeline_mode = #tpu.pipeline_mode<synchronous>, transform_indices = @transform_5, window_bounds = array<i64: 9, 64, 8>}, {pipeline_mode = #tpu.pipeline_mode<synchronous>, transform_indices = @transform_6, window_bounds = array<i64: 1, 8>}, {pipeline_mode = #tpu.pipeline_mode<synchronous>, transform_indices = @transform_7, window_bounds = array<i64: 1, 8>}, {pipeline_mode = #tpu.pipeline_mode<synchronous>, transform_indices = @transform_8, window_bounds = array<i64: 1, 1>}, {transform_indices = @transform_9, window_bounds = array<i64: 1, 1, 1>}]} {
    %cst = arith.constant 0.000000e+00 : f32
    %0 = vector.broadcast %cst : f32 to vector<321x64xf32>
    %c0 = arith.constant 0 : index
    %c0_0 = arith.constant 0 : index
    %c0_1 = arith.constant 0 : index
    %1 = vector.load %arg1[%c0, %c0_0, %c0_1] : memref<1x361x128xf32, #tpu.memory_space<vmem>>, vector<1x321x128xf32>
    %2 = vector.shape_cast %1 : vector<1x321x128xf32> to vector<321x128xf32>
    %3 = arith.truncf %2 : vector<321x128xf32> to vector<321x128xbf16>
    %c0_2 = arith.constant 0 : index
    %c0_3 = arith.constant 0 : index
    %c0_4 = arith.constant 0 : index
    %4 = vector.load %arg2[%c0_2, %c0_3, %c0_4] : memref<9x128x64xbf16, #tpu.memory_space<vmem>>, vector<1x128x64xbf16>
    %5 = vector.shape_cast %4 : vector<1x128x64xbf16> to vector<128x64xbf16>
    %cst_5 = arith.constant dense<0.000000e+00> : vector<321x64xf32>
    %6 = tpu.matmul %3, %5, %cst_5 {dimension_numbers = #tpu.dot_dimension_numbers<[1], [0], [0], [1], [0, 0, 1, 1], [], []>} : vector<321x128xbf16>, vector<128x64xbf16>, vector<321x64xf32> -> vector<321x64xf32>
    %7 = arith.addf %0, %6 : vector<321x64xf32>
    %c0_6 = arith.constant 0 : index
    %c1 = arith.constant 1 : index
    %c0_7 = arith.constant 0 : index
    %8 = vector.load %arg1[%c0_6, %c1, %c0_7] : memref<1x361x128xf32, #tpu.memory_space<vmem>>, vector<1x321x128xf32>
    %9 = vector.shape_cast %8 : vector<1x321x128xf32> to vector<321x128xf32>
    %10 = arith.truncf %9 : vector<321x128xf32> to vector<321x128xbf16>
    %c1_8 = arith.constant 1 : index
    %c0_9 = arith.constant 0 : index
    %c0_10 = arith.constant 0 : index
    %11 = vector.load %arg2[%c1_8, %c0_9, %c0_10] : memref<9x128x64xbf16, #tpu.memory_space<vmem>>, vector<1x128x64xbf16>
    %12 = vector.shape_cast %11 : vector<1x128x64xbf16> to vector<128x64xbf16>
    %cst_11 = arith.constant dense<0.000000e+00> : vector<321x64xf32>
    %13 = tpu.matmul %10, %12, %cst_11 {dimension_numbers = #tpu.dot_dimension_numbers<[1], [0], [0], [1], [0, 0, 1, 1], [], []>} : vector<321x128xbf16>, vector<128x64xbf16>, vector<321x64xf32> -> vector<321x64xf32>
    %14 = arith.addf %7, %13 : vector<321x64xf32>
    %c0_12 = arith.constant 0 : index
    %c2 = arith.constant 2 : index
    %c0_13 = arith.constant 0 : index
    %15 = vector.load %arg1[%c0_12, %c2, %c0_13] : memref<1x361x128xf32, #tpu.memory_space<vmem>>, vector<1x321x128xf32>
    %16 = vector.shape_cast %15 : vector<1x321x128xf32> to vector<321x128xf32>
    %17 = arith.truncf %16 : vector<321x128xf32> to vector<321x128xbf16>
    %c2_14 = arith.constant 2 : index
    %c0_15 = arith.constant 0 : index
    %c0_16 = arith.constant 0 : index
    %18 = vector.load %arg2[%c2_14, %c0_15, %c0_16] : memref<9x128x64xbf16, #tpu.memory_space<vmem>>, vector<1x128x64xbf16>
    %19 = vector.shape_cast %18 : vector<1x128x64xbf16> to vector<128x64xbf16>
    %cst_17 = arith.constant dense<0.000000e+00> : vector<321x64xf32>
    %20 = tpu.matmul %17, %19, %cst_17 {dimension_numbers = #tpu.dot_dimension_numbers<[1], [0], [0], [1], [0, 0, 1, 1], [], []>} : vector<321x128xbf16>, vector<128x64xbf16>, vector<321x64xf32> -> vector<321x64xf32>
    %21 = arith.addf %14, %20 : vector<321x64xf32>
    %c0_18 = arith.constant 0 : index
    %c19 = arith.constant 19 : index
    %c0_19 = arith.constant 0 : index
    %22 = vector.load %arg1[%c0_18, %c19, %c0_19] : memref<1x361x128xf32, #tpu.memory_space<vmem>>, vector<1x321x128xf32>
    %23 = vector.shape_cast %22 : vector<1x321x128xf32> to vector<321x128xf32>
    %24 = arith.truncf %23 : vector<321x128xf32> to vector<321x128xbf16>
    %c3 = arith.constant 3 : index
    %c0_20 = arith.constant 0 : index
    %c0_21 = arith.constant 0 : index
    %25 = vector.load %arg2[%c3, %c0_20, %c0_21] : memref<9x128x64xbf16, #tpu.memory_space<vmem>>, vector<1x128x64xbf16>
    %26 = vector.shape_cast %25 : vector<1x128x64xbf16> to vector<128x64xbf16>
    %cst_22 = arith.constant dense<0.000000e+00> : vector<321x64xf32>
    %27 = tpu.matmul %24, %26, %cst_22 {dimension_numbers = #tpu.dot_dimension_numbers<[1], [0], [0], [1], [0, 0, 1, 1], [], []>} : vector<321x128xbf16>, vector<128x64xbf16>, vector<321x64xf32> -> vector<321x64xf32>
    %28 = arith.addf %21, %27 : vector<321x64xf32>
    %c0_23 = arith.constant 0 : index
    %c20 = arith.constant 20 : index
    %c0_24 = arith.constant 0 : index
    %29 = vector.load %arg1[%c0_23, %c20, %c0_24] : memref<1x361x128xf32, #tpu.memory_space<vmem>>, vector<1x321x128xf32>
    %30 = vector.shape_cast %29 : vector<1x321x128xf32> to vector<321x128xf32>
    %31 = arith.truncf %30 : vector<321x128xf32> to vector<321x128xbf16>
    %c4 = arith.constant 4 : index
    %c0_25 = arith.constant 0 : index
    %c0_26 = arith.constant 0 : index
    %32 = vector.load %arg2[%c4, %c0_25, %c0_26] : memref<9x128x64xbf16, #tpu.memory_space<vmem>>, vector<1x128x64xbf16>
    %33 = vector.shape_cast %32 : vector<1x128x64xbf16> to vector<128x64xbf16>
    %cst_27 = arith.constant dense<0.000000e+00> : vector<321x64xf32>
    %34 = tpu.matmul %31, %33, %cst_27 {dimension_numbers = #tpu.dot_dimension_numbers<[1], [0], [0], [1], [0, 0, 1, 1], [], []>} : vector<321x128xbf16>, vector<128x64xbf16>, vector<321x64xf32> -> vector<321x64xf32>
    %35 = arith.addf %28, %34 : vector<321x64xf32>
    %c0_28 = arith.constant 0 : index
    %c21 = arith.constant 21 : index
    %c0_29 = arith.constant 0 : index
    %36 = vector.load %arg1[%c0_28, %c21, %c0_29] : memref<1x361x128xf32, #tpu.memory_space<vmem>>, vector<1x321x128xf32>
    %37 = vector.shape_cast %36 : vector<1x321x128xf32> to vector<321x128xf32>
    %38 = arith.truncf %37 : vector<321x128xf32> to vector<321x128xbf16>
    %c5 = arith.constant 5 : index
    %c0_30 = arith.constant 0 : index
    %c0_31 = arith.constant 0 : index
    %39 = vector.load %arg2[%c5, %c0_30, %c0_31] : memref<9x128x64xbf16, #tpu.memory_space<vmem>>, vector<1x128x64xbf16>
    %40 = vector.shape_cast %39 : vector<1x128x64xbf16> to vector<128x64xbf16>
    %cst_32 = arith.constant dense<0.000000e+00> : vector<321x64xf32>
    %41 = tpu.matmul %38, %40, %cst_32 {dimension_numbers = #tpu.dot_dimension_numbers<[1], [0], [0], [1], [0, 0, 1, 1], [], []>} : vector<321x128xbf16>, vector<128x64xbf16>, vector<321x64xf32> -> vector<321x64xf32>
    %42 = arith.addf %35, %41 : vector<321x64xf32>
    %c0_33 = arith.constant 0 : index
    %c38 = arith.constant 38 : index
    %c0_34 = arith.constant 0 : index
    %43 = vector.load %arg1[%c0_33, %c38, %c0_34] : memref<1x361x128xf32, #tpu.memory_space<vmem>>, vector<1x321x128xf32>
    %44 = vector.shape_cast %43 : vector<1x321x128xf32> to vector<321x128xf32>
    %45 = arith.truncf %44 : vector<321x128xf32> to vector<321x128xbf16>
    %c6 = arith.constant 6 : index
    %c0_35 = arith.constant 0 : index
    %c0_36 = arith.constant 0 : index
    %46 = vector.load %arg2[%c6, %c0_35, %c0_36] : memref<9x128x64xbf16, #tpu.memory_space<vmem>>, vector<1x128x64xbf16>
    %47 = vector.shape_cast %46 : vector<1x128x64xbf16> to vector<128x64xbf16>
    %cst_37 = arith.constant dense<0.000000e+00> : vector<321x64xf32>
    %48 = tpu.matmul %45, %47, %cst_37 {dimension_numbers = #tpu.dot_dimension_numbers<[1], [0], [0], [1], [0, 0, 1, 1], [], []>} : vector<321x128xbf16>, vector<128x64xbf16>, vector<321x64xf32> -> vector<321x64xf32>
    %49 = arith.addf %42, %48 : vector<321x64xf32>
    %c0_38 = arith.constant 0 : index
    %c39 = arith.constant 39 : index
    %c0_39 = arith.constant 0 : index
    %50 = vector.load %arg1[%c0_38, %c39, %c0_39] : memref<1x361x128xf32, #tpu.memory_space<vmem>>, vector<1x321x128xf32>
    %51 = vector.shape_cast %50 : vector<1x321x128xf32> to vector<321x128xf32>
    %52 = arith.truncf %51 : vector<321x128xf32> to vector<321x128xbf16>
    %c7 = arith.constant 7 : index
    %c0_40 = arith.constant 0 : index
    %c0_41 = arith.constant 0 : index
    %53 = vector.load %arg2[%c7, %c0_40, %c0_41] : memref<9x128x64xbf16, #tpu.memory_space<vmem>>, vector<1x128x64xbf16>
    %54 = vector.shape_cast %53 : vector<1x128x64xbf16> to vector<128x64xbf16>
    %cst_42 = arith.constant dense<0.000000e+00> : vector<321x64xf32>
    %55 = tpu.matmul %52, %54, %cst_42 {dimension_numbers = #tpu.dot_dimension_numbers<[1], [0], [0], [1], [0, 0, 1, 1], [], []>} : vector<321x128xbf16>, vector<128x64xbf16>, vector<321x64xf32> -> vector<321x64xf32>
    %56 = arith.addf %49, %55 : vector<321x64xf32>
    %c0_43 = arith.constant 0 : index
    %c40 = arith.constant 40 : index
    %c0_44 = arith.constant 0 : index
    %57 = vector.load %arg1[%c0_43, %c40, %c0_44] : memref<1x361x128xf32, #tpu.memory_space<vmem>>, vector<1x321x128xf32>
    %58 = vector.shape_cast %57 : vector<1x321x128xf32> to vector<321x128xf32>
    %59 = arith.truncf %58 : vector<321x128xf32> to vector<321x128xbf16>
    %c8 = arith.constant 8 : index
    %c0_45 = arith.constant 0 : index
    %c0_46 = arith.constant 0 : index
    %60 = vector.load %arg2[%c8, %c0_45, %c0_46] : memref<9x128x64xbf16, #tpu.memory_space<vmem>>, vector<1x128x64xbf16>
    %61 = vector.shape_cast %60 : vector<1x128x64xbf16> to vector<128x64xbf16>
    %cst_47 = arith.constant dense<0.000000e+00> : vector<321x64xf32>
    %62 = tpu.matmul %59, %61, %cst_47 {dimension_numbers = #tpu.dot_dimension_numbers<[1], [0], [0], [1], [0, 0, 1, 1], [], []>} : vector<321x128xbf16>, vector<128x64xbf16>, vector<321x64xf32> -> vector<321x64xf32>
    %63 = arith.addf %56, %62 : vector<321x64xf32>
    %c0_48 = arith.constant 0 : index
    %c0_49 = arith.constant 0 : index
    %64 = vector.load %arg3[%c0_48, %c0_49] : memref<1x64xf32, #tpu.memory_space<vmem>>, vector<1x64xf32>
    %65 = vector.broadcast %64 : vector<1x64xf32> to vector<321x64xf32>
    %66 = arith.addf %63, %65 : vector<321x64xf32>
    %cst_50 = arith.constant 0.000000e+00 : f32
    %67 = vector.broadcast %cst_50 : f32 to vector<321x64xf32>
    %68 = arith.maximumf %66, %67 : vector<321x64xf32>
    %c0_51 = arith.constant 0 : index
    %c0_52 = arith.constant 0 : index
    %69 = vector.load %arg11[%c0_51, %c0_52] : memref<321x64xf32, #tpu.memory_space<vmem>>, vector<321x64xf32>
    tpu.vector_store %arg11[%c0_51, %c0_52], %68 {strides = array<i32>} : memref<321x64xf32, #tpu.memory_space<vmem>>, vector<321x64xf32>,
    %c0_53 = arith.constant 0 : index
    %c0_54 = arith.constant 0 : index
    %70 = vector.load %arg11[%c0_53, %c0_54] : memref<321x64xf32, #tpu.memory_space<vmem>>, vector<301x64xf32>
    %c1_55 = arith.constant 1 : index
    %c0_56 = arith.constant 0 : index
    %71 = vector.load %arg11[%c1_55, %c0_56] : memref<321x64xf32, #tpu.memory_space<vmem>>, vector<301x64xf32>
    %72 = arith.maximumf %70, %71 : vector<301x64xf32>
    %c19_57 = arith.constant 19 : index
    %c0_58 = arith.constant 0 : index
    %73 = vector.load %arg11[%c19_57, %c0_58] : memref<321x64xf32, #tpu.memory_space<vmem>>, vector<301x64xf32>
    %c20_59 = arith.constant 20 : index
    %c0_60 = arith.constant 0 : index
    %74 = vector.load %arg11[%c20_59, %c0_60] : memref<321x64xf32, #tpu.memory_space<vmem>>, vector<301x64xf32>
    %75 = arith.maximumf %73, %74 : vector<301x64xf32>
    %76 = arith.maximumf %72, %75 : vector<301x64xf32>
    %c0_61 = arith.constant 0 : index
    %c0_62 = arith.constant 0 : index
    %77 = vector.load %arg12[%c0_61, %c0_62] : memref<301x64xf32, #tpu.memory_space<vmem>>, vector<301x64xf32>
    tpu.vector_store %arg12[%c0_61, %c0_62], %76 {strides = array<i32>} : memref<301x64xf32, #tpu.memory_space<vmem>>, vector<301x64xf32>,
    %cst_63 = arith.constant 0.000000e+00 : f32
    %78 = vector.broadcast %cst_63 : f32 to vector<201x64xf32>
    %c0_64 = arith.constant 0 : index
    %c0_65 = arith.constant 0 : index
    %79 = vector.load %arg12[%c0_64, %c0_65] : memref<301x64xf32, #tpu.memory_space<vmem>>, vector<201x64xf32>
    %80 = arith.truncf %79 : vector<201x64xf32> to vector<201x64xbf16>
    %c0_66 = arith.constant 0 : index
    %c0_67 = arith.constant 0 : index
    %c0_68 = arith.constant 0 : index
    %81 = vector.load %arg4[%c0_66, %c0_67, %c0_68] : memref<9x64x64xbf16, #tpu.memory_space<vmem>>, vector<1x64x64xbf16>
    %82 = vector.shape_cast %81 : vector<1x64x64xbf16> to vector<64x64xbf16>
    %cst_69 = arith.constant dense<0.000000e+00> : vector<201x64xf32>
    %83 = tpu.matmul %80, %82, %cst_69 {dimension_numbers = #tpu.dot_dimension_numbers<[1], [0], [0], [1], [0, 0, 1, 1], [], []>} : vector<201x64xbf16>, vector<64x64xbf16>, vector<201x64xf32> -> vector<201x64xf32>
    %84 = arith.addf %78, %83 : vector<201x64xf32>
    %c2_70 = arith.constant 2 : index
    %c0_71 = arith.constant 0 : index
    %85 = vector.load %arg12[%c2_70, %c0_71] : memref<301x64xf32, #tpu.memory_space<vmem>>, vector<201x64xf32>
    %86 = arith.truncf %85 : vector<201x64xf32> to vector<201x64xbf16>
    %c1_72 = arith.constant 1 : index
    %c0_73 = arith.constant 0 : index
    %c0_74 = arith.constant 0 : index
    %87 = vector.load %arg4[%c1_72, %c0_73, %c0_74] : memref<9x64x64xbf16, #tpu.memory_space<vmem>>, vector<1x64x64xbf16>
    %88 = vector.shape_cast %87 : vector<1x64x64xbf16> to vector<64x64xbf16>
    %cst_75 = arith.constant dense<0.000000e+00> : vector<201x64xf32>
    %89 = tpu.matmul %86, %88, %cst_75 {dimension_numbers = #tpu.dot_dimension_numbers<[1], [0], [0], [1], [0, 0, 1, 1], [], []>} : vector<201x64xbf16>, vector<64x64xbf16>, vector<201x64xf32> -> vector<201x64xf32>
    %90 = arith.addf %84, %89 : vector<201x64xf32>
    %c4_76 = arith.constant 4 : index
    %c0_77 = arith.constant 0 : index
    %91 = vector.load %arg12[%c4_76, %c0_77] : memref<301x64xf32, #tpu.memory_space<vmem>>, vector<201x64xf32>
    %92 = arith.truncf %91 : vector<201x64xf32> to vector<201x64xbf16>
    %c2_78 = arith.constant 2 : index
    %c0_79 = arith.constant 0 : index
    %c0_80 = arith.constant 0 : index
    %93 = vector.load %arg4[%c2_78, %c0_79, %c0_80] : memref<9x64x64xbf16, #tpu.memory_space<vmem>>, vector<1x64x64xbf16>
    %94 = vector.shape_cast %93 : vector<1x64x64xbf16> to vector<64x64xbf16>
    %cst_81 = arith.constant dense<0.000000e+00> : vector<201x64xf32>
    %95 = tpu.matmul %92, %94, %cst_81 {dimension_numbers = #tpu.dot_dimension_numbers<[1], [0], [0], [1], [0, 0, 1, 1], [], []>} : vector<201x64xbf16>, vector<64x64xbf16>, vector<201x64xf32> -> vector<201x64xf32>
    %96 = arith.addf %90, %95 : vector<201x64xf32>
    %c38_82 = arith.constant 38 : index
    %c0_83 = arith.constant 0 : index
    %97 = vector.load %arg12[%c38_82, %c0_83] : memref<301x64xf32, #tpu.memory_space<vmem>>, vector<201x64xf32>
    %98 = arith.truncf %97 : vector<201x64xf32> to vector<201x64xbf16>
    %c3_84 = arith.constant 3 : index
    %c0_85 = arith.constant 0 : index
    %c0_86 = arith.constant 0 : index
    %99 = vector.load %arg4[%c3_84, %c0_85, %c0_86] : memref<9x64x64xbf16, #tpu.memory_space<vmem>>, vector<1x64x64xbf16>
    %100 = vector.shape_cast %99 : vector<1x64x64xbf16> to vector<64x64xbf16>
    %cst_87 = arith.constant dense<0.000000e+00> : vector<201x64xf32>
    %101 = tpu.matmul %98, %100, %cst_87 {dimension_numbers = #tpu.dot_dimension_numbers<[1], [0], [0], [1], [0, 0, 1, 1], [], []>} : vector<201x64xbf16>, vector<64x64xbf16>, vector<201x64xf32> -> vector<201x64xf32>
    %102 = arith.addf %96, %101 : vector<201x64xf32>
    %c40_88 = arith.constant 40 : index
    %c0_89 = arith.constant 0 : index
    %103 = vector.load %arg12[%c40_88, %c0_89] : memref<301x64xf32, #tpu.memory_space<vmem>>, vector<201x64xf32>
    %104 = arith.truncf %103 : vector<201x64xf32> to vector<201x64xbf16>
    %c4_90 = arith.constant 4 : index
    %c0_91 = arith.constant 0 : index
    %c0_92 = arith.constant 0 : index
    %105 = vector.load %arg4[%c4_90, %c0_91, %c0_92] : memref<9x64x64xbf16, #tpu.memory_space<vmem>>, vector<1x64x64xbf16>
    %106 = vector.shape_cast %105 : vector<1x64x64xbf16> to vector<64x64xbf16>
    %cst_93 = arith.constant dense<0.000000e+00> : vector<201x64xf32>
    %107 = tpu.matmul %104, %106, %cst_93 {dimension_numbers = #tpu.dot_dimension_numbers<[1], [0], [0], [1], [0, 0, 1, 1], [], []>} : vector<201x64xbf16>, vector<64x64xbf16>, vector<201x64xf32> -> vector<201x64xf32>
    %108 = arith.addf %102, %107 : vector<201x64xf32>
    %c42 = arith.constant 42 : index
    %c0_94 = arith.constant 0 : index
    %109 = vector.load %arg12[%c42, %c0_94] : memref<301x64xf32, #tpu.memory_space<vmem>>, vector<201x64xf32>
    %110 = arith.truncf %109 : vector<201x64xf32> to vector<201x64xbf16>
    %c5_95 = arith.constant 5 : index
    %c0_96 = arith.constant 0 : index
    %c0_97 = arith.constant 0 : index
    %111 = vector.load %arg4[%c5_95, %c0_96, %c0_97] : memref<9x64x64xbf16, #tpu.memory_space<vmem>>, vector<1x64x64xbf16>
    %112 = vector.shape_cast %111 : vector<1x64x64xbf16> to vector<64x64xbf16>
    %cst_98 = arith.constant dense<0.000000e+00> : vector<201x64xf32>
    %113 = tpu.matmul %110, %112, %cst_98 {dimension_numbers = #tpu.dot_dimension_numbers<[1], [0], [0], [1], [0, 0, 1, 1], [], []>} : vector<201x64xbf16>, vector<64x64xbf16>, vector<201x64xf32> -> vector<201x64xf32>
    %114 = arith.addf %108, %113 : vector<201x64xf32>
    %c76 = arith.constant 76 : index
    %c0_99 = arith.constant 0 : index
    %115 = vector.load %arg12[%c76, %c0_99] : memref<301x64xf32, #tpu.memory_space<vmem>>, vector<201x64xf32>
    %116 = arith.truncf %115 : vector<201x64xf32> to vector<201x64xbf16>
    %c6_100 = arith.constant 6 : index
    %c0_101 = arith.constant 0 : index
    %c0_102 = arith.constant 0 : index
    %117 = vector.load %arg4[%c6_100, %c0_101, %c0_102] : memref<9x64x64xbf16, #tpu.memory_space<vmem>>, vector<1x64x64xbf16>
    %118 = vector.shape_cast %117 : vector<1x64x64xbf16> to vector<64x64xbf16>
    %cst_103 = arith.constant dense<0.000000e+00> : vector<201x64xf32>
    %119 = tpu.matmul %116, %118, %cst_103 {dimension_numbers = #tpu.dot_dimension_numbers<[1], [0], [0], [1], [0, 0, 1, 1], [], []>} : vector<201x64xbf16>, vector<64x64xbf16>, vector<201x64xf32> -> vector<201x64xf32>
    %120 = arith.addf %114, %119 : vector<201x64xf32>
    %c78 = arith.constant 78 : index
    %c0_104 = arith.constant 0 : index
    %121 = vector.load %arg12[%c78, %c0_104] : memref<301x64xf32, #tpu.memory_space<vmem>>, vector<201x64xf32>
    %122 = arith.truncf %121 : vector<201x64xf32> to vector<201x64xbf16>
    %c7_105 = arith.constant 7 : index
    %c0_106 = arith.constant 0 : index
    %c0_107 = arith.constant 0 : index
    %123 = vector.load %arg4[%c7_105, %c0_106, %c0_107] : memref<9x64x64xbf16, #tpu.memory_space<vmem>>, vector<1x64x64xbf16>
    %124 = vector.shape_cast %123 : vector<1x64x64xbf16> to vector<64x64xbf16>
    %cst_108 = arith.constant dense<0.000000e+00> : vector<201x64xf32>
    %125 = tpu.matmul %122, %124, %cst_108 {dimension_numbers = #tpu.dot_dimension_numbers<[1], [0], [0], [1], [0, 0, 1, 1], [], []>} : vector<201x64xbf16>, vector<64x64xbf16>, vector<201x64xf32> -> vector<201x64xf32>
    %126 = arith.addf %120, %125 : vector<201x64xf32>
    %c80 = arith.constant 80 : index
    %c0_109 = arith.constant 0 : index
    %127 = vector.load %arg12[%c80, %c0_109] : memref<301x64xf32, #tpu.memory_space<vmem>>, vector<201x64xf32>
    %128 = arith.truncf %127 : vector<201x64xf32> to vector<201x64xbf16>
    %c8_110 = arith.constant 8 : index
    %c0_111 = arith.constant 0 : index
    %c0_112 = arith.constant 0 : index
    %129 = vector.load %arg4[%c8_110, %c0_111, %c0_112] : memref<9x64x64xbf16, #tpu.memory_space<vmem>>, vector<1x64x64xbf16>
    %130 = vector.shape_cast %129 : vector<1x64x64xbf16> to vector<64x64xbf16>
    %cst_113 = arith.constant dense<0.000000e+00> : vector<201x64xf32>
    %131 = tpu.matmul %128, %130, %cst_113 {dimension_numbers = #tpu.dot_dimension_numbers<[1], [0], [0], [1], [0, 0, 1, 1], [], []>} : vector<201x64xbf16>, vector<64x64xbf16>, vector<201x64xf32> -> vector<201x64xf32>
    %132 = arith.addf %126, %131 : vector<201x64xf32>
    %c0_114 = arith.constant 0 : index
    %c0_115 = arith.constant 0 : index
    %133 = vector.load %arg5[%c0_114, %c0_115] : memref<1x64xf32, #tpu.memory_space<vmem>>, vector<1x64xf32>
    %134 = vector.broadcast %133 : vector<1x64xf32> to vector<201x64xf32>
    %135 = arith.addf %132, %134 : vector<201x64xf32>
    %cst_116 = arith.constant 0.000000e+00 : f32
    %136 = vector.broadcast %cst_116 : f32 to vector<201x64xf32>
    %137 = arith.maximumf %135, %136 : vector<201x64xf32>
    %c0_117 = arith.constant 0 : index
    %c0_118 = arith.constant 0 : index
    %138 = vector.load %arg13[%c0_117, %c0_118] : memref<201x64xf32, #tpu.memory_space<vmem>>, vector<201x64xf32>
    tpu.vector_store %arg13[%c0_117, %c0_118], %137 {strides = array<i32>} : memref<201x64xf32, #tpu.memory_space<vmem>>, vector<201x64xf32>,
    %c0_119 = arith.constant 0 : index
    %c0_120 = arith.constant 0 : index
    %139 = vector.load %arg7[%c0_119, %c0_120] : memref<1x8xf32, #tpu.memory_space<vmem>>, vector<1x8xf32>
    %c0_121 = arith.constant 0 : index
    %c0_122 = arith.constant 0 : index
    %140 = vector.load %arg13[%c0_121, %c0_122] : memref<201x64xf32, #tpu.memory_space<vmem>>, vector<1x64xf32>
    %c2_123 = arith.constant 2 : index
    %c0_124 = arith.constant 0 : index
    %141 = vector.load %arg13[%c2_123, %c0_124] : memref<201x64xf32, #tpu.memory_space<vmem>>, vector<1x64xf32>
    %142 = arith.maximumf %140, %141 : vector<1x64xf32>
    %c38_125 = arith.constant 38 : index
    %c0_126 = arith.constant 0 : index
    %143 = vector.load %arg13[%c38_125, %c0_126] : memref<201x64xf32, #tpu.memory_space<vmem>>, vector<1x64xf32>
    %c40_127 = arith.constant 40 : index
    %c0_128 = arith.constant 0 : index
    %144 = vector.load %arg13[%c40_127, %c0_128] : memref<201x64xf32, #tpu.memory_space<vmem>>, vector<1x64xf32>
    %145 = arith.maximumf %143, %144 : vector<1x64xf32>
    %146 = arith.maximumf %142, %145 : vector<1x64xf32>
    %c0_129 = arith.constant 0 : index
    %c0_130 = arith.constant 0 : index
    %c0_131 = arith.constant 0 : index
    %147 = vector.load %arg6[%c0_129, %c0_130, %c0_131] : memref<9x64x8xf32, #tpu.memory_space<vmem>>, vector<1x64x8xf32>
    %148 = vector.shape_cast %147 : vector<1x64x8xf32> to vector<64x8xf32>
    %cst_132 = arith.constant dense<0.000000e+00> : vector<1x8xf32>
    %149 = tpu.matmul %146, %148, %cst_132 {dimension_numbers = #tpu.dot_dimension_numbers<[1], [0], [0], [1], [0, 0, 1, 1], [], []>} : vector<1x64xf32>, vector<64x8xf32>, vector<1x8xf32> -> vector<1x8xf32>
    %150 = arith.addf %139, %149 : vector<1x8xf32>
    %c4_133 = arith.constant 4 : index
    %c0_134 = arith.constant 0 : index
    %151 = vector.load %arg13[%c4_133, %c0_134] : memref<201x64xf32, #tpu.memory_space<vmem>>, vector<1x64xf32>
    %c6_135 = arith.constant 6 : index
    %c0_136 = arith.constant 0 : index
    %152 = vector.load %arg13[%c6_135, %c0_136] : memref<201x64xf32, #tpu.memory_space<vmem>>, vector<1x64xf32>
    %153 = arith.maximumf %151, %152 : vector<1x64xf32>
    %c42_137 = arith.constant 42 : index
    %c0_138 = arith.constant 0 : index
    %154 = vector.load %arg13[%c42_137, %c0_138] : memref<201x64xf32, #tpu.memory_space<vmem>>, vector<1x64xf32>
    %c44 = arith.constant 44 : index
    %c0_139 = arith.constant 0 : index
    %155 = vector.load %arg13[%c44, %c0_139] : memref<201x64xf32, #tpu.memory_space<vmem>>, vector<1x64xf32>
    %156 = arith.maximumf %154, %155 : vector<1x64xf32>
    %157 = arith.maximumf %153, %156 : vector<1x64xf32>
    %c1_140 = arith.constant 1 : index
    %c0_141 = arith.constant 0 : index
    %c0_142 = arith.constant 0 : index
    %158 = vector.load %arg6[%c1_140, %c0_141, %c0_142] : memref<9x64x8xf32, #tpu.memory_space<vmem>>, vector<1x64x8xf32>
    %159 = vector.shape_cast %158 : vector<1x64x8xf32> to vector<64x8xf32>
    %cst_143 = arith.constant dense<0.000000e+00> : vector<1x8xf32>
    %160 = tpu.matmul %157, %159, %cst_143 {dimension_numbers = #tpu.dot_dimension_numbers<[1], [0], [0], [1], [0, 0, 1, 1], [], []>} : vector<1x64xf32>, vector<64x8xf32>, vector<1x8xf32> -> vector<1x8xf32>
    %161 = arith.addf %150, %160 : vector<1x8xf32>
    %c8_144 = arith.constant 8 : index
    %c0_145 = arith.constant 0 : index
    %162 = vector.load %arg13[%c8_144, %c0_145] : memref<201x64xf32, #tpu.memory_space<vmem>>, vector<1x64xf32>
    %c10 = arith.constant 10 : index
    %c0_146 = arith.constant 0 : index
    %163 = vector.load %arg13[%c10, %c0_146] : memref<201x64xf32, #tpu.memory_space<vmem>>, vector<1x64xf32>
    %164 = arith.maximumf %162, %163 : vector<1x64xf32>
    %c46 = arith.constant 46 : index
    %c0_147 = arith.constant 0 : index
    %165 = vector.load %arg13[%c46, %c0_147] : memref<201x64xf32, #tpu.memory_space<vmem>>, vector<1x64xf32>
    %c48 = arith.constant 48 : index
    %c0_148 = arith.constant 0 : index
    %166 = vector.load %arg13[%c48, %c0_148] : memref<201x64xf32, #tpu.memory_space<vmem>>, vector<1x64xf32>
    %167 = arith.maximumf %165, %166 : vector<1x64xf32>
    %168 = arith.maximumf %164, %167 : vector<1x64xf32>
    %c2_149 = arith.constant 2 : index
    %c0_150 = arith.constant 0 : index
    %c0_151 = arith.constant 0 : index
    %169 = vector.load %arg6[%c2_149, %c0_150, %c0_151] : memref<9x64x8xf32, #tpu.memory_space<vmem>>, vector<1x64x8xf32>
    %170 = vector.shape_cast %169 : vector<1x64x8xf32> to vector<64x8xf32>
    %cst_152 = arith.constant dense<0.000000e+00> : vector<1x8xf32>
    %171 = tpu.matmul %168, %170, %cst_152 {dimension_numbers = #tpu.dot_dimension_numbers<[1], [0], [0], [1], [0, 0, 1, 1], [], []>} : vector<1x64xf32>, vector<64x8xf32>, vector<1x8xf32> -> vector<1x8xf32>
    %172 = arith.addf %161, %171 : vector<1x8xf32>
    %c76_153 = arith.constant 76 : index
    %c0_154 = arith.constant 0 : index
    %173 = vector.load %arg13[%c76_153, %c0_154] : memref<201x64xf32, #tpu.memory_space<vmem>>, vector<1x64xf32>
    %c78_155 = arith.constant 78 : index
    %c0_156 = arith.constant 0 : index
    %174 = vector.load %arg13[%c78_155, %c0_156] : memref<201x64xf32, #tpu.memory_space<vmem>>, vector<1x64xf32>
    %175 = arith.maximumf %173, %174 : vector<1x64xf32>
    %c114 = arith.constant 114 : index
    %c0_157 = arith.constant 0 : index
    %176 = vector.load %arg13[%c114, %c0_157] : memref<201x64xf32, #tpu.memory_space<vmem>>, vector<1x64xf32>
    %c116 = arith.constant 116 : index
    %c0_158 = arith.constant 0 : index
    %177 = vector.load %arg13[%c116, %c0_158] : memref<201x64xf32, #tpu.memory_space<vmem>>, vector<1x64xf32>
    %178 = arith.maximumf %176, %177 : vector<1x64xf32>
    %179 = arith.maximumf %175, %178 : vector<1x64xf32>
    %c3_159 = arith.constant 3 : index
    %c0_160 = arith.constant 0 : index
    %c0_161 = arith.constant 0 : index
    %180 = vector.load %arg6[%c3_159, %c0_160, %c0_161] : memref<9x64x8xf32, #tpu.memory_space<vmem>>, vector<1x64x8xf32>
    %181 = vector.shape_cast %180 : vector<1x64x8xf32> to vector<64x8xf32>
    %cst_162 = arith.constant dense<0.000000e+00> : vector<1x8xf32>
    %182 = tpu.matmul %179, %181, %cst_162 {dimension_numbers = #tpu.dot_dimension_numbers<[1], [0], [0], [1], [0, 0, 1, 1], [], []>} : vector<1x64xf32>, vector<64x8xf32>, vector<1x8xf32> -> vector<1x8xf32>
    %183 = arith.addf %172, %182 : vector<1x8xf32>
    %c80_163 = arith.constant 80 : index
    %c0_164 = arith.constant 0 : index
    %184 = vector.load %arg13[%c80_163, %c0_164] : memref<201x64xf32, #tpu.memory_space<vmem>>, vector<1x64xf32>
    %c82 = arith.constant 82 : index
    %c0_165 = arith.constant 0 : index
    %185 = vector.load %arg13[%c82, %c0_165] : memref<201x64xf32, #tpu.memory_space<vmem>>, vector<1x64xf32>
    %186 = arith.maximumf %184, %185 : vector<1x64xf32>
    %c118 = arith.constant 118 : index
    %c0_166 = arith.constant 0 : index
    %187 = vector.load %arg13[%c118, %c0_166] : memref<201x64xf32, #tpu.memory_space<vmem>>, vector<1x64xf32>
    %c120 = arith.constant 120 : index
    %c0_167 = arith.constant 0 : index
    %188 = vector.load %arg13[%c120, %c0_167] : memref<201x64xf32, #tpu.memory_space<vmem>>, vector<1x64xf32>
    %189 = arith.maximumf %187, %188 : vector<1x64xf32>
    %190 = arith.maximumf %186, %189 : vector<1x64xf32>
    %c4_168 = arith.constant 4 : index
    %c0_169 = arith.constant 0 : index
    %c0_170 = arith.constant 0 : index
    %191 = vector.load %arg6[%c4_168, %c0_169, %c0_170] : memref<9x64x8xf32, #tpu.memory_space<vmem>>, vector<1x64x8xf32>
    %192 = vector.shape_cast %191 : vector<1x64x8xf32> to vector<64x8xf32>
    %cst_171 = arith.constant dense<0.000000e+00> : vector<1x8xf32>
    %193 = tpu.matmul %190, %192, %cst_171 {dimension_numbers = #tpu.dot_dimension_numbers<[1], [0], [0], [1], [0, 0, 1, 1], [], []>} : vector<1x64xf32>, vector<64x8xf32>, vector<1x8xf32> -> vector<1x8xf32>
    %194 = arith.addf %183, %193 : vector<1x8xf32>
    %c84 = arith.constant 84 : index
    %c0_172 = arith.constant 0 : index
    %195 = vector.load %arg13[%c84, %c0_172] : memref<201x64xf32, #tpu.memory_space<vmem>>, vector<1x64xf32>
    %c86 = arith.constant 86 : index
    %c0_173 = arith.constant 0 : index
    %196 = vector.load %arg13[%c86, %c0_173] : memref<201x64xf32, #tpu.memory_space<vmem>>, vector<1x64xf32>
    %197 = arith.maximumf %195, %196 : vector<1x64xf32>
    %c122 = arith.constant 122 : index
    %c0_174 = arith.constant 0 : index
    %198 = vector.load %arg13[%c122, %c0_174] : memref<201x64xf32, #tpu.memory_space<vmem>>, vector<1x64xf32>
    %c124 = arith.constant 124 : index
    %c0_175 = arith.constant 0 : index
    %199 = vector.load %arg13[%c124, %c0_175] : memref<201x64xf32, #tpu.memory_space<vmem>>, vector<1x64xf32>
    %200 = arith.maximumf %198, %199 : vector<1x64xf32>
    %201 = arith.maximumf %197, %200 : vector<1x64xf32>
    %c5_176 = arith.constant 5 : index
    %c0_177 = arith.constant 0 : index
    %c0_178 = arith.constant 0 : index
    %202 = vector.load %arg6[%c5_176, %c0_177, %c0_178] : memref<9x64x8xf32, #tpu.memory_space<vmem>>, vector<1x64x8xf32>
    %203 = vector.shape_cast %202 : vector<1x64x8xf32> to vector<64x8xf32>
    %cst_179 = arith.constant dense<0.000000e+00> : vector<1x8xf32>
    %204 = tpu.matmul %201, %203, %cst_179 {dimension_numbers = #tpu.dot_dimension_numbers<[1], [0], [0], [1], [0, 0, 1, 1], [], []>} : vector<1x64xf32>, vector<64x8xf32>, vector<1x8xf32> -> vector<1x8xf32>
    %205 = arith.addf %194, %204 : vector<1x8xf32>
    %c152 = arith.constant 152 : index
    %c0_180 = arith.constant 0 : index
    %206 = vector.load %arg13[%c152, %c0_180] : memref<201x64xf32, #tpu.memory_space<vmem>>, vector<1x64xf32>
    %c154 = arith.constant 154 : index
    %c0_181 = arith.constant 0 : index
    %207 = vector.load %arg13[%c154, %c0_181] : memref<201x64xf32, #tpu.memory_space<vmem>>, vector<1x64xf32>
    %208 = arith.maximumf %206, %207 : vector<1x64xf32>
    %c190 = arith.constant 190 : index
    %c0_182 = arith.constant 0 : index
    %209 = vector.load %arg13[%c190, %c0_182] : memref<201x64xf32, #tpu.memory_space<vmem>>, vector<1x64xf32>
    %c192 = arith.constant 192 : index
    %c0_183 = arith.constant 0 : index
    %210 = vector.load %arg13[%c192, %c0_183] : memref<201x64xf32, #tpu.memory_space<vmem>>, vector<1x64xf32>
    %211 = arith.maximumf %209, %210 : vector<1x64xf32>
    %212 = arith.maximumf %208, %211 : vector<1x64xf32>
    %c6_184 = arith.constant 6 : index
    %c0_185 = arith.constant 0 : index
    %c0_186 = arith.constant 0 : index
    %213 = vector.load %arg6[%c6_184, %c0_185, %c0_186] : memref<9x64x8xf32, #tpu.memory_space<vmem>>, vector<1x64x8xf32>
    %214 = vector.shape_cast %213 : vector<1x64x8xf32> to vector<64x8xf32>
    %cst_187 = arith.constant dense<0.000000e+00> : vector<1x8xf32>
    %215 = tpu.matmul %212, %214, %cst_187 {dimension_numbers = #tpu.dot_dimension_numbers<[1], [0], [0], [1], [0, 0, 1, 1], [], []>} : vector<1x64xf32>, vector<64x8xf32>, vector<1x8xf32> -> vector<1x8xf32>
    %216 = arith.addf %205, %215 : vector<1x8xf32>
    %c156 = arith.constant 156 : index
    %c0_188 = arith.constant 0 : index
    %217 = vector.load %arg13[%c156, %c0_188] : memref<201x64xf32, #tpu.memory_space<vmem>>, vector<1x64xf32>
    %c158 = arith.constant 158 : index
    %c0_189 = arith.constant 0 : index
    %218 = vector.load %arg13[%c158, %c0_189] : memref<201x64xf32, #tpu.memory_space<vmem>>, vector<1x64xf32>
    %219 = arith.maximumf %217, %218 : vector<1x64xf32>
    %c194 = arith.constant 194 : index
    %c0_190 = arith.constant 0 : index
    %220 = vector.load %arg13[%c194, %c0_190] : memref<201x64xf32, #tpu.memory_space<vmem>>, vector<1x64xf32>
    %c196 = arith.constant 196 : index
    %c0_191 = arith.constant 0 : index
    %221 = vector.load %arg13[%c196, %c0_191] : memref<201x64xf32, #tpu.memory_space<vmem>>, vector<1x64xf32>
    %222 = arith.maximumf %220, %221 : vector<1x64xf32>
    %223 = arith.maximumf %219, %222 : vector<1x64xf32>
    %c7_192 = arith.constant 7 : index
    %c0_193 = arith.constant 0 : index
    %c0_194 = arith.constant 0 : index
    %224 = vector.load %arg6[%c7_192, %c0_193, %c0_194] : memref<9x64x8xf32, #tpu.memory_space<vmem>>, vector<1x64x8xf32>
    %225 = vector.shape_cast %224 : vector<1x64x8xf32> to vector<64x8xf32>
    %cst_195 = arith.constant dense<0.000000e+00> : vector<1x8xf32>
    %226 = tpu.matmul %223, %225, %cst_195 {dimension_numbers = #tpu.dot_dimension_numbers<[1], [0], [0], [1], [0, 0, 1, 1], [], []>} : vector<1x64xf32>, vector<64x8xf32>, vector<1x8xf32> -> vector<1x8xf32>
    %227 = arith.addf %216, %226 : vector<1x8xf32>
    %c160 = arith.constant 160 : index
    %c0_196 = arith.constant 0 : index
    %228 = vector.load %arg13[%c160, %c0_196] : memref<201x64xf32, #tpu.memory_space<vmem>>, vector<1x64xf32>
    %c162 = arith.constant 162 : index
    %c0_197 = arith.constant 0 : index
    %229 = vector.load %arg13[%c162, %c0_197] : memref<201x64xf32, #tpu.memory_space<vmem>>, vector<1x64xf32>
    %230 = arith.maximumf %228, %229 : vector<1x64xf32>
    %c198 = arith.constant 198 : index
    %c0_198 = arith.constant 0 : index
    %231 = vector.load %arg13[%c198, %c0_198] : memref<201x64xf32, #tpu.memory_space<vmem>>, vector<1x64xf32>
    %c200 = arith.constant 200 : index
    %c0_199 = arith.constant 0 : index
    %232 = vector.load %arg13[%c200, %c0_199] : memref<201x64xf32, #tpu.memory_space<vmem>>, vector<1x64xf32>
    %233 = arith.maximumf %231, %232 : vector<1x64xf32>
    %234 = arith.maximumf %230, %233 : vector<1x64xf32>
    %c8_200 = arith.constant 8 : index
    %c0_201 = arith.constant 0 : index
    %c0_202 = arith.constant 0 : index
    %235 = vector.load %arg6[%c8_200, %c0_201, %c0_202] : memref<9x64x8xf32, #tpu.memory_space<vmem>>, vector<1x64x8xf32>
    %236 = vector.shape_cast %235 : vector<1x64x8xf32> to vector<64x8xf32>
    %cst_203 = arith.constant dense<0.000000e+00> : vector<1x8xf32>
    %237 = tpu.matmul %234, %236, %cst_203 {dimension_numbers = #tpu.dot_dimension_numbers<[1], [0], [0], [1], [0, 0, 1, 1], [], []>} : vector<1x64xf32>, vector<64x8xf32>, vector<1x8xf32> -> vector<1x8xf32>
    %238 = arith.addf %227, %237 : vector<1x8xf32>
    %cst_204 = arith.constant 0.000000e+00 : f32
    %239 = vector.broadcast %cst_204 : f32 to vector<1x8xf32>
    %240 = arith.maximumf %238, %239 : vector<1x8xf32>
    %c0_205 = arith.constant 0 : index
    %c0_206 = arith.constant 0 : index
    %241 = vector.load %arg8[%c0_205, %c0_206] : memref<1x8xf32, #tpu.memory_space<vmem>>, vector<1x8xf32>
    %242 = arith.mulf %240, %241 : vector<1x8xf32>
    %cst_207 = arith.constant dense<0.000000e+00> : vector<1xf32>
    %243 = vector.multi_reduction <add>, %242, %cst_207 [1] : vector<1x8xf32> to vector<1xf32>
    %244 = vector.shape_cast %243 : vector<1xf32> to vector<1x1xf32>
    %c0_208 = arith.constant 0 : index
    %c0_209 = arith.constant 0 : index
    %245 = vector.load %arg9[%c0_208, %c0_209] : memref<1x1xf32, #tpu.memory_space<vmem>>, vector<1x1xf32>
    %246 = arith.addf %244, %245 : vector<1x1xf32>
    %cst_210 = arith.constant 0.000000e+00 : f32
    %247 = vector.broadcast %cst_210 : f32 to vector<1x1xf32>
    %248 = arith.subf %247, %246 : vector<1x1xf32>
    %249 = math.exp %248 : vector<1x1xf32>
    %cst_211 = arith.constant 1.000000e+00 : f32
    %250 = vector.broadcast %cst_211 : f32 to vector<1x1xf32>
    %251 = arith.addf %250, %249 : vector<1x1xf32>
    %cst_212 = arith.constant 1.000000e+00 : f32
    %252 = vector.broadcast %cst_212 : f32 to vector<1x1xf32>
    %253 = arith.divf %252, %251 : vector<1x1xf32>
    %c0_213 = arith.constant 0 : index
    %c0_214 = arith.constant 0 : index
    %c0_215 = arith.constant 0 : index
    %254 = vector.load %arg10[%c0_213, %c0_214, %c0_215] : memref<1x1x1xf32, #tpu.memory_space<vmem>>, vector<1x1x1xf32>
    %255 = vector.shape_cast %254 : vector<1x1x1xf32> to vector<1x1xf32>
    %256 = vector.shape_cast %253 : vector<1x1xf32> to vector<1x1x1xf32>
    tpu.vector_store %arg10[%c0_213, %c0_214, %c0_215], %256 {strides = array<i32>} : memref<1x1x1xf32, #tpu.memory_space<vmem>>, vector<1x1x1xf32>,
    return
  }
  func.func @transform_0(%arg0: i32) -> (i32, i32, i32) {
    %c0_i32 = arith.constant 0 : i32
    %c0_i32_0 = arith.constant 0 : i32
    %c0_i32_1 = arith.constant 0 : i32
    return %arg0, %c0_i32, %c0_i32_0 : i32, i32, i32
  }
  func.func @transform_1(%arg0: i32) -> (i32, i32, i32) {
    %c0_i32 = arith.constant 0 : i32
    %c0_i32_0 = arith.constant 0 : i32
    %c0_i32_1 = arith.constant 0 : i32
    %c0_i32_2 = arith.constant 0 : i32
    return %c0_i32, %c0_i32_0, %c0_i32_1 : i32, i32, i32
  }
  func.func @transform_2(%arg0: i32) -> (i32, i32) {
    %c0_i32 = arith.constant 0 : i32
    %c0_i32_0 = arith.constant 0 : i32
    %c0_i32_1 = arith.constant 0 : i32
    return %c0_i32, %c0_i32_0 : i32, i32
  }
  func.func @transform_3(%arg0: i32) -> (i32, i32, i32) {
    %c0_i32 = arith.constant 0 : i32
    %c0_i32_0 = arith.constant 0 : i32
    %c0_i32_1 = arith.constant 0 : i32
    %c0_i32_2 = arith.constant 0 : i32
    return %c0_i32, %c0_i32_0, %c0_i32_1 : i32, i32, i32
  }
  func.func @transform_4(%arg0: i32) -> (i32, i32) {
    %c0_i32 = arith.constant 0 : i32
    %c0_i32_0 = arith.constant 0 : i32
    %c0_i32_1 = arith.constant 0 : i32
    return %c0_i32, %c0_i32_0 : i32, i32
  }
  func.func @transform_5(%arg0: i32) -> (i32, i32, i32) {
    %c0_i32 = arith.constant 0 : i32
    %c0_i32_0 = arith.constant 0 : i32
    %c0_i32_1 = arith.constant 0 : i32
    %c0_i32_2 = arith.constant 0 : i32
    return %c0_i32, %c0_i32_0, %c0_i32_1 : i32, i32, i32
  }
  func.func @transform_6(%arg0: i32) -> (i32, i32) {
    %c0_i32 = arith.constant 0 : i32
    %c0_i32_0 = arith.constant 0 : i32
    %c0_i32_1 = arith.constant 0 : i32
    return %c0_i32, %c0_i32_0 : i32, i32
  }
  func.func @transform_7(%arg0: i32) -> (i32, i32) {
    %c0_i32 = arith.constant 0 : i32
    %c0_i32_0 = arith.constant 0 : i32
    %c0_i32_1 = arith.constant 0 : i32
    return %c0_i32, %c0_i32_0 : i32, i32
  }
  func.func @transform_8(%arg0: i32) -> (i32, i32) {
    %c0_i32 = arith.constant 0 : i32
    %c0_i32_0 = arith.constant 0 : i32
    %c0_i32_1 = arith.constant 0 : i32
    return %c0_i32, %c0_i32_0 : i32, i32
  }
  func.func @transform_9(%arg0: i32) -> (i32, i32, i32) {
    %c0_i32 = arith.constant 0 : i32
    %c0_i32_0 = arith.constant 0 : i32
    %c0_i32_1 = arith.constant 0 : i32
    return %arg0, %c0_i32, %c0_i32_0 : i32, i32, i32
  }
}

</mosaic_0001>

<bundles_post_ra>
// kernel: relation_network_forward.1
= control target key start
LH: loop header
LB: loop body
LE: loop exit
PB: predicated region body
PF: predicated region fallthrough
CT: control target
= control target key end

     0   :  { %s6620_s11 = smov 0   ;;  %s8849_s0 = inlined_call_operand.vmem [shape: f32[2,361,128], index: 0, kind: input, shape index: {}]   ;;  %s8850_s1 = inlined_call_operand.vmem [shape: bf16[9,128,64], index: 1, kind: input, shape index: {}]   ;;  %s8851_s2 = inlined_call_operand.vmem [shape: f32[1,64], index: 2, kind: input, shape index: {}]   ;;  %s8852_s3 = inlined_call_operand.vmem [shape: bf16[9,64,64], index: 3, kind: input, shape index: {}]   ;;  %s8853_s4 = inlined_call_operand.vmem [shape: f32[1,64], index: 4, kind: input, shape index: {}]   ;;  %s8854_s5 = inlined_call_operand.vmem [shape: f32[9,64,8], index: 5, kind: input, shape index: {}]   ;;  %s8855_s6 = inlined_call_operand.vmem [shape: f32[1,8], index: 6, kind: input, shape index: {}]   ;;  %s8856_s7 = inlined_call_operand.vmem [shape: f32[1,8], index: 7, kind: input, shape index: {}]   ;;  %s8857_s8 = inlined_call_operand.<no memory space> [shape: f32[1,1], index: 8, kind: input, shape index: {}]   ;;  %s8858_s9 = inlined_call_operand.vmem [shape: f32[2,1,1], index: 9, kind: output, shape index: {}]  }
   0x1   :  { %v14_v0 = vstv %s8857_s8 }
   0x2   :  { %15 = vst [vmem:[#allocation5] sm:$0x1] %v14_v0 }
   0x3 LB: > { %s5577_s12 = sadd.s32 4294967295, %s6565_s11   ;;  %p5581_p0 = scmp.ge.s32.totalorder %s6565_s11, 1  ;;  %s6565_s11 = sphi %s6620_s11, %s21_s11  }
   0x4   : > { %p289_p1 = scmp.lt.s32.totalorder %s6565_s11, 3 }
   0x6   : > { %p290_p2 = pnand %p5581_p0, %p289_p1 }
   0x8   : > { %293 = sbr.rel (%p290_p2) target bundleno = 1996 (0x7cc), region = 56 }
   0xd   : > { %v6414_v1 = vld [vmem:[%s8850_s1 + $0x78] sm:$0xff]  ;;  %v6413_v3 = vld [vmem:[%s8850_s1 + $0x70] sm:$0xff]  ;;  %v6412_v6 = vld [vmem:[%s8850_s1 + $0x68] sm:$0xff]  ;;  %p323_p3 = scmp.lt.s32.totalorder %s5577_s12, 1  ;;  %vm2864_vm0 = vcmask 523264   ;;  %vm2905_vm1 = vcmask 516096  }
   0xe   : > { %v6406_v2 = vld [vmem:[%s8850_s1 + $0x38] sm:$0xff]  ;;  %537 = vmatpush.bf16.msra.mxu0 %v6414_v1  ;;  %v6405_v4 = vld [vmem:[%s8850_s1 + $0x30] sm:$0xff]  ;;  %v6404_v7 = vld [vmem:[%s8850_s1 + $0x28] sm:$0xff]  ;;  %vm5503_vm2 = vcmask 57344   ;;  %vm5528_vm6 = vcmask 0  }
   0xf   : > { %698 = vmatpush.bf16.msra.mxu1 %v6406_v2  ;;  %6507 = vmatpush.bf16.msra.mxu3 %v6406_v2  ;;  %v6422_v5 = vld [vmem:[%s8850_s1 + $0xb8] sm:$0xff]  ;;  %v6652_v8 = vld [vmem:[%s8850_s1 + $0xb0] sm:$0xff]  ;;  %v6411_v9 = vld [vmem:[%s8850_s1 + $0x60] sm:$0xff]  ;;  %s8999_s12 = smov (!%p323_p3, %s5577_s12), 1 }
  0x10   : > { %6515 = vmatpush.bf16.msra.mxu2 %v6422_v5  ;;  %v6403_v10 = vld [vmem:[%s8850_s1 + $0x20] sm:$0xff]  ;;  %v6420_v11 = vld [vmem:[%s8850_s1 + $0xa8] sm:$0xff]  ;;  %v6410_v12 = vld [vmem:[%s8850_s1 + $0x58] sm:$0xff]  ;;  %s6523_s24 = smul.u32 368, %s8999_s12  ;;  %s330_s15 = scalar_lea.vmem %s8858_s9, %s8999_s12 }
  0x11   : > { %v6402_v13 = vld [vmem:[%s8850_s1 + $0x18] sm:$0xff]  ;;  %v6419_v14 = vld [vmem:[%s8850_s1 + $0xa0] sm:$0xff]  ;;  %v6409_v15 = vld [vmem:[%s8850_s1 + $0x50] sm:$0xff] }
  0x12   : > { %538 = vmatpush.bf16.msra.mxu0 %v6413_v3  ;;  %v6401_v16 = vld [vmem:[%s8850_s1 + $0x10] sm:$0xff]  ;;  %v6418_v17 = vld [vmem:[%s8850_s1 + $0x98] sm:$0xff]  ;;  %v6408_v18 = vld [vmem:[%s8850_s1 + $0x48] sm:$0xff]  ;;  %s6698_s14 = scalar_lea.vmem %s8849_s0, %s6523_s24 }
  0x13   : > { %699 = vmatpush.bf16.msra.mxu1 %v6405_v4  ;;  %6508 = vmatpush.bf16.msra.mxu3 %v6405_v4  ;;  %v6400_v19 = vld [vmem:[%s8850_s1 + $0x8] sm:$0xff]  ;;  %v6417_v20 = vld [vmem:[%s8850_s1 + $0x90] sm:$0xff]  ;;  %v6407_v21 = vld [vmem:[%s8850_s1 + $0x40] sm:$0xff] }
  0x14   : > { %6516 = vmatpush.bf16.msra.mxu2 %v6652_v8  ;;  %v6399_v22 = vld [vmem:[%s8850_s1] sm:$0xff]  ;;  %v411_v24 = vld [vmem:[%s6698_s14 + $0x9] sm:$0xff]  ;;  %v371_v28 = vld [vmem:[%s6698_s14 + $0x138] sm:$0xff] }
  0x15   : > { %v410_v23 = vld [vmem:[%s6698_s14 + $0x1] sm:$0xff]  ;;  %v370_v27 = vld [vmem:[%s6698_s14 + $0x130] sm:$0xff]  ;;  %v6430_v29 = vld [vmem:[%s8850_s1 + $0xf8] sm:$0xff] }
  0x16   : > { %539 = vmatpush.bf16.msra.mxu0 %v6412_v6  ;;  %v332_v25 = vld [vmem:[%s6698_s14] sm:$0xff]  ;;  %v333_v26 = vld [vmem:[%s6698_s14 + $0x8] sm:$0xff]  ;;  %v451_v31 = vpack.c.bf16 %v411_v24, %v410_v23  ;;  %v392_v33 = vpack.c.bf16 %v371_v28, %v370_v27  ;;  %v6429_v34 = vld [vmem:[%s8850_s1 + $0xf0] sm:$0xff] }
  0x17   : > { %700 = vmatpush.bf16.msra.mxu1 %v6404_v7  ;;  %6509 = vmatpush.bf16.msra.mxu3 %v6404_v7  ;;  %v6416_v30 = vld [vmem:[%s8850_s1 + $0x88] sm:$0xff]  ;;  %v373_v32 = vpack.c.bf16 %v333_v26, %v332_v25  ;;  %v6415_v35 = vld [vmem:[%s8850_s1 + $0x80] sm:$0xff]  ;;  %v412_v41 = vld [vmem:[%s6698_s14 + $0x11] sm:$0xff] }
  0x18   : > { %6517 = vmatpush.bf16.msra.mxu2 %v6420_v11  ;;  %v815_v36 = vld [vmem:[%s6698_s14 + $0x22] sm:$0xff]  ;;  %v816_v37 = vld [vmem:[%s6698_s14 + $0x2a] sm:$0xff]  ;;  %v413_v42 = vld [vmem:[%s6698_s14 + $0x19] sm:$0xff] }
  0x19   : > { %v854_v38 = vpack.c.bf16 %v816_v37, %v815_v36  ;;  %v6428_v39 = vld [vmem:[%s8850_s1 + $0xe8] sm:$0xff]  ;;  %v6427_v40 = vld [vmem:[%s8850_s1 + $0xe0] sm:$0xff]  ;;  %v334_v43 = vld [vmem:[%s6698_s14 + $0x10] sm:$0xff]  ;;  %v452_v47 = vpack.c.bf16 %v413_v42, %v412_v41 }
  0x1a   : > { %540 = vmatpush.bf16.msra.mxu0 %v6411_v9  ;;  %v335_v44 = vld [vmem:[%s6698_s14 + $0x18] sm:$0xff]  ;;  %v372_v45 = vld [vmem:[%s6698_s14 + $0x140] sm:$0x1]  ;;  %v6425_v50 = vld [vmem:[%s8850_s1 + $0xd0] sm:$0xff] }
  0x1b   : > { %701 = vmatpush.bf16.msra.mxu1 %v6403_v10  ;;  %6510 = vmatpush.bf16.msra.mxu3 %v6403_v10  ;;  %v6426_v46 = vld [vmem:[%s8850_s1 + $0xd8] sm:$0xff]  ;;  %v374_v48 = vpack.c.bf16 %v335_v44, %v334_v43  ;;  %v393_v49 = vpack.c.bf16 %v372_v45, %v372_v45  ;;  %v6424_v54 = vld [vmem:[%s8850_s1 + $0xc8] sm:$0xff]  ;;  %v6423_v55 = vld [vmem:[%s8850_s1 + $0xc0] sm:$0xff] }
  0x1c   : > { %6518 = vmatpush.bf16.msra.mxu2 %v6419_v14  ;;  %v817_v51 = vld [vmem:[%s6698_s14 + $0x32] sm:$0xff]  ;;  %v818_v52 = vld [vmem:[%s6698_s14 + $0x3a] sm:$0xff]  ;;  %v415_v57 = vld [vmem:[%s6698_s14 + $0x29] sm:$0xff] }
  0x1d   : > { %v855_v53 = vpack.c.bf16 %v818_v52, %v817_v51  ;;  %v414_v56 = vld [vmem:[%s6698_s14 + $0x21] sm:$0xff]  ;;  %v1092_v60 = vld [vmem:[%s6698_s14 + $0x13] sm:$0xff]  ;;  %v820_v2 = vld [vmem:[%s6698_s14 + $0x4a] sm:$0xff] }
  0x1e   : > { %541 = vmatpush.bf16.msra.mxu0 %v6410_v12  ;;  %v336_v58 = vld [vmem:[%s6698_s14 + $0x20] sm:$0xff]  ;;  %v337_v59 = vld [vmem:[%s6698_s14 + $0x28] sm:$0xff]  ;;  %v453_v62 = vpack.c.bf16 %v415_v57, %v414_v56  ;;  %v416_v4 = vld [vmem:[%s6698_s14 + $0x31] sm:$0xff] }
  0x1f   : > { %702 = vmatpush.bf16.msra.mxu1 %v6402_v13  ;;  %6511 = vmatpush.bf16.msra.mxu3 %v6402_v13  ;;  %v1093_v61 = vld [vmem:[%s6698_s14 + $0x1b] sm:$0xff]  ;;  %v375_v63 = vpack.c.bf16 %v337_v59, %v336_v58  ;;  %v338_v6 = vld [vmem:[%s6698_s14 + $0x30] sm:$0xff]  ;;  %v345_v43 = vld [vmem:[%s6698_s14 + $0x68] sm:$0xff] }
  0x20   : > { %6519 = vmatpush.bf16.msra.mxu2 %v6418_v17  ;;  %v1133_v0 = vpack.c.bf16 %v1093_v61, %v1092_v60  ;;  %v819_v1 = vld [vmem:[%s6698_s14 + $0x42] sm:$0xff]  ;;  %v339_v7 = vld [vmem:[%s6698_s14 + $0x38] sm:$0xff]  ;;  %v1095_v9 = vld [vmem:[%s6698_s14 + $0x2b] sm:$0xff] }
  0x21   : > { %v856_v3 = vpack.c.bf16 %v820_v2, %v819_v1  ;;  %v821_v13 = vld [vmem:[%s6698_s14 + $0x52] sm:$0xff]  ;;  %v823_v25 = vld [vmem:[%s6698_s14 + $0x62] sm:$0xff]  ;;  %v824_v26 = vld [vmem:[%s6698_s14 + $0x6a] sm:$0xff] }
  0x22   : > { %542 = vmatpush.bf16.msra.mxu0 %v6409_v15  ;;  %v858_v27 = vpack.c.bf16 %v824_v26, %v823_v25  ;;  %v420_v28 = vld [vmem:[%s6698_s14 + $0x51] sm:$0xff]  ;;  %v423_v41 = vld [vmem:[%s6698_s14 + $0x69] sm:$0xff]  ;;  %v344_v42 = vld [vmem:[%s6698_s14 + $0x60] sm:$0xff] }
  0x23   : > { %703 = vmatpush.bf16.msra.mxu1 %v6401_v16  ;;  %6512 = vmatpush.bf16.msra.mxu3 %v6401_v16  ;;  %v418_v16 = vld [vmem:[%s6698_s14 + $0x41] sm:$0xff]  ;;  %v825_v37 = vld [vmem:[%s6698_s14 + $0x72] sm:$0xff]  ;;  %v427_v1 = vld [vmem:[%s6698_s14 + $0x89] sm:$0xff] }
  0x24   : > { %6520 = vmatpush.bf16.msra.mxu2 %v6417_v20  ;;  %v1100_v44 = vld [vmem:[%s6698_s14 + $0x53] sm:$0xff]  ;;  %v1101_v45 = vld [vmem:[%s6698_s14 + $0x5b] sm:$0xff]  ;;  %v1102_v56 = vld [vmem:[%s6698_s14 + $0x63] sm:$0xff] }
  0x25   : > { %v424_v52 = vld [vmem:[%s6698_s14 + $0x71] sm:$0xff]  ;;  %v348_v2 = vld [vmem:[%s6698_s14 + $0x80] sm:$0xff] }
  0x26   : > { %543 = vmatpush.bf16.msra.mxu0 %v6408_v18  ;;  %v340_v18 = vld [vmem:[%s6698_s14 + $0x40] sm:$0xff]  ;;  %v1103_v57 = vld [vmem:[%s6698_s14 + $0x6b] sm:$0xff] }
  0x27   : > { %704 = vmatpush.bf16.msra.mxu1 %v6400_v19  ;;  %6513 = vmatpush.bf16.msra.mxu3 %v6400_v19  ;;  %v341_v19 = vld [vmem:[%s6698_s14 + $0x48] sm:$0xff]  ;;  %v1138_v60 = vpack.c.bf16 %v1103_v57, %v1102_v56  ;;  %v829_v61 = vld [vmem:[%s6698_s14 + $0x92] sm:$0xff] }
  0x28   : > { %6521 = vmatpush.bf16.msra.mxu2 %v6416_v30  ;;  %v377_v23 = vpack.c.bf16 %v341_v19, %v340_v18  ;;  %v428_v19 = vld [vmem:[%s6698_s14 + $0x91] sm:$0xff] }
  0x29   : > { %v1107_v25 = vld [vmem:[%s6698_s14 + $0x8b] sm:$0xff] }
  0x2a   : > { %544 = vmatpush.bf16.msra.mxu0 %v6407_v21  ;;  %v1097_v21 = vld [vmem:[%s6698_s14 + $0x3b] sm:$0xff]  ;;  %v836_v56 = vld [vmem:[%s6698_s14 + $0xca] sm:$0xff] }
  0x2b   : > { %705 = vmatpush.bf16.msra.mxu1 %v6399_v22  ;;  %6514 = vmatpush.bf16.msra.mxu3 %v6399_v22 }
  0x2c   : > { %6522 = vmatpush.bf16.msra.mxu2 %v6415_v35 }
  0x2d   : > { %545 = vmatmul.bf16.vlgmr.msra.gmra.mxu0 %v451_v31  ;;  %v343_v31 = vld [vmem:[%s6698_s14 + $0x58] sm:$0xff] }
  0x2e   : > { %938 = vmatpush.bf16.msrb.mxu0 %v6422_v5  ;;  %706 = vmatmul.bf16.vlgmr.msra.gmra.mxu1 %v373_v32  ;;  %v417_v5 = vld [vmem:[%s6698_s14 + $0x39] sm:$0xff]  ;;  %v1098_v32 = vld [vmem:[%s6698_s14 + $0x43] sm:$0xff] }
  0x2f   : > { %1219 = vmatpush.bf16.msrb.mxu3 %v6430_v29  ;;  %956 = vmatmul.bf16.vlgmr.msra.gmra.mxu2 %v854_v38  ;;  %v454_v10 = vpack.c.bf16 %v417_v5, %v416_v4  ;;  %v421_v29 = vld [vmem:[%s6698_s14 + $0x59] sm:$0xff] }
  0x30   : > { %801 = vmatmul.bf16.vlgmr.msra.gmra.mxu3 %v392_v33  ;;  %v1099_v33 = vld [vmem:[%s6698_s14 + $0x4b] sm:$0xff]  ;;  %v826_v38 = vld [vmem:[%s6698_s14 + $0x7a] sm:$0xff] }
  0x31   : > { %v1136_v36 = vpack.c.bf16 %v1099_v33, %v1098_v32  ;;  %v1104_v4 = vld [vmem:[%s6698_s14 + $0x73] sm:$0xff]  ;;  %v1105_v5 = vld [vmem:[%s6698_s14 + $0x7b] sm:$0xff] }
  0x32   : > { %939 = vmatpush.bf16.msrb.mxu0 %v6652_v8  ;;  %v1094_v8 = vld [vmem:[%s6698_s14 + $0x23] sm:$0xff]  ;;  %v833_v33 = vld [vmem:[%s6698_s14 + $0xb2] sm:$0xff] }
  0x33   : > { %1220 = vmatpush.bf16.msrb.mxu3 %v6429_v34  ;;  %v1134_v12 = vpack.c.bf16 %v1095_v9, %v1094_v8  ;;  %v456_v34 = vpack.c.bf16 %v421_v29, %v420_v28 }
  0x36   : > { %940 = vmatpush.bf16.msrb.mxu0 %v6420_v11  ;;  %v376_v11 = vpack.c.bf16 %v339_v7, %v338_v6 }
  0x37   : > { %1221 = vmatpush.bf16.msrb.mxu3 %v6428_v39  ;;  %v859_v39 = vpack.c.bf16 %v826_v38, %v825_v37 }
  0x3a   : > { %941 = vmatpush.bf16.msrb.mxu0 %v6419_v14  ;;  %v822_v14 = vld [vmem:[%s6698_s14 + $0x5a] sm:$0xff] }
  0x3b   : > { %1222 = vmatpush.bf16.msrb.mxu3 %v6427_v40  ;;  %v857_v15 = vpack.c.bf16 %v822_v14, %v821_v13  ;;  %v422_v40 = vld [vmem:[%s6698_s14 + $0x61] sm:$0xff]  ;;  %v832_v13 = vld [vmem:[%s6698_s14 + $0xaa] sm:$0xff] }
  0x3d   : > { %550 = vmatmul.bf16.gmra.mxu0 %v452_v47  ;;  %v379_v47 = vpack.c.bf16 %v345_v43, %v344_v42  ;;  %v431_v42 = vld [vmem:[%s6698_s14 + $0xa9] sm:$0xff]  ;;  %v352_v43 = vld [vmem:[%s6698_s14 + $0xa0] sm:$0xff] }
  0x3e   : > { %942 = vmatpush.bf16.msrb.mxu0 %v6418_v17  ;;  %711 = vmatmul.bf16.gmra.mxu1 %v374_v48  ;;  %v419_v17 = vld [vmem:[%s6698_s14 + $0x49] sm:$0xff]  ;;  %v1137_v48 = vpack.c.bf16 %v1101_v45, %v1100_v44 }
  0x3f   : > { %1223 = vmatpush.bf16.msrb.mxu3 %v6426_v46  ;;  %961 = vmatmul.bf16.gmra.mxu2 %v855_v53  ;;  %v455_v22 = vpack.c.bf16 %v419_v17, %v418_v16  ;;  %v457_v46 = vpack.c.bf16 %v423_v41, %v422_v40  ;;  %v425_v53 = vld [vmem:[%s6698_s14 + $0x79] sm:$0xff]  ;;  %v430_v41 = vld [vmem:[%s6698_s14 + $0xa1] sm:$0xff] }
  0x40   : > { %806 = vmatmul.bf16.gmra.mxu3 %v393_v49  ;;  %v827_v49 = vld [vmem:[%s6698_s14 + $0x82] sm:$0xff]  ;;  %v458_v58 = vpack.c.bf16 %v425_v53, %v424_v52 }
  0x41   : > { %v353_v44 = vld [vmem:[%s6698_s14 + $0xa8] sm:$0xff] }
  0x42   : > { %943 = vmatpush.bf16.msrb.mxu0 %v6417_v20  ;;  %v1096_v20 = vld [vmem:[%s6698_s14 + $0x33] sm:$0xff] }
  0x43   : > { %1224 = vmatpush.bf16.msrb.mxu3 %v6425_v50  ;;  %v1135_v24 = vpack.c.bf16 %v1097_v21, %v1096_v20  ;;  %v828_v50 = vld [vmem:[%s6698_s14 + $0x8a] sm:$0xff]  ;;  %v429_v20 = vld [vmem:[%s6698_s14 + $0x99] sm:$0xff] }
  0x44   : > { %v860_v51 = vpack.c.bf16 %v828_v50, %v827_v49  ;;  %v350_v21 = vld [vmem:[%s6698_s14 + $0x90] sm:$0xff]  ;;  %v461_v49 = vpack.c.bf16 %v431_v42, %v430_v41  ;;  %v383_v50 = vpack.c.bf16 %v353_v44, %v352_v43 }
  0x46   : > { %944 = vmatpush.bf16.msrb.mxu0 %v6416_v30  ;;  %v342_v30 = vld [vmem:[%s6698_s14 + $0x50] sm:$0xff] }
  0x47   : > { %1225 = vmatpush.bf16.msrb.mxu3 %v6424_v54  ;;  %v346_v54 = vld [vmem:[%s6698_s14 + $0x70] sm:$0xff] }
  0x4a   : > { %945 = vmatpush.bf16.msrb.mxu0 %v6415_v35  ;;  %v378_v35 = vpack.c.bf16 %v343_v31, %v342_v30 }
  0x4b   : > { %1226 = vmatpush.bf16.msrb.mxu3 %v6423_v55  ;;  %v347_v55 = vld [vmem:[%s6698_s14 + $0x78] sm:$0xff] }
  0x4c   : > { %v380_v59 = vpack.c.bf16 %v347_v55, %v346_v54  ;;  %v835_v55 = vld [vmem:[%s6698_s14 + $0xc2] sm:$0xff] }
  0x4d   : > { %555 = vmatmul.bf16.gmra.mxu0 %v453_v62  ;;  %v830_v62 = vld [vmem:[%s6698_s14 + $0x9a] sm:$0xff] }
  0x4e   : > { %716 = vmatmul.bf16.gmra.mxu1 %v375_v63  ;;  %v861_v63 = vpack.c.bf16 %v830_v62, %v829_v61 }
  0x4f   : > { %966 = vmatmul.bf16.gmra.mxu2 %v856_v3  ;;  %v349_v3 = vld [vmem:[%s6698_s14 + $0x88] sm:$0xff] }
  0x50   : > { %1227 = vmatmul.bf16.vlgmr.msrb.gmra.mxu3 %v1133_v0  ;;  %v426_v0 = vld [vmem:[%s6698_s14 + $0x81] sm:$0xff]  ;;  %v381_v7 = vpack.c.bf16 %v349_v3, %v348_v2  ;;  %v433_v2 = vld [vmem:[%s6698_s14 + $0xb9] sm:$0xff]  ;;  %v354_v3 = vld [vmem:[%s6698_s14 + $0xb0] sm:$0xff] }
  0x51   : > { %v459_v6 = vpack.c.bf16 %v427_v1, %v426_v0  ;;  %v432_v1 = vld [vmem:[%s6698_s14 + $0xb1] sm:$0xff] }
  0x5d   : > { %560 = vmatmul.bf16.gmra.mxu0 %v454_v10  ;;  %v1139_v10 = vpack.c.bf16 %v1105_v5, %v1104_v4  ;;  %v355_v4 = vld [vmem:[%s6698_s14 + $0xb8] sm:$0xff] }
  0x5e   : > { %721 = vmatmul.bf16.gmra.mxu1 %v376_v11 }
  0x5f   : > { %971 = vmatmul.bf16.gmra.mxu2 %v857_v15 }
  0x60   : > { %1232 = vmatmul.bf16.gmra.mxu3 %v1134_v12  ;;  %v831_v12 = vld [vmem:[%s6698_s14 + $0xa2] sm:$0xff] }
  0x61   : > { %v862_v14 = vpack.c.bf16 %v832_v13, %v831_v12 }
  0x6d   : > { %565 = vmatmul.bf16.gmra.mxu0 %v455_v22  ;;  %v351_v22 = vld [vmem:[%s6698_s14 + $0x98] sm:$0xff] }
  0x6e   : > { %726 = vmatmul.bf16.gmra.mxu1 %v377_v23  ;;  %v382_v28 = vpack.c.bf16 %v351_v22, %v350_v21 }
  0x6f   : > { %976 = vmatmul.bf16.gmra.mxu2 %v858_v27  ;;  %v460_v27 = vpack.c.bf16 %v429_v20, %v428_v19  ;;  %v838_v19 = vld [vmem:[%s6698_s14 + $0xda] sm:$0xff] }
  0x70   : > { %1237 = vmatmul.bf16.gmra.mxu3 %v1135_v24  ;;  %v1106_v24 = vld [vmem:[%s6698_s14 + $0x83] sm:$0xff] }
  0x71   : > { %v1140_v31 = vpack.c.bf16 %v1107_v25, %v1106_v24 }
  0x7d   : > { %570 = vmatmul.bf16.gmra.mxu0 %v456_v34  ;;  %v834_v34 = vld [vmem:[%s6698_s14 + $0xba] sm:$0xff] }
  0x7e   : > { %731 = vmatmul.bf16.gmra.mxu1 %v378_v35 }
  0x7f   : > { %981 = vmatmul.bf16.gmra.mxu2 %v859_v39 }
  0x80   : > { %1242 = vmatmul.bf16.gmra.mxu3 %v1136_v36  ;;  %v863_v36 = vpack.c.bf16 %v834_v34, %v833_v33  ;;  %v357_v33 = vld [vmem:[%s6698_s14 + $0xc8] sm:$0xff] }
  0x8d   : > { %575 = vmatmul.bf16.gmra.mxu0 %v457_v46  ;;  %v1108_v46 = vld [vmem:[%s6698_s14 + $0x93] sm:$0xff] }
  0x8e   : > { %736 = vmatmul.bf16.gmra.mxu1 %v379_v47  ;;  %v1109_v47 = vld [vmem:[%s6698_s14 + $0x9b] sm:$0xff] }
  0x8f   : > { %986 = vmatmul.bf16.gmra.mxu2 %v860_v51  ;;  %v1141_v53 = vpack.c.bf16 %v1109_v47, %v1108_v46  ;;  %v839_v46 = vld [vmem:[%s6698_s14 + $0xe2] sm:$0xff]  ;;  %v840_v47 = vld [vmem:[%s6698_s14 + $0xea] sm:$0xff] }
  0x90   : > { %1247 = vmatmul.bf16.gmra.mxu3 %v1137_v48 }
  0x9d   : > { %580 = vmatmul.bf16.gmra.mxu0 %v458_v58 }
  0x9e   : > { %741 = vmatmul.bf16.gmra.mxu1 %v380_v59  ;;  %v864_v59 = vpack.c.bf16 %v836_v56, %v835_v55 }
  0x9f   : > { %991 = vmatmul.bf16.gmra.mxu2 %v861_v63 }
  0xa0   : > { %1252 = vmatmul.bf16.gmra.mxu3 %v1138_v60 }
  0xaa   : > { %v546_v8 = vpop.f32.mrf.mxu0 }
  0xab   : > { %v707_v9 = vpop.f32.mrf.mxu1 }
  0xac   : > { %v6809_v11 = vadd.f32 %v707_v9, %v546_v8  ;;  %v462_v9 = vpack.c.bf16 %v433_v2, %v432_v1  ;;  %v1114_v1 = vld [vmem:[%s6698_s14 + $0xc3] sm:$0xff]  ;;  %v1115_v2 = vld [vmem:[%s6698_s14 + $0xcb] sm:$0xff] }
  0xad   : > { %585 = vmatmul.bf16.gmra.mxu0 %v459_v6  ;;  %v1110_v6 = vld [vmem:[%s6698_s14 + $0xa3] sm:$0xff] }
  0xae   : > { %746 = vmatmul.bf16.gmra.mxu1 %v381_v7  ;;  %v1111_v7 = vld [vmem:[%s6698_s14 + $0xab] sm:$0xff] }
  0xaf   : > { %996 = vmatmul.bf16.gmra.mxu2 %v862_v14  ;;  %v1142_v14 = vpack.c.bf16 %v1111_v7, %v1110_v6 }
  0xb0   : > { %1257 = vmatmul.bf16.gmra.mxu3 %v1139_v10  ;;  %v384_v10 = vpack.c.bf16 %v355_v4, %v354_v3 }
  0xb2   : > { %v548_v16 = vpop.f32.mrf.mxu0  ;;  %v957_v23 = vpop.f32.mrf.mxu2 }
  0xb3   : > { %v6813_v15 = vpop.f32.mrf.mxu3  ;;  %v709_v17 = vpop.f32.mrf.mxu1 }
  0xb4   : > { %v6815_v18 = vadd.f32 %v709_v17, %v548_v16  ;;  %v837_v17 = vld [vmem:[%s6698_s14 + $0xd2] sm:$0xff] }
  0xb5   : > { %v865_v22 = vpack.c.bf16 %v838_v19, %v837_v17 }
  0xba   : > { %v551_v29 = vpop.f32.mrf.mxu0  ;;  %v959_v35 = vpop.f32.mrf.mxu2 }
  0xbb   : > { %v6823_v26 = vpop.f32.mrf.mxu3  ;;  %v712_v30 = vpop.f32.mrf.mxu1 }
  0xbc   : > { %v6825_v32 = vadd.f32 %v712_v30, %v551_v29  ;;  %v434_v29 = vld [vmem:[%s6698_s14 + $0xc1] sm:$0xff]  ;;  %v435_v30 = vld [vmem:[%s6698_s14 + $0xc9] sm:$0xff] }
  0xbd   : > { %590 = vmatmul.bf16.gmra.mxu0 %v460_v27 }
  0xbe   : > { %751 = vmatmul.bf16.gmra.mxu1 %v382_v28 }
  0xbf   : > { %1001 = vmatmul.bf16.gmra.mxu2 %v863_v36  ;;  %v1113_v36 = vld [vmem:[%s6698_s14 + $0xbb] sm:$0xff] }
  0xc0   : > { %1262 = vmatmul.bf16.gmra.mxu3 %v1140_v31  ;;  %v356_v31 = vld [vmem:[%s6698_s14 + $0xc0] sm:$0xff] }
  0xc1   : > { %v385_v41 = vpack.c.bf16 %v357_v33, %v356_v31  ;;  %v361_v31 = vld [vmem:[%s6698_s14 + $0xe8] sm:$0xff] }
  0xc2   : > { %v553_v38 = vpop.f32.mrf.mxu0  ;;  %v962_v45 = vpop.f32.mrf.mxu2 }
  0xc3   : > { %v6829_v37 = vpop.f32.mrf.mxu3  ;;  %v714_v39 = vpop.f32.mrf.mxu1 }
  0xc4   : > { %v6831_v40 = vadd.f32 %v714_v39, %v553_v38  ;;  %v463_v39 = vpack.c.bf16 %v435_v30, %v434_v29  ;;  %v439_v29 = vld [vmem:[%s6698_s14 + $0xe9] sm:$0xff]  ;;  %v360_v30 = vld [vmem:[%s6698_s14 + $0xe0] sm:$0xff] }
  0xca   : > { %v556_v51 = vpop.f32.mrf.mxu0  ;;  %v964_v58 = vpop.f32.mrf.mxu2 }
  0xcb   : > { %v809_v48 = vpop.f32.mrf.mxu3  ;;  %v717_v52 = vpop.f32.mrf.mxu1 }
  0xcc   : > { %v718_v54 = vadd.f32 %v717_v52, %v556_v51 }
  0xcd   : > { %595 = vmatmul.bf16.gmra.mxu0 %v461_v49 }
  0xce   : > { %v6841_v57 = vadd.f32 %v957_v23, %v718_v54  ;;  %756 = vmatmul.bf16.gmra.mxu1 %v383_v50  ;;  %v866_v50 = vpack.c.bf16 %v840_v47, %v839_v46  ;;  %v6454_v46 = vld [vmem:[%s8850_s1 + $0x1b8] sm:$0xff]  ;;  %v843_v47 = vld [vmem:[%s6698_s14 + $0x102] sm:$0xff] }
  0xcf   : > { %1006 = vmatmul.bf16.gmra.mxu2 %v864_v59  ;;  %v437_v59 = vld [vmem:[%s6698_s14 + $0xd9] sm:$0xff] }
  0xd0   : > { %1267 = vmatmul.bf16.gmra.mxu3 %v1141_v53  ;;  %2062 = vmatpush.bf16.msrb.mxu2 %v6454_v46 }
  0xd2   : > { %v558_v61 = vpop.f32.mrf.mxu0  ;;  %v967_v5 = vpop.f32.mrf.mxu2 }
  0xd3   : > { %v6843_v60 = vpop.f32.mrf.mxu3  ;;  %v719_v62 = vpop.f32.mrf.mxu1 }
  0xd4   : > { %v720_v63 = vadd.f32 %v719_v62, %v558_v61  ;;  %v358_v61 = vld [vmem:[%s6698_s14 + $0xd0] sm:$0xff]  ;;  %v359_v62 = vld [vmem:[%s6698_s14 + $0xd8] sm:$0xff] }
  0xd6   : > { %v6845_v0 = vadd.f32 %v959_v35, %v720_v63  ;;  %v1112_v35 = vld [vmem:[%s6698_s14 + $0xb3] sm:$0xff] }
  0xd7   : > { %v1143_v44 = vpack.c.bf16 %v1113_v36, %v1112_v35  ;;  %v1117_v35 = vld [vmem:[%s6698_s14 + $0xdb] sm:$0xff] }
  0xda   : > { %v561_v12 = vpop.f32.mrf.mxu0  ;;  %v969_v21 = vpop.f32.mrf.mxu2 }
  0xdb   : > { %v6853_v8 = vpop.f32.mrf.mxu3  ;;  %v722_v13 = vpop.f32.mrf.mxu1 }
  0xdc   : > { %v723_v16 = vadd.f32 %v722_v13, %v561_v12  ;;  %v841_v12 = vld [vmem:[%s6698_s14 + $0xf2] sm:$0xff]  ;;  %v842_v13 = vld [vmem:[%s6698_s14 + $0xfa] sm:$0xff] }
  0xdd   : > { %600 = vmatmul.bf16.gmra.mxu0 %v462_v9  ;;  %v1144_v9 = vpack.c.bf16 %v1115_v2, %v1114_v1  ;;  %v441_v1 = vld [vmem:[%s6698_s14 + $0xf9] sm:$0xff]  ;;  %v362_v2 = vld [vmem:[%s6698_s14 + $0xf0] sm:$0xff] }
  0xde   : > { %v6857_v20 = vadd.f32 %v962_v45, %v723_v16  ;;  %761 = vmatmul.bf16.gmra.mxu1 %v384_v10 }
  0xdf   : > { %1011 = vmatmul.bf16.gmra.mxu2 %v865_v22 }
  0xe0   : > { %1272 = vmatmul.bf16.gmra.mxu3 %v1142_v14 }
  0xe2   : > { %v563_v24 = vpop.f32.mrf.mxu0  ;;  %v972_v34 = vpop.f32.mrf.mxu2 }
  0xe3   : > { %v6859_v23 = vpop.f32.mrf.mxu3  ;;  %v724_v25 = vpop.f32.mrf.mxu1 }
  0xe4   : > { %v725_v27 = vadd.f32 %v724_v25, %v563_v24 }
  0xe6   : > { %v6861_v28 = vadd.f32 %v964_v58, %v725_v27  ;;  %v436_v58 = vld [vmem:[%s6698_s14 + $0xd1] sm:$0xff]  ;;  %v438_v27 = vld [vmem:[%s6698_s14 + $0xe1] sm:$0xff] }
  0xe7   : > { %v464_v4 = vpack.c.bf16 %v437_v59, %v436_v58 }
  0xea   : > { %v566_v42 = vpop.f32.mrf.mxu0  ;;  %v974_v49 = vpop.f32.mrf.mxu2 }
  0xeb   : > { %v6869_v38 = vpop.f32.mrf.mxu3  ;;  %v727_v43 = vpop.f32.mrf.mxu1 }
  0xec   : > { %v728_v45 = vadd.f32 %v727_v43, %v566_v42 }
  0xed   : > { %605 = vmatmul.bf16.gmra.mxu0 %v463_v39  ;;  %v465_v39 = vpack.c.bf16 %v439_v29, %v438_v27 }
  0xee   : > { %v6873_v48 = vadd.f32 %v967_v5, %v728_v45  ;;  %766 = vmatmul.bf16.gmra.mxu1 %v385_v41  ;;  %v386_v5 = vpack.c.bf16 %v359_v62, %v358_v61  ;;  %v387_v41 = vpack.c.bf16 %v361_v31, %v360_v30 }
  0xef   : > { %1016 = vmatmul.bf16.gmra.mxu2 %v866_v50 }
  0xf0   : > { %1277 = vmatmul.bf16.gmra.mxu3 %v1143_v44 }
  0xf2   : > { %v568_v53 = vpop.f32.mrf.mxu0  ;;  %v977_v63 = vpop.f32.mrf.mxu2 }
  0xf3   : > { %v1238_v51 = vpop.f32.mrf.mxu3  ;;  %v729_v54 = vpop.f32.mrf.mxu1 }
  0xf4   : > { %v6876_v52 = vadd.f32 %v1238_v51, %v6841_v57  ;;  %v730_v55 = vadd.f32 %v729_v54, %v568_v53  ;;  %v6446_v51 = vld [vmem:[%s8850_s1 + $0x178] sm:$0xff] }
  0xf5   : > { %1781 = vmatpush.bf16.msrb.mxu1 %v6446_v51 }
  0xf6   : > { %v6878_v56 = vadd.f32 %v969_v21, %v730_v55 }
  0xfa   : > { %v571_v6 = vpop.f32.mrf.mxu0  ;;  %v979_v16 = vpop.f32.mrf.mxu2 }
  0xfb   : > { %v1240_v3 = vpop.f32.mrf.mxu3  ;;  %v732_v7 = vpop.f32.mrf.mxu1 }
  0xfc   : > { %v6887_v57 = vadd.f32 %v1240_v3, %v6845_v0  ;;  %v733_v10 = vadd.f32 %v732_v7, %v571_v6  ;;  %v867_v0 = vpack.c.bf16 %v842_v13, %v841_v12  ;;  %v363_v3 = vld [vmem:[%s6698_s14 + $0xf8] sm:$0xff]  ;;  %v1119_v6 = vld [vmem:[%s6698_s14 + $0xeb] sm:$0xff] }
  0xfd   : > { %610 = vmatmul.bf16.gmra.mxu0 %v464_v4 }
  0xfe   : > { %v6891_v14 = vadd.f32 %v972_v34, %v733_v10  ;;  %771 = vmatmul.bf16.gmra.mxu1 %v386_v5  ;;  %v1116_v34 = vld [vmem:[%s6698_s14 + $0xd3] sm:$0xff]  ;;  %v1118_v5 = vld [vmem:[%s6698_s14 + $0xe3] sm:$0xff]  ;;  %v388_v10 = vpack.c.bf16 %v363_v3, %v362_v2 }
  0xff   : > { %1021 = vmatmul.bf16.gmra.mxu2 %v867_v0  ;;  %v1145_v44 = vpack.c.bf16 %v1117_v35, %v1116_v34  ;;  %v1146_v0 = vpack.c.bf16 %v1119_v6, %v1118_v5 }
 0x100   : > { %1282 = vmatmul.bf16.gmra.mxu3 %v1144_v9 }
 0x102   : > { %v573_v21 = vpop.f32.mrf.mxu0  ;;  %v982_v33 = vpop.f32.mrf.mxu2 }
 0x103   : > { %v1243_v17 = vpop.f32.mrf.mxu3  ;;  %v734_v22 = vpop.f32.mrf.mxu1 }
 0x104   : > { %v6894_v19 = vadd.f32 %v1243_v17, %v6857_v20  ;;  %v735_v24 = vadd.f32 %v734_v22, %v573_v21  ;;  %v845_v17 = vld [vmem:[%s6698_s14 + $0x112] sm:$0xff]  ;;  %v846_v21 = vld [vmem:[%s6698_s14 + $0x11a] sm:$0xff] }
 0x106   : > { %v6896_v25 = vadd.f32 %v974_v49, %v735_v24  ;;  %v844_v49 = vld [vmem:[%s6698_s14 + $0x10a] sm:$0xff] }
 0x107   : > { %v868_v53 = vpack.c.bf16 %v844_v49, %v843_v47 }
 0x10a   : > { %v576_v42 = vpop.f32.mrf.mxu0 }
 0x10b   : > { %v1245_v36 = vpop.f32.mrf.mxu3  ;;  %v737_v43 = vpop.f32.mrf.mxu1 }
 0x10c   : > { %v6905_v20 = vadd.f32 %v1245_v36, %v6861_v28  ;;  %v738_v45 = vadd.f32 %v737_v43, %v576_v42  ;;  %v984_v28 = vpop.f32.mrf.mxu2  ;;  %v443_v36 = vld [vmem:[%s6698_s14 + $0x109] sm:$0xff]  ;;  %v1120_v43 = vld [vmem:[%s6698_s14 + $0xf3] sm:$0xff] }
 0x10d   : > { %615 = vmatmul.bf16.gmra.mxu0 %v465_v39  ;;  %v364_v39 = vld [vmem:[%s6698_s14 + $0x100] sm:$0xff] }
 0x10e   : > { %v6912_v50 = vadd.f32 %v977_v63, %v738_v45  ;;  %776 = vmatmul.bf16.gmra.mxu1 %v387_v41  ;;  %v440_v63 = vld [vmem:[%s6698_s14 + $0xf1] sm:$0xff]  ;;  %v365_v41 = vld [vmem:[%s6698_s14 + $0x108] sm:$0xff] }
 0x10f   : > { %1026 = vmatmul.bf16.gmra.mxu2 %v868_v53  ;;  %v466_v9 = vpack.c.bf16 %v441_v1, %v440_v63  ;;  %v389_v47 = vpack.c.bf16 %v365_v41, %v364_v39 }
 0x110   : > { %1287 = vmatmul.bf16.gmra.mxu3 %v1145_v44  ;;  %v1121_v44 = vld [vmem:[%s6698_s14 + $0xfb] sm:$0xff] }
 0x111   : > { %v1147_v53 = vpack.c.bf16 %v1121_v44, %v1120_v43 }
 0x112   : > { %v578_v58 = vpop.f32.mrf.mxu0 }
 0x113   : > { %v1248_v54 = vpop.f32.mrf.mxu3  ;;  %v739_v59 = vpop.f32.mrf.mxu1 }
 0x114   : > { %v6918_v55 = vadd.f32 %v1248_v54, %v6873_v48  ;;  %v740_v61 = vadd.f32 %v739_v59, %v578_v58  ;;  %v987_v4 = vpop.f32.mrf.mxu2  ;;  %v847_v54 = vld [vmem:[%s6698_s14 + $0x122] sm:$0xff]  ;;  %v848_v58 = vld [vmem:[%s6698_s14 + $0x12a] sm:$0xff] }
 0x115   : > { %v870_v63 = vpack.c.bf16 %v848_v58, %v847_v54  ;;  %v1125_v54 = vld [vmem:[%s6698_s14 + $0x11b] sm:$0xff] }
 0x116   : > { %v6920_v62 = vadd.f32 %v979_v16, %v740_v61 }
 0x11a   : > { %v581_v12 = vpop.f32.mrf.mxu0 }
 0x11b   : > { %v1250_v7 = vpop.f32.mrf.mxu3  ;;  %v742_v13 = vpop.f32.mrf.mxu1 }
 0x11c   : > { %v6929_v48 = vadd.f32 %v1250_v7, %v6878_v56  ;;  %v743_v16 = vadd.f32 %v742_v13, %v581_v12  ;;  %v989_v24 = vpop.f32.mrf.mxu2  ;;  %v869_v56 = vpack.c.bf16 %v846_v21, %v845_v17  ;;  %v444_v7 = vld [vmem:[%s6698_s14 + $0x111] sm:$0xff] }
 0x11d   : > { %620 = vmatmul.bf16.gmra.mxu0 %v466_v9  ;;  %v6445_v9 = vld [vmem:[%s8850_s1 + $0x170] sm:$0xff]  ;;  %v367_v12 = vld [vmem:[%s6698_s14 + $0x118] sm:$0xff] }
 0x11e   : > { %v6933_v22 = vadd.f32 %v982_v33, %v743_v16  ;;  %781 = vmatmul.bf16.gmra.mxu1 %v388_v10  ;;  %v442_v33 = vld [vmem:[%s6698_s14 + $0x101] sm:$0xff]  ;;  %v445_v10 = vld [vmem:[%s6698_s14 + $0x119] sm:$0xff]  ;;  %v1123_v16 = vld [vmem:[%s6698_s14 + $0x10b] sm:$0xff] }
 0x11f   : > { %1031 = vmatmul.bf16.gmra.mxu2 %v869_v56  ;;  %v467_v46 = vpack.c.bf16 %v443_v36, %v442_v33  ;;  %1782 = vmatpush.bf16.msrb.mxu1 %v6445_v9  ;;  %v468_v21 = vpack.c.bf16 %v445_v10, %v444_v7  ;;  %v849_v33 = vld [vmem:[%s6698_s14 + $0x132] sm:$0xff]  ;;  %v850_v36 = vld [vmem:[%s6698_s14 + $0x13a] sm:$0xff]  ;;  %v851_v7 = vld [vmem:[%s6698_s14 + $0x142] sm:$0x1] }
 0x120   : > { %1292 = vmatmul.bf16.gmra.mxu3 %v1146_v0  ;;  %v1122_v0 = vld [vmem:[%s6698_s14 + $0x103] sm:$0xff] }
 0x122   : > { %v583_v30 = vpop.f32.mrf.mxu0 }
 0x123   : > { %v1253_v27 = vpop.f32.mrf.mxu3  ;;  %v744_v31 = vpop.f32.mrf.mxu1 }
 0x124   : > { %v6936_v29 = vadd.f32 %v1253_v27, %v6891_v14  ;;  %v745_v34 = vadd.f32 %v744_v31, %v583_v30  ;;  %v992_v42 = vpop.f32.mrf.mxu2  ;;  %v1148_v31 = vpack.c.bf16 %v1123_v16, %v1122_v0 }
 0x126   : > { %v6938_v35 = vadd.f32 %v984_v28, %v745_v34 }
 0x12a   : > { %v586_v49 = vpop.f32.mrf.mxu0 }
 0x12b   : > { %v1255_v45 = vpop.f32.mrf.mxu3  ;;  %v747_v51 = vpop.f32.mrf.mxu1 }
 0x12c   : > { %v6947_v14 = vadd.f32 %v1255_v45, %v6896_v25  ;;  %v748_v28 = vadd.f32 %v747_v51, %v586_v49  ;;  %v6953_v61 = vpop.f32.mrf.mxu2  ;;  %v447_v49 = vld [vmem:[%s6698_s14 + $0x129] sm:$0xff] }
 0x12d   : > { %625 = vmatmul.bf16.gmra.mxu0 %v467_v46  ;;  %v369_v51 = vld [vmem:[%s6698_s14 + $0x128] sm:$0xff] }
 0x12e   : > { %v6951_v59 = vadd.f32 %v987_v4, %v748_v28  ;;  %786 = vmatmul.bf16.gmra.mxu1 %v389_v47  ;;  %v6453_v4 = vld [vmem:[%s8850_s1 + $0x1b0] sm:$0xff]  ;;  %v446_v47 = vld [vmem:[%s6698_s14 + $0x121] sm:$0xff] }
 0x12f   : > { %1036 = vmatmul.bf16.gmra.mxu2 %v870_v63  ;;  %v1124_v28 = vld [vmem:[%s6698_s14 + $0x113] sm:$0xff]  ;;  %v469_v63 = vpack.c.bf16 %v447_v49, %v446_v47  ;;  %v6444_v47 = vld [vmem:[%s8850_s1 + $0x168] sm:$0xff] }
 0x130   : > { %1297 = vmatmul.bf16.gmra.mxu3 %v1147_v53  ;;  %2063 = vmatpush.bf16.msrb.mxu2 %v6453_v4  ;;  %v1149_v4 = vpack.c.bf16 %v1125_v54, %v1124_v28  ;;  %v6437_v28 = vld [vmem:[%s8850_s1 + $0x130] sm:$0xff] }
 0x131   : > { %1783 = vmatpush.bf16.msrb.mxu1 %v6444_v47  ;;  %v6461_v54 = vld [vmem:[%s8850_s1 + $0x1f0] sm:$0xff]  ;;  %v6458_v47 = vld [vmem:[%s8850_s1 + $0x1d8] sm:$0xff] }
 0x132   : > { %v588_v2 = vpop.f32.mrf.mxu0 }
 0x133   : > { %v1258_v25 = vpop.f32.mrf.mxu3  ;;  %v749_v3 = vpop.f32.mrf.mxu1 }
 0x134   : > { %v6956_v1 = vadd.f32 %v1258_v25, %v6912_v50  ;;  %v750_v5 = vadd.f32 %v749_v3, %v588_v2  ;;  %v366_v50 = vld [vmem:[%s6698_s14 + $0x110] sm:$0xff]  ;;  %v997_v13 = vpop.f32.mrf.mxu2 }
 0x135   : > { %v390_v56 = vpack.c.bf16 %v367_v12, %v366_v50  ;;  %v872_v50 = vpack.c.bf16 %v851_v7, %v851_v7 }
 0x136   : > { %v6961_v6 = vadd.f32 %v989_v24, %v750_v5 }
 0x13a   : > { %v591_v27 = vpop.f32.mrf.mxu0 }
 0x13b   : > { %v1260_v17 = vpop.f32.mrf.mxu3  ;;  %v752_v30 = vpop.f32.mrf.mxu1 }
 0x13c   : > { %v6973_v24 = vadd.f32 %v1260_v17, %v6920_v62  ;;  %v753_v34 = vadd.f32 %v752_v30, %v591_v27  ;;  %v6979_v41 = vpop.f32.mrf.mxu2  ;;  %v871_v62 = vpack.c.bf16 %v850_v36, %v849_v33  ;;  %v448_v17 = vld [vmem:[%s6698_s14 + $0x131] sm:$0xff]  ;;  %v1126_v27 = vld [vmem:[%s6698_s14 + $0x123] sm:$0xff] }
 0x13d   : > { %630 = vmatmul.bf16.gmra.mxu0 %v468_v21  ;;  %v449_v21 = vld [vmem:[%s6698_s14 + $0x139] sm:$0xff]  ;;  %v1127_v30 = vld [vmem:[%s6698_s14 + $0x12b] sm:$0xff] }
 0x13e   : > { %v6977_v39 = vadd.f32 %v992_v42, %v753_v34  ;;  %791 = vmatmul.bf16.gmra.mxu1 %v390_v56  ;;  %v368_v42 = vld [vmem:[%s6698_s14 + $0x120] sm:$0xff]  ;;  %v470_v34 = vpack.c.bf16 %v449_v21, %v448_v17 }
 0x13f   : > { %1041 = vmatmul.bf16.gmra.mxu2 %v871_v62  ;;  %v391_v25 = vpack.c.bf16 %v369_v51, %v368_v42  ;;  %v1150_v62 = vpack.c.bf16 %v1127_v30, %v1126_v27  ;;  %v6438_v42 = vld [vmem:[%s8850_s1 + $0x138] sm:$0xff]  ;;  %v6435_v17 = vld [vmem:[%s8850_s1 + $0x120] sm:$0xff] }
 0x140   : > { %1302 = vmatmul.bf16.gmra.mxu3 %v1148_v31  ;;  %1500 = vmatpush.bf16.msra.mxu0 %v6438_v42  ;;  %v6459_v21 = vld [vmem:[%s8850_s1 + $0x1e0] sm:$0xff] }
 0x142   : > { %v593_v45 = vpop.f32.mrf.mxu0 }
 0x143   : > { %v1263_v43 = vpop.f32.mrf.mxu3  ;;  %v754_v46 = vpop.f32.mrf.mxu1 }
 0x144   : > { %v6982_v44 = vadd.f32 %v1263_v43, %v6933_v22  ;;  %v1002_v53 = vpop.f32.mrf.mxu2  ;;  %1501 = vmatpush.bf16.msra.mxu0 %v6437_v28  ;;  %v6433_v28 = vld [vmem:[%s8850_s1 + $0x110] sm:$0xff] }
 0x14a   : > { %v596_v3 = vpop.f32.mrf.mxu0 }
 0x14b   : > { %v1265_v58 = vpop.f32.mrf.mxu3  ;;  %v757_v22 = vpop.f32.mrf.mxu1 }
 0x14c   : > { %v6991_v2 = vadd.f32 %v1265_v58, %v6938_v35  ;;  %v758_v5 = vadd.f32 %v757_v22, %v596_v3  ;;  %v6996_v10 = vpop.f32.mrf.mxu2  ;;  %v755_v3 = vadd.f32 %v754_v46, %v593_v45  ;;  %v6436_v22 = vld [vmem:[%s8850_s1 + $0x128] sm:$0xff] }
 0x14d   : > { %635 = vmatmul.bf16.gmra.mxu0 %v469_v63 }
 0x14e   : > { %v6994_v9 = vadd.f32 %v997_v13, %v758_v5  ;;  %796 = vmatmul.bf16.gmra.mxu1 %v391_v25  ;;  %v6452_v13 = vld [vmem:[%s8850_s1 + $0x1a8] sm:$0xff]  ;;  %v450_v5 = vld [vmem:[%s6698_s14 + $0x141] sm:$0x1]  ;;  %1502 = vmatpush.bf16.msra.mxu0 %v6436_v22  ;;  %v1070_v45 = vadd.f32 %v6953_v61, %v755_v3 }
 0x14f   : > { %1046 = vmatmul.bf16.gmra.mxu2 %v872_v50  ;;  %v1129_v50 = vld [vmem:[%s6698_s14 + $0x13b] sm:$0xff] }
 0x150   : > { %1307 = vmatmul.bf16.gmra.mxu3 %v1149_v4  ;;  %2064 = vmatpush.bf16.msrb.mxu2 %v6452_v13  ;;  %v6460_v4 = vld [vmem:[%s8850_s1 + $0x1e8] sm:$0xff]  ;;  %v471_v13 = vpack.c.bf16 %v450_v5, %v450_v5  ;;  %v6443_v61 = vld [vmem:[%s8850_s1 + $0x160] sm:$0xff]  ;;  %v6441_v5 = vld [vmem:[%s8850_s1 + $0x150] sm:$0xff] }
 0x151   : > { %1784 = vmatpush.bf16.msrb.mxu1 %v6443_v61  ;;  %v6455_v61 = vld [vmem:[%s8850_s1 + $0x1c0] sm:$0xff] }
 0x152   : > { %v7001_v0 = vpop.f32.mrf.mxu0  ;;  %1503 = vmatpush.bf16.msra.mxu0 %v6435_v17 }
 0x153   : > { %v1268_v12 = vpop.f32.mrf.mxu3  ;;  %v7003_v16 = vpop.f32.mrf.mxu1 }
 0x154   : > { %v6999_v35 = vadd.f32 %v1268_v12, %v6951_v59  ;;  %v1007_v56 = vpop.f32.mrf.mxu2  ;;  %v6451_v12 = vld [vmem:[%s8850_s1 + $0x1a0] sm:$0xff] }
 0x155   : > { %2065 = vmatpush.bf16.msrb.mxu2 %v6451_v12  ;;  %v6456_v12 = vld [vmem:[%s8850_s1 + $0x1c8] sm:$0xff] }
 0x15a   : > { %v601_v33 = vpop.f32.mrf.mxu0 }
 0x15b   : > { %v1270_v31 = vpop.f32.mrf.mxu3  ;;  %v762_v36 = vpop.f32.mrf.mxu1 }
 0x15c   : > { %v7013_v59 = vadd.f32 %v1270_v31, %v6961_v6  ;;  %v763_v43 = vadd.f32 %v762_v36, %v601_v33  ;;  %v6462_v6 = vld [vmem:[%s8850_s1 + $0x1f8] sm:$0xff]  ;;  %v7026_v51 = vpop.f32.mrf.mxu2 }
 0x15d   : > { %640 = vmatmul.bf16.gmra.mxu0 %v470_v34  ;;  %2343 = vmatpush.bf16.msra.mxu3 %v6462_v6  ;;  %v6450_v36 = vld [vmem:[%s8850_s1 + $0x198] sm:$0xff]  ;;  %v6449_v6 = vld [vmem:[%s8850_s1 + $0x190] sm:$0xff] }
 0x15e   : > { %v7018_v49 = vadd.f32 %v1002_v53, %v763_v43  ;;  %v6434_v43 = vld [vmem:[%s8850_s1 + $0x118] sm:$0xff]  ;;  %2066 = vmatpush.bf16.msrb.mxu2 %v6450_v36  ;;  %v1935_v36 = vld [vmem:[%s6698_s14 + $0x26] sm:$0xff] }
 0x15f   : > { %1504 = vmatpush.bf16.msra.mxu0 %v6434_v43 }
 0x160   : > { %1312 = vmatmul.bf16.gmra.mxu3 %v1150_v62 }
 0x161   : > { %2344 = vmatpush.bf16.msra.mxu3 %v6461_v54  ;;  %v6457_v54 = vld [vmem:[%s8850_s1 + $0x1d0] sm:$0xff] }
 0x162   : > { %v7037_v63 = vpop.f32.mrf.mxu0  ;;  %2067 = vmatpush.bf16.msrb.mxu2 %v6449_v6 }
 0x163   : > { %v1273_v53 = vpop.f32.mrf.mxu3  ;;  %v7039_v25 = vpop.f32.mrf.mxu1  ;;  %1505 = vmatpush.bf16.msra.mxu0 %v6433_v28 }
 0x164   : > { %v7035_v58 = vadd.f32 %v1273_v53, %v6977_v39  ;;  %v7048_v7 = vpop.f32.mrf.mxu2  ;;  %v1128_v39 = vld [vmem:[%s6698_s14 + $0x133] sm:$0xff] }
 0x165   : > { %2345 = vmatpush.bf16.msra.mxu3 %v6460_v4  ;;  %v1151_v34 = vpack.c.bf16 %v1129_v50, %v1128_v39  ;;  %v6448_v39 = vld [vmem:[%s8850_s1 + $0x188] sm:$0xff] }
 0x166   : > { %v6432_v50 = vld [vmem:[%s8850_s1 + $0x108] sm:$0xff]  ;;  %2068 = vmatpush.bf16.msrb.mxu2 %v6448_v39  ;;  %v1654_v39 = vld [vmem:[%s6698_s14 + $0x15] sm:$0xff] }
 0x167   : > { %1506 = vmatpush.bf16.msra.mxu0 %v6432_v50 }
 0x169   : > { %2346 = vmatpush.bf16.msra.mxu3 %v6459_v21  ;;  %v1131_v21 = vld [vmem:[%s6698_s14 + $0x14b] sm:$0xff] }
 0x16a   : > { %v606_v30 = vpop.f32.mrf.mxu0 }
 0x16b   : > { %v1275_v46 = vpop.f32.mrf.mxu3  ;;  %v767_v31 = vpop.f32.mrf.mxu1 }
 0x16c   : > { %v7062_v27 = vadd.f32 %v1275_v46, %v1070_v45  ;;  %v768_v33 = vadd.f32 %v767_v31, %v606_v30  ;;  %v7078_v42 = vpop.f32.mrf.mxu2  ;;  %v811_v45 = vld [vmem:[%s6698_s14 + $0x2] sm:$0xff]  ;;  %v812_v46 = vld [vmem:[%s6698_s14 + $0xa] sm:$0xff] }
 0x16d   : > { %645 = vmatmul.bf16.gmra.mxu0 %v471_v13  ;;  %2347 = vmatpush.bf16.msra.mxu3 %v6458_v47  ;;  %v1130_v13 = vld [vmem:[%s6698_s14 + $0x143] sm:$0xff] }
 0x16e   : > { %v7070_v62 = vadd.f32 %v1007_v56, %v768_v33  ;;  %v6442_v56 = vld [vmem:[%s8850_s1 + $0x158] sm:$0xff]  ;;  %v6431_v33 = vld [vmem:[%s8850_s1 + $0x100] sm:$0xff]  ;;  %v1152_v6 = vpack.c.bf16 %v1131_v21, %v1130_v13 }
 0x16f   : > { %1785 = vmatpush.bf16.msrb.mxu1 %v6442_v56  ;;  %1507 = vmatpush.bf16.msra.mxu0 %v6431_v33 }
 0x170   : > { %1317 = vmatmul.bf16.gmra.mxu3 %v1151_v34  ;;  %v852_v34 = vpack.c.bf16 %v812_v46, %v811_v45 }
 0x171   : > { %2348 = vmatpush.bf16.msra.mxu3 %v6457_v54  ;;  %v6439_v54 = vld [vmem:[%s8850_s1 + $0x140] sm:$0xff] }
 0x172   : > { %v7095_v22 = vpop.f32.mrf.mxu0 }
 0x173   : > { %v1278_v53 = vpop.f32.mrf.mxu3  ;;  %v7097_v4 = vpop.f32.mrf.mxu1  ;;  %1786 = vmatpush.bf16.msrb.mxu1 %v6441_v5 }
 0x174   : > { %v7093_v3 = vadd.f32 %v1278_v53, %v6994_v9  ;;  %v760_v9 = vadd.f32 %v7003_v16, %v7001_v0  ;;  %v1017_v17 = vpop.f32.mrf.mxu2  ;;  %v6440_v0 = vld [vmem:[%s8850_s1 + $0x148] sm:$0xff]  ;;  %v6447_v16 = vld [vmem:[%s8850_s1 + $0x180] sm:$0xff] }
 0x175   : > { %2349 = vmatpush.bf16.msra.mxu3 %v6456_v12  ;;  %2069 = vmatpush.bf16.msrb.mxu2 %v6447_v16  ;;  %v6470_v12 = vld [vmem:[%s8850_s1 + $0x238] sm:$0xff] }
 0x176   : > { %v1072_v30 = vadd.f32 %v6979_v41, %v760_v9  ;;  %v1936_v41 = vld [vmem:[%s6698_s14 + $0x2e] sm:$0xff]  ;;  %v1655_v9 = vld [vmem:[%s6698_s14 + $0x1d] sm:$0xff] }
 0x177   : > { %1787 = vmatpush.bf16.msrb.mxu1 %v6440_v0  ;;  %v1976_v28 = vpack.c.bf16 %v1936_v41, %v1935_v36  ;;  %v1695_v45 = vpack.c.bf16 %v1655_v9, %v1654_v39  ;;  %v765_v0 = vadd.f32 %v7039_v25, %v7037_v63  ;;  %v813_v16 = vld [vmem:[%s6698_s14 + $0x12] sm:$0xff] }
 0x179   : > { %2350 = vmatpush.bf16.msra.mxu3 %v6455_v61  ;;  %2070 = vmatmul.bf16.vlgmr.msrb.gmra.mxu2 %v1976_v28  ;;  %v1074_v33 = vadd.f32 %v6996_v10, %v765_v0  ;;  %v1656_v10 = vld [vmem:[%s6698_s14 + $0x25] sm:$0xff]  ;;  %v770_v0 = vadd.f32 %v7097_v4, %v7095_v22 }
 0x17a   : > { %v611_v47 = vpop.f32.mrf.mxu0 }
 0x17b   : > { %v1280_v31 = vpop.f32.mrf.mxu3  ;;  %v772_v56 = vpop.f32.mrf.mxu1  ;;  %1788 = vmatpush.bf16.msrb.mxu1 %v6439_v54  ;;  %v1657_v54 = vld [vmem:[%s6698_s14 + $0x2d] sm:$0xff] }
 0x17c   : > { %v7131_v43 = vadd.f32 %v1280_v31, %v1072_v30  ;;  %v773_v53 = vadd.f32 %v772_v56, %v611_v47  ;;  %v7142_v50 = vpop.f32.mrf.mxu2  ;;  %v814_v30 = vld [vmem:[%s6698_s14 + $0x1a] sm:$0xff]  ;;  %v1696_v9 = vpack.c.bf16 %v1657_v54, %v1656_v10 }
 0x17d   : > { %946 = vmatmul.bf16.vlgmr.msrb.gmra.mxu0 %v852_v34  ;;  %v1132_v34 = vld [vmem:[%s6698_s14 + $0x153] sm:$0x1]  ;;  %v853_v36 = vpack.c.bf16 %v814_v30, %v813_v16  ;;  %v1937_v47 = vld [vmem:[%s6698_s14 + $0x36] sm:$0xff]  ;;  %v1938_v56 = vld [vmem:[%s6698_s14 + $0x3e] sm:$0xff] }
 0x17e   : > { %v7138_v5 = vadd.f32 %v7048_v7, %v773_v53  ;;  %2624 = vmatpush.bf16.msrb.mxu0 %v6470_v12  ;;  %1789 = vmatmul.bf16.vlgmr.msrb.gmra.mxu1 %v1695_v45  ;;  %v1153_v53 = vpack.c.bf16 %v1132_v34, %v1132_v34  ;;  %v1977_v28 = vpack.c.bf16 %v1938_v56, %v1937_v47  ;;  %v1373_v16 = vld [vmem:[%s6698_s14 + $0x14] sm:$0xff]  ;;  %v1374_v30 = vld [vmem:[%s6698_s14 + $0x1c] sm:$0xff] }
 0x17f   : > { %v1414_v56 = vpack.c.bf16 %v1374_v30, %v1373_v16  ;;  %v1658_v54 = vld [vmem:[%s6698_s14 + $0x35] sm:$0xff] }
 0x180   : > { %1322 = vmatmul.bf16.gmra.mxu3 %v1152_v6 }
 0x182   : > { %v613_v13 = vpop.f32.mrf.mxu0 }
 0x183   : > { %v1283_v7 = vpop.f32.mrf.mxu3  ;;  %v774_v21 = vpop.f32.mrf.mxu1 }
 0x184   : > { %v7148_v46 = vadd.f32 %v1283_v7, %v7018_v49  ;;  %v1022_v31 = vpop.f32.mrf.mxu2 }
 0x189   : > { %2075 = vmatmul.bf16.gmra.mxu2 %v1977_v28 }
 0x18a   : > { %v616_v49 = vpop.f32.mrf.mxu0 }
 0x18b   : > { %v1285_v61 = vpop.f32.mrf.mxu3  ;;  %v777_v41 = vpop.f32.mrf.mxu1 }
 0x18c   : > { %v7158_v6 = vadd.f32 %v1285_v61, %v1074_v33  ;;  %v778_v63 = vadd.f32 %v777_v41, %v616_v49  ;;  %v7164_v39 = vpop.f32.mrf.mxu2  ;;  %v2216_v33 = vld [vmem:[%s6698_s14 + $0x27] sm:$0xff]  ;;  %v2217_v61 = vld [vmem:[%s6698_s14 + $0x2f] sm:$0xff] }
 0x18d   : > { %951 = vmatmul.bf16.gmra.mxu0 %v853_v36  ;;  %v1076_v36 = vadd.f32 %v7026_v51, %v770_v0  ;;  %v1940_v49 = vld [vmem:[%s6698_s14 + $0x4e] sm:$0xff]  ;;  %v1659_v51 = vld [vmem:[%s6698_s14 + $0x3d] sm:$0xff] }
 0x18e   : > { %v7160_v25 = vadd.f32 %v1017_v17, %v778_v63  ;;  %1794 = vmatmul.bf16.gmra.mxu1 %v1696_v9  ;;  %v2257_v63 = vpack.c.bf16 %v2217_v61, %v2216_v33  ;;  %v775_v33 = vadd.f32 %v774_v21, %v613_v13  ;;  %v6469_v61 = vld [vmem:[%s8850_s1 + $0x230] sm:$0xff] }
 0x18f   : > { %2625 = vmatpush.bf16.msrb.mxu0 %v6469_v61 }
 0x190   : > { %1327 = vmatmul.bf16.gmra.mxu3 %v1153_v53 }
 0x192   : > { %v7169_v7 = vpop.f32.mrf.mxu0 }
 0x193   : > { %v1288_v12 = vpop.f32.mrf.mxu3  ;;  %v7171_v17 = vpop.f32.mrf.mxu1 }
 0x194   : > { %v7167_v45 = vadd.f32 %v1288_v12, %v7070_v62  ;;  %v1027_v34 = vpop.f32.mrf.mxu2  ;;  %v1939_v62 = vld [vmem:[%s6698_s14 + $0x46] sm:$0xff]  ;;  %v1697_v12 = vpack.c.bf16 %v1659_v51, %v1658_v54 }
 0x195   : > { %v1978_v10 = vpack.c.bf16 %v1940_v49, %v1939_v62  ;;  %v2218_v62 = vld [vmem:[%s6698_s14 + $0x37] sm:$0xff]  ;;  %v2219_v49 = vld [vmem:[%s6698_s14 + $0x3f] sm:$0xff] }
 0x196   : > { %v2258_v54 = vpack.c.bf16 %v2219_v49, %v2218_v62 }
 0x199   : > { %2080 = vmatmul.bf16.gmra.mxu2 %v1978_v10  ;;  %v1942_v10 = vld [vmem:[%s6698_s14 + $0x5e] sm:$0xff] }
 0x19a   : > { %v621_v53 = vpop.f32.mrf.mxu0 }
 0x19b   : > { %v1290_v47 = vpop.f32.mrf.mxu3  ;;  %v782_v28 = vpop.f32.mrf.mxu1 }
 0x19c   : > { %v7182_v41 = vadd.f32 %v1290_v47, %v1076_v36  ;;  %v783_v22 = vadd.f32 %v782_v28, %v621_v53  ;;  %v7188_v9 = vpop.f32.mrf.mxu2  ;;  %v1375_v36 = vld [vmem:[%s6698_s14 + $0x24] sm:$0xff]  ;;  %v1376_v47 = vld [vmem:[%s6698_s14 + $0x2c] sm:$0xff] }
 0x19d   : > { %1508 = vmatmul.bf16.vlgmr.msra.gmra.mxu0 %v1414_v56  ;;  %v1415_v28 = vpack.c.bf16 %v1376_v47, %v1375_v36 }
 0x19e   : > { %v7184_v4 = vadd.f32 %v1022_v31, %v783_v22  ;;  %1799 = vmatmul.bf16.gmra.mxu1 %v1697_v12 }
 0x1a0   : > { %2351 = vmatmul.bf16.vlgmr.msra.gmra.mxu3 %v2257_v63  ;;  %v1941_v63 = vld [vmem:[%s6698_s14 + $0x56] sm:$0xff] }
 0x1a1   : > { %v1979_v51 = vpack.c.bf16 %v1942_v10, %v1941_v63  ;;  %v2220_v10 = vld [vmem:[%s6698_s14 + $0x47] sm:$0xff] }
 0x1a2   : > { %v7193_v31 = vpop.f32.mrf.mxu0 }
 0x1a3   : > { %v1293_v0 = vpop.f32.mrf.mxu3  ;;  %v7195_v30 = vpop.f32.mrf.mxu1 }
 0x1a4   : > { %v7191_v16 = vadd.f32 %v1293_v0, %v7138_v5  ;;  %v1032_v56 = vpop.f32.mrf.mxu2  ;;  %v1078_v5 = vadd.f32 %v7078_v42, %v775_v33  ;;  %v1660_v42 = vld [vmem:[%s6698_s14 + $0x45] sm:$0xff]  ;;  %v1661_v33 = vld [vmem:[%s6698_s14 + $0x4d] sm:$0xff] }
 0x1a5   : > { %v1698_v36 = vpack.c.bf16 %v1661_v33, %v1660_v42  ;;  %v1944_v42 = vld [vmem:[%s6698_s14 + $0x6e] sm:$0xff] }
 0x1a9   : > { %2085 = vmatmul.bf16.gmra.mxu2 %v1979_v51 }
 0x1aa   : > { %v626_v13 = vpop.f32.mrf.mxu0 }
 0x1ab   : > { %v1295_v53 = vpop.f32.mrf.mxu3  ;;  %v787_v21 = vpop.f32.mrf.mxu1 }
 0x1ac   : > { %v7207_v22 = vadd.f32 %v1295_v53, %v1078_v5  ;;  %v788_v12 = vadd.f32 %v787_v21, %v626_v13  ;;  %v7213_v61 = vpop.f32.mrf.mxu2  ;;  %v780_v5 = vadd.f32 %v7171_v17, %v7169_v7  ;;  %v1377_v53 = vld [vmem:[%s6698_s14 + $0x34] sm:$0xff] }
 0x1ad   : > { %1513 = vmatmul.bf16.gmra.mxu0 %v1415_v28  ;;  %v1378_v28 = vld [vmem:[%s6698_s14 + $0x3c] sm:$0xff]  ;;  %v2221_v13 = vld [vmem:[%s6698_s14 + $0x4f] sm:$0xff] }
 0x1ae   : > { %8876 = vst [vmem:[#allocation6_spill] sm:$0xff] %v7207_v22  ;;  %v7209_v0 = vadd.f32 %v1027_v34, %v788_v12  ;;  %1804 = vmatmul.bf16.gmra.mxu1 %v1698_v36  ;;  %v1080_v21 = vadd.f32 %v7142_v50, %v780_v5  ;;  %v1416_v51 = vpack.c.bf16 %v1378_v28, %v1377_v53  ;;  %v1943_v12 = vld [vmem:[%s6698_s14 + $0x66] sm:$0xff]  ;;  %v1662_v50 = vld [vmem:[%s6698_s14 + $0x55] sm:$0xff]  ;;  %v1663_v5 = vld [vmem:[%s6698_s14 + $0x5d] sm:$0xff] }
 0x1af   : > { %v1699_v28 = vpack.c.bf16 %v1663_v5, %v1662_v50  ;;  %v1945_v50 = vld [vmem:[%s6698_s14 + $0x76] sm:$0xff]  ;;  %v1946_v5 = vld [vmem:[%s6698_s14 + $0x7e] sm:$0xff] }
 0x1b0   : > { %2356 = vmatmul.bf16.gmra.mxu3 %v2258_v54  ;;  %v1664_v22 = vld [vmem:[%s6698_s14 + $0x65] sm:$0xff] }
 0x1b2   : > { %v628_v49 = vpop.f32.mrf.mxu0 }
 0x1b3   : > { %v1298_v47 = vpop.f32.mrf.mxu3  ;;  %v789_v34 = vpop.f32.mrf.mxu1 }
 0x1b4   : > { %v7216_v62 = vadd.f32 %v1298_v47, %v7160_v25  ;;  %v1037_v63 = vpop.f32.mrf.mxu2  ;;  %v2259_v47 = vpack.c.bf16 %v2221_v13, %v2220_v10 }
 0x1b6   : > { %8877 = vst [vmem:[#allocation7_spill] sm:$0xff] %v7216_v62  ;;  %v1980_v62 = vpack.c.bf16 %v1944_v42, %v1943_v12  ;;  %v2222_v42 = vld [vmem:[%s6698_s14 + $0x57] sm:$0xff] }
 0x1b9   : > { %2090 = vmatmul.bf16.gmra.mxu2 %v1980_v62  ;;  %v1379_v62 = vld [vmem:[%s6698_s14 + $0x44] sm:$0xff] }
 0x1ba   : > { %v631_v33 = vpop.f32.mrf.mxu0 }
 0x1bb   : > { %v1300_v54 = vpop.f32.mrf.mxu3  ;;  %v792_v36 = vpop.f32.mrf.mxu1 }
 0x1bc   : > { %v7227_v25 = vadd.f32 %v1300_v54, %v1080_v21  ;;  %v793_v7 = vadd.f32 %v792_v36, %v631_v33  ;;  %v7233_v53 = vpop.f32.mrf.mxu2  ;;  %v785_v54 = vadd.f32 %v7195_v30, %v7193_v31  ;;  %v2223_v33 = vld [vmem:[%s6698_s14 + $0x5f] sm:$0xff] }
 0x1bd   : > { %1518 = vmatmul.bf16.gmra.mxu0 %v1416_v51  ;;  %v1380_v51 = vld [vmem:[%s6698_s14 + $0x4c] sm:$0xff] }
 0x1be   : > { %8878 = vst [vmem:[#allocation8_spill] sm:$0xff] %v7227_v25  ;;  %v7229_v17 = vadd.f32 %v1032_v56, %v793_v7  ;;  %1809 = vmatmul.bf16.gmra.mxu1 %v1699_v28  ;;  %v1082_v36 = vadd.f32 %v7164_v39, %v785_v54  ;;  %v1417_v7 = vpack.c.bf16 %v1380_v51, %v1379_v62  ;;  %v1665_v39 = vld [vmem:[%s6698_s14 + $0x6d] sm:$0xff] }
 0x1bf   : > { %v1981_v25 = vpack.c.bf16 %v1946_v5, %v1945_v50  ;;  %v1700_v62 = vpack.c.bf16 %v1665_v39, %v1664_v22  ;;  %v2225_v22 = vld [vmem:[%s6698_s14 + $0x6f] sm:$0xff] }
 0x1c0   : > { %2361 = vmatmul.bf16.gmra.mxu3 %v2259_v47 }
 0x1c2   : > { %v633_v13 = vpop.f32.mrf.mxu0 }
 0x1c3   : > { %v1303_v21 = vpop.f32.mrf.mxu3  ;;  %v794_v56 = vpop.f32.mrf.mxu1 }
 0x1c4   : > { %v7236_v10 = vadd.f32 %v1303_v21, %v7184_v4  ;;  %v1042_v12 = vpop.f32.mrf.mxu2 }
 0x1c6   : > { %8879 = vst [vmem:[#allocation9_spill] sm:$0xff] %v7236_v10  ;;  %v2260_v10 = vpack.c.bf16 %v2223_v33, %v2222_v42  ;;  %v790_v33 = vadd.f32 %v789_v34, %v628_v49 }
 0x1c8   : > { %v1084_v50 = vadd.f32 %v7188_v9, %v790_v33  ;;  %v1666_v9 = vld [vmem:[%s6698_s14 + $0x75] sm:$0xff] }
 0x1c9   : > { %2095 = vmatmul.bf16.gmra.mxu2 %v1981_v25  ;;  %v6468_v25 = vld [vmem:[%s8850_s1 + $0x228] sm:$0xff] }
 0x1ca   : > { %v636_v28 = vpop.f32.mrf.mxu0  ;;  %2626 = vmatpush.bf16.msrb.mxu0 %v6468_v25  ;;  %v1667_v25 = vld [vmem:[%s6698_s14 + $0x7d] sm:$0xff] }
 0x1cb   : > { %v1305_v47 = vpop.f32.mrf.mxu3  ;;  %v797_v21 = vpop.f32.mrf.mxu1  ;;  %v1701_v33 = vpack.c.bf16 %v1667_v25, %v1666_v9 }
 0x1cc   : > { %v7247_v4 = vadd.f32 %v1305_v47, %v1082_v36  ;;  %v798_v31 = vadd.f32 %v797_v21, %v636_v28  ;;  %v7253_v54 = vpop.f32.mrf.mxu2  ;;  %v1381_v36 = vld [vmem:[%s6698_s14 + $0x54] sm:$0xff]  ;;  %v1382_v47 = vld [vmem:[%s6698_s14 + $0x5c] sm:$0xff] }
 0x1cd   : > { %1523 = vmatmul.bf16.gmra.mxu0 %v1417_v7  ;;  %v2224_v7 = vld [vmem:[%s6698_s14 + $0x67] sm:$0xff]  ;;  %v1418_v28 = vpack.c.bf16 %v1382_v47, %v1381_v36 }
 0x1ce   : > { %v7249_v30 = vadd.f32 %v1037_v63, %v798_v31  ;;  %1814 = vmatmul.bf16.gmra.mxu1 %v1700_v62  ;;  %v1948_v21 = vld [vmem:[%s6698_s14 + $0x8e] sm:$0xff]  ;;  %v2261_v62 = vpack.c.bf16 %v2225_v22, %v2224_v7 }
 0x1d0   : > { %2366 = vmatmul.bf16.gmra.mxu3 %v2260_v10 }
 0x1d2   : > { %v638_v63 = vpop.f32.mrf.mxu0 }
 0x1d3   : > { %v1308_v51 = vpop.f32.mrf.mxu3 }
 0x1d4   : > { %v7256_v42 = vadd.f32 %v1308_v51, %v7209_v0  ;;  %v1047_v10 = vpop.f32.mrf.mxu2  ;;  %v1947_v0 = vld [vmem:[%s6698_s14 + $0x86] sm:$0xff] }
 0x1d5   : > { %v1982_v49 = vpack.c.bf16 %v1948_v21, %v1947_v0 }
 0x1d9   : > { %2100 = vmatmul.bf16.gmra.mxu2 %v1982_v49  ;;  %v1950_v49 = vld [vmem:[%s6698_s14 + $0x9e] sm:$0xff] }
 0x1da   : > { %v641_v39 = vpop.f32.mrf.mxu0 }
 0x1db   : > { %v1310_v5 = vpop.f32.mrf.mxu3  ;;  %v803_v34 = vadd.f32 %v6813_v15, %v641_v39  ;;  %v795_v15 = vadd.f32 %v794_v56, %v633_v13 }
 0x1dc   : > { %v7268_v31 = vadd.f32 %v1310_v5, %v1084_v50  ;;  %v1049_v36 = vpop.f32.mrf.mxu2  ;;  %v1383_v50 = vld [vmem:[%s6698_s14 + $0x64] sm:$0xff]  ;;  %v2226_v5 = vld [vmem:[%s6698_s14 + $0x77] sm:$0xff] }
 0x1dd   : > { %v7271_v51 = vadd.f32 %v1042_v12, %v803_v34  ;;  %1528 = vmatmul.bf16.gmra.mxu0 %v1418_v28  ;;  %v1384_v12 = vld [vmem:[%s6698_s14 + $0x6c] sm:$0xff]  ;;  %v2227_v28 = vld [vmem:[%s6698_s14 + $0x7f] sm:$0xff]  ;;  %v1086_v0 = vadd.f32 %v7213_v61, %v795_v15 }
 0x1de   : > { %1819 = vmatmul.bf16.gmra.mxu1 %v1701_v33  ;;  %v1419_v39 = vpack.c.bf16 %v1384_v12, %v1383_v50  ;;  %v2262_v25 = vpack.c.bf16 %v2227_v28, %v2226_v5  ;;  %v1668_v61 = vld [vmem:[%s6698_s14 + $0x85] sm:$0xff]  ;;  %v1669_v33 = vld [vmem:[%s6698_s14 + $0x8d] sm:$0xff] }
 0x1df   : > { %v1702_v36 = vpack.c.bf16 %v1669_v33, %v1668_v61  ;;  %v1385_v5 = vld [vmem:[%s6698_s14 + $0x74] sm:$0xff]  ;;  %v2228_v28 = vld [vmem:[%s6698_s14 + $0x87] sm:$0xff]  ;;  %v1671_v33 = vld [vmem:[%s6698_s14 + $0x9d] sm:$0xff] }
 0x1e0   : > { %2371 = vmatmul.bf16.gmra.mxu3 %v2261_v62  ;;  %v1949_v62 = vld [vmem:[%s6698_s14 + $0x96] sm:$0xff] }
 0x1e2   : > { %v643_v22 = vpop.f32.mrf.mxu0 }
 0x1e3   : > { %v1313_v47 = vpop.f32.mrf.mxu3 }
 0x1e4   : > { %v7276_v7 = vadd.f32 %v1313_v47, %v7229_v17  ;;  %v1983_v17 = vpack.c.bf16 %v1950_v49, %v1949_v62  ;;  %v799_v47 = vpop.f32.mrf.mxu1  ;;  %v1951_v49 = vld [vmem:[%s6698_s14 + $0xa6] sm:$0xff] }
 0x1e9   : > { %2105 = vmatmul.bf16.gmra.mxu2 %v1983_v17 }
 0x1ea   : > { %v646_v9 = vpop.f32.mrf.mxu0 }
 0x1eb   : > { %v1315_v21 = vpop.f32.mrf.mxu3  ;;  %v808_v13 = vadd.f32 %v6829_v37, %v646_v9  ;;  %v800_v37 = vadd.f32 %v799_v47, %v638_v63  ;;  %v1952_v9 = vld [vmem:[%s6698_s14 + $0xae] sm:$0xff]  ;;  %v6467_v63 = vld [vmem:[%s8850_s1 + $0x220] sm:$0xff] }
 0x1ec   : > { %v7285_v34 = vadd.f32 %v1315_v21, %v1086_v0  ;;  %v2229_v0 = vld [vmem:[%s6698_s14 + $0x8f] sm:$0xff]  ;;  %2627 = vmatpush.bf16.msrb.mxu0 %v6467_v63 }
 0x1ed   : > { %v7288_v56 = vadd.f32 %v1047_v10, %v808_v13  ;;  %1533 = vmatmul.bf16.gmra.mxu0 %v1419_v39  ;;  %v1386_v10 = vld [vmem:[%s6698_s14 + $0x7c] sm:$0xff]  ;;  %v1088_v21 = vadd.f32 %v7233_v53, %v800_v37  ;;  %v2263_v13 = vpack.c.bf16 %v2229_v0, %v2228_v28  ;;  %v1387_v28 = vld [vmem:[%s6698_s14 + $0x84] sm:$0xff]  ;;  %v1388_v0 = vld [vmem:[%s6698_s14 + $0x8c] sm:$0xff] }
 0x1ee   : > { %1824 = vmatmul.bf16.gmra.mxu1 %v1702_v36  ;;  %v1420_v62 = vpack.c.bf16 %v1386_v10, %v1385_v5  ;;  %v1670_v53 = vld [vmem:[%s6698_s14 + $0x95] sm:$0xff]  ;;  %v805_v10 = vadd.f32 %v6823_v26, %v643_v22 }
 0x1ef   : > { %v1703_v47 = vpack.c.bf16 %v1671_v33, %v1670_v53  ;;  %v1672_v33 = vld [vmem:[%s6698_s14 + $0xa5] sm:$0xff] }
 0x1f0   : > { %2376 = vmatmul.bf16.gmra.mxu3 %v2262_v25 }
 0x1f2   : > { %v648_v12 = vpop.f32.mrf.mxu0 }
 0x1f3   : > { %v1318_v15 = vpop.f32.mrf.mxu3 }
 0x1f4   : > { %v7293_v50 = vadd.f32 %v1318_v15, %v7249_v30  ;;  %v1984_v30 = vpack.c.bf16 %v1952_v9, %v1951_v49  ;;  %v1090_v49 = vadd.f32 %v7253_v54, %v805_v10  ;;  %v1673_v54 = vld [vmem:[%s6698_s14 + $0xad] sm:$0xff] }
 0x1f9   : > { %2110 = vmatmul.bf16.gmra.mxu2 %v1984_v30  ;;  %v1953_v30 = vld [vmem:[%s6698_s14 + $0xb6] sm:$0xff] }
 0x1fa   : > { %v947_v17 = vpop.f32.mrf.mxu0 }
 0x1fb   : > { %v1320_v39 = vpop.f32.mrf.mxu3  ;;  %v1051_v61 = vadd.f32 %v947_v17, %v6809_v11  ;;  %v1790_v36 = vpop.f32.mrf.mxu1 }
 0x1fc   : > { %v7302_v25 = vadd.f32 %v1320_v39, %v1088_v21  ;;  %v2071_v15 = vpop.f32.mrf.mxu2  ;;  %v2230_v39 = vld [vmem:[%s6698_s14 + $0x97] sm:$0xff] }
 0x1fd   : > { %1538 = vmatmul.bf16.gmra.mxu0 %v1420_v62  ;;  %v2231_v62 = vld [vmem:[%s6698_s14 + $0x9f] sm:$0xff] }
 0x1fe   : > { %1829 = vmatmul.bf16.gmra.mxu1 %v1703_v47 }
 0x200   : > { %2381 = vmatmul.bf16.gmra.mxu3 %v2263_v13  ;;  %v1421_v13 = vpack.c.bf16 %v1388_v0, %v1387_v28 }
 0x202   : > { %v949_v37 = vpop.f32.mrf.mxu0 }
 0x203   : > { %v1323_v12 = vpop.f32.mrf.mxu3  ;;  %v1052_v5 = vadd.f32 %v949_v37, %v6815_v18  ;;  %v1792_v21 = vpop.f32.mrf.mxu1  ;;  %v2264_v18 = vpack.c.bf16 %v2231_v62, %v2230_v39  ;;  %v1389_v39 = vld [vmem:[%s6698_s14 + $0x94] sm:$0xff]  ;;  %v1390_v62 = vld [vmem:[%s6698_s14 + $0x9c] sm:$0xff] }
 0x204   : > { %v7311_v11 = vadd.f32 %v1323_v12, %v7271_v51  ;;  %v2073_v9 = vpop.f32.mrf.mxu2  ;;  %v1954_v51 = vld [vmem:[%s6698_s14 + $0xbe] sm:$0xff]  ;;  %v1704_v12 = vpack.c.bf16 %v1673_v54, %v1672_v33 }
 0x205   : > { %v1985_v26 = vpack.c.bf16 %v1954_v51, %v1953_v30 }
 0x209   : > { %2115 = vmatmul.bf16.gmra.mxu2 %v1985_v26  ;;  %v1956_v26 = vld [vmem:[%s6698_s14 + $0xce] sm:$0xff] }
 0x20a   : > { %v952_v53 = vpop.f32.mrf.mxu0 }
 0x20b   : > { %v1325_v17 = vpop.f32.mrf.mxu3  ;;  %v1053_v22 = vadd.f32 %v952_v53, %v6825_v32  ;;  %v1795_v47 = vpop.f32.mrf.mxu1  ;;  %v1332_v53 = vadd.f32 %v6843_v60, %v1051_v61 }
 0x20c   : > { %v7322_v63 = vadd.f32 %v1325_v17, %v1090_v49  ;;  %v7327_v37 = vpop.f32.mrf.mxu2  ;;  %v2232_v17 = vld [vmem:[%s6698_s14 + $0xa7] sm:$0xff] }
 0x20d   : > { %1543 = vmatmul.bf16.gmra.mxu0 %v1421_v13  ;;  %v2233_v13 = vld [vmem:[%s6698_s14 + $0xaf] sm:$0xff] }
 0x20e   : > { %8880 = vst [vmem:[#allocation10_spill] sm:$0xff] %v7322_v63  ;;  %1834 = vmatmul.bf16.gmra.mxu1 %v1704_v12  ;;  %v2265_v54 = vpack.c.bf16 %v2233_v13, %v2232_v17 }
 0x210   : > { %2386 = vmatmul.bf16.gmra.mxu3 %v2264_v18  ;;  %v1422_v18 = vpack.c.bf16 %v1390_v62, %v1389_v39  ;;  %v1333_v62 = vadd.f32 %v6853_v8, %v1052_v5 }
 0x212   : > { %v954_v0 = vpop.f32.mrf.mxu0 }
 0x213   : > { %v1328_v10 = vpop.f32.mrf.mxu3  ;;  %v7333_v32 = vadd.f32 %v954_v0, %v6831_v40  ;;  %v7337_v49 = vpop.f32.mrf.mxu1  ;;  %v1674_v0 = vld [vmem:[%s6698_s14 + $0xb5] sm:$0xff] }
 0x214   : > { %v7330_v28 = vadd.f32 %v1328_v10, %v7288_v56  ;;  %v7341_v30 = vpop.f32.mrf.mxu2  ;;  %v1955_v56 = vld [vmem:[%s6698_s14 + $0xc6] sm:$0xff] }
 0x215   : > { %v1986_v40 = vpack.c.bf16 %v1956_v26, %v1955_v56  ;;  %v1392_v56 = vld [vmem:[%s6698_s14 + $0xac] sm:$0xff] }
 0x216   : > { %8881 = vst [vmem:[#allocation11_spill] sm:$0xff] %v7330_v28  ;;  %v1675_v28 = vld [vmem:[%s6698_s14 + $0xbd] sm:$0xff] }
 0x219   : > { %2120 = vmatmul.bf16.gmra.mxu2 %v1986_v40  ;;  %v1334_v40 = vadd.f32 %v6859_v23, %v1053_v22 }
 0x21a   : > { %v1509_v33 = vpop.f32.mrf.mxu0 }
 0x21b   : > { %v1330_v51 = vpop.f32.mrf.mxu3  ;;  %v1613_v12 = vadd.f32 %v1509_v33, %v1332_v53  ;;  %v7348_v63 = vpop.f32.mrf.mxu1  ;;  %v2234_v33 = vld [vmem:[%s6698_s14 + $0xb7] sm:$0xff] }
 0x21c   : > { %v1705_v51 = vpack.c.bf16 %v1675_v28, %v1674_v0  ;;  %v7350_v61 = vpop.f32.mrf.mxu2  ;;  %v1391_v28 = vld [vmem:[%s6698_s14 + $0xa4] sm:$0xff] }
 0x21d   : > { %v1894_v10 = vadd.f32 %v1790_v36, %v1613_v12  ;;  %1548 = vmatmul.bf16.gmra.mxu0 %v1422_v18  ;;  %v6466_v18 = vld [vmem:[%s8850_s1 + $0x218] sm:$0xff] }
 0x21e   : > { %1839 = vmatmul.bf16.gmra.mxu1 %v1705_v51  ;;  %2628 = vmatpush.bf16.msrb.mxu0 %v6466_v18  ;;  %v1957_v12 = vld [vmem:[%s6698_s14 + $0xd6] sm:$0xff] }
 0x21f   : > { %v2175_v60 = vadd.f32 %v2071_v15, %v1894_v10  ;;  %v1958_v10 = vld [vmem:[%s6698_s14 + $0xde] sm:$0xff] }
 0x220   : > { %2391 = vmatmul.bf16.gmra.mxu3 %v2265_v54  ;;  %v2235_v54 = vld [vmem:[%s6698_s14 + $0xbf] sm:$0xff] }
 0x222   : > { %v1511_v17 = vpop.f32.mrf.mxu0 }
 0x223   : > { %v2352_v39 = vpop.f32.mrf.mxu3  ;;  %v1614_v13 = vadd.f32 %v1511_v17, %v1333_v62  ;;  %v7360_v15 = vpop.f32.mrf.mxu1  ;;  %v1676_v17 = vld [vmem:[%s6698_s14 + $0xc5] sm:$0xff] }
 0x224   : > { %v7353_v36 = vadd.f32 %v2352_v39, %v2175_v60  ;;  %v7364_v8 = vpop.f32.mrf.mxu2  ;;  %v2266_v60 = vpack.c.bf16 %v2235_v54, %v2234_v33  ;;  %v1987_v39 = vpack.c.bf16 %v1958_v10, %v1957_v12  ;;  %v2236_v12 = vld [vmem:[%s6698_s14 + $0xc7] sm:$0xff]  ;;  %v2237_v10 = vld [vmem:[%s6698_s14 + $0xcf] sm:$0xff] }
 0x225   : > { %v1895_v53 = vadd.f32 %v1792_v21, %v1614_v13  ;;  %v1423_v21 = vpack.c.bf16 %v1392_v56, %v1391_v28  ;;  %v1677_v13 = vld [vmem:[%s6698_s14 + $0xcd] sm:$0xff] }
 0x226   : > { %v1706_v23 = vpack.c.bf16 %v1677_v13, %v1676_v17 }
 0x227   : > { %v2176_v26 = vadd.f32 %v2073_v9, %v1895_v53 }
 0x229   : > { %2125 = vmatmul.bf16.gmra.mxu2 %v1987_v39  ;;  %v1960_v39 = vld [vmem:[%s6698_s14 + $0xee] sm:$0xff] }
 0x22a   : > { %v1514_v51 = vpop.f32.mrf.mxu0 }
 0x22b   : > { %v2354_v5 = vpop.f32.mrf.mxu3  ;;  %v1615_v62 = vadd.f32 %v1514_v51, %v1334_v40  ;;  %v7373_v53 = vpop.f32.mrf.mxu1  ;;  %v1394_v40 = vld [vmem:[%s6698_s14 + $0xbc] sm:$0xff] }
 0x22c   : > { %v7369_v0 = vadd.f32 %v2354_v5, %v2176_v26  ;;  %v7376_v18 = vpop.f32.mrf.mxu2  ;;  %v1393_v5 = vld [vmem:[%s6698_s14 + $0xb4] sm:$0xff] }
 0x22d   : > { %v1896_v9 = vadd.f32 %v1795_v47, %v1615_v62  ;;  %1553 = vmatmul.bf16.gmra.mxu0 %v1423_v21  ;;  %v1335_v47 = vadd.f32 %v6869_v38, %v7333_v32  ;;  %v1424_v32 = vpack.c.bf16 %v1394_v40, %v1393_v5 }
 0x22e   : > { %1844 = vmatmul.bf16.gmra.mxu1 %v1706_v23 }
 0x22f   : > { %v2177_v22 = vadd.f32 %v7327_v37, %v1896_v9 }
 0x230   : > { %2396 = vmatmul.bf16.gmra.mxu3 %v2266_v60  ;;  %v1959_v60 = vld [vmem:[%s6698_s14 + $0xe6] sm:$0xff] }
 0x231   : > { %v1988_v17 = vpack.c.bf16 %v1960_v39, %v1959_v60  ;;  %v2238_v60 = vld [vmem:[%s6698_s14 + $0xd7] sm:$0xff]  ;;  %v2239_v39 = vld [vmem:[%s6698_s14 + $0xdf] sm:$0xff] }
 0x232   : > { %v1516_v26 = vpop.f32.mrf.mxu0 }
 0x233   : > { %v2357_v28 = vpop.f32.mrf.mxu3  ;;  %v1616_v33 = vadd.f32 %v1516_v26, %v1335_v47  ;;  %v7385_v21 = vpop.f32.mrf.mxu1 }
 0x234   : > { %v7380_v56 = vadd.f32 %v2357_v28, %v2177_v22  ;;  %v7390_v51 = vpop.f32.mrf.mxu2  ;;  %v1678_v22 = vld [vmem:[%s6698_s14 + $0xd5] sm:$0xff]  ;;  %v1679_v28 = vld [vmem:[%s6698_s14 + $0xdd] sm:$0xff] }
 0x235   : > { %v1897_v54 = vadd.f32 %v7337_v49, %v1616_v33  ;;  %v2267_v49 = vpack.c.bf16 %v2237_v10, %v2236_v12  ;;  %v1707_v26 = vpack.c.bf16 %v1679_v28, %v1678_v22  ;;  %v6478_v33 = vld [vmem:[%s8852_s3 + $0x38] sm:$0xff]  ;;  %v1395_v10 = vld [vmem:[%s6698_s14 + $0xc4] sm:$0xff] }
 0x236   : > { %3374 = vmatpush.bf16.msra.mxu1 %v6478_v33 }
 0x237   : > { %v2178_v37 = vadd.f32 %v7341_v30, %v1897_v54  ;;  %v6474_v30 = vld [vmem:[%s8852_s3 + $0x18] sm:$0xff] }
 0x238   : > { %3511 = vmatpush.bf16.msra.mxu2 %v6474_v30  ;;  %v1962_v30 = vld [vmem:[%s6698_s14 + $0xfe] sm:$0xff] }
 0x239   : > { %2130 = vmatmul.bf16.gmra.mxu2 %v1988_v17 }
 0x23a   : > { %v1519_v9 = vpop.f32.mrf.mxu0 }
 0x23b   : > { %v2359_v38 = vpop.f32.mrf.mxu3  ;;  %v1617_v13 = vadd.f32 %v1519_v9, %v6876_v52  ;;  %v1810_v47 = vpop.f32.mrf.mxu1 }
 0x23c   : > { %v7394_v62 = vadd.f32 %v2359_v38, %v2178_v37  ;;  %v7407_v54 = vpop.f32.mrf.mxu2 }
 0x23d   : > { %v1898_v23 = vadd.f32 %v7348_v63, %v1617_v13  ;;  %1558 = vmatmul.bf16.gmra.mxu0 %v1424_v32  ;;  %v1961_v13 = vld [vmem:[%s6698_s14 + $0xf6] sm:$0xff] }
 0x23e   : > { %1849 = vmatmul.bf16.gmra.mxu1 %v1707_v26  ;;  %v1989_v22 = vpack.c.bf16 %v1962_v30, %v1961_v13  ;;  %v2241_v13 = vld [vmem:[%s6698_s14 + $0xef] sm:$0xff] }
 0x23f   : > { %v2179_v52 = vadd.f32 %v7350_v61, %v1898_v23  ;;  %v1396_v61 = vld [vmem:[%s6698_s14 + $0xcc] sm:$0xff] }
 0x240   : > { %2401 = vmatmul.bf16.gmra.mxu3 %v2267_v49  ;;  %v1425_v17 = vpack.c.bf16 %v1396_v61, %v1395_v10 }
 0x242   : > { %v1521_v40 = vpop.f32.mrf.mxu0 }
 0x243   : > { %v2362_v63 = vpop.f32.mrf.mxu3  ;;  %v1618_v37 = vadd.f32 %v1521_v40, %v6887_v57  ;;  %v7415_v38 = vpop.f32.mrf.mxu1 }
 0x244   : > { %v7409_v5 = vadd.f32 %v2362_v63, %v2179_v52  ;;  %v7420_v9 = vpop.f32.mrf.mxu2  ;;  %v1681_v52 = vld [vmem:[%s6698_s14 + $0xed] sm:$0xff] }
 0x245   : > { %v1899_v12 = vadd.f32 %v7360_v15, %v1618_v37  ;;  %v2268_v15 = vpack.c.bf16 %v2239_v39, %v2238_v60  ;;  %v6465_v37 = vld [vmem:[%s8850_s1 + $0x210] sm:$0xff] }
 0x246   : > { %2629 = vmatpush.bf16.msrb.mxu0 %v6465_v37  ;;  %v1397_v60 = vld [vmem:[%s6698_s14 + $0xd4] sm:$0xff] }
 0x247   : > { %v2180_v32 = vadd.f32 %v7364_v8, %v1899_v12  ;;  %v1680_v8 = vld [vmem:[%s6698_s14 + $0xe5] sm:$0xff] }
 0x248   : > { %v1708_v63 = vpack.c.bf16 %v1681_v52, %v1680_v8 }
 0x249   : > { %2135 = vmatmul.bf16.gmra.mxu2 %v1989_v22  ;;  %v1963_v22 = vld [vmem:[%s6698_s14 + $0x106] sm:$0xff] }
 0x24a   : > { %v1524_v57 = vpop.f32.mrf.mxu0 }
 0x24b   : > { %v2364_v49 = vpop.f32.mrf.mxu3  ;;  %v1619_v28 = vadd.f32 %v1524_v57, %v6894_v19  ;;  %v1815_v33 = vpop.f32.mrf.mxu1 }
 0x24c   : > { %v7424_v23 = vadd.f32 %v2364_v49, %v2180_v32  ;;  %v7434_v19 = vpop.f32.mrf.mxu2 }
 0x24d   : > { %v1900_v26 = vadd.f32 %v7373_v53, %v1619_v28  ;;  %1563 = vmatmul.bf16.gmra.mxu0 %v1425_v17  ;;  %v2240_v17 = vld [vmem:[%s6698_s14 + $0xe7] sm:$0xff] }
 0x24e   : > { %1854 = vmatmul.bf16.gmra.mxu1 %v1708_v63  ;;  %v1964_v28 = vld [vmem:[%s6698_s14 + $0x10e] sm:$0xff] }
 0x24f   : > { %v2181_v40 = vadd.f32 %v7376_v18, %v1900_v26  ;;  %v1398_v18 = vld [vmem:[%s6698_s14 + $0xdc] sm:$0xff]  ;;  %v1990_v52 = vpack.c.bf16 %v1964_v28, %v1963_v22 }
 0x250   : > { %2406 = vmatmul.bf16.gmra.mxu3 %v2268_v15  ;;  %v1426_v15 = vpack.c.bf16 %v1398_v18, %v1397_v60 }
 0x252   : > { %v1526_v10 = vpop.f32.mrf.mxu0 }
 0x253   : > { %v2367_v53 = vpop.f32.mrf.mxu3  ;;  %v1620_v61 = vadd.f32 %v1526_v10, %v6905_v20  ;;  %v1817_v39 = vpop.f32.mrf.mxu1  ;;  %v2269_v20 = vpack.c.bf16 %v2241_v13, %v2240_v17  ;;  %v1400_v17 = vld [vmem:[%s6698_s14 + $0xec] sm:$0xff] }
 0x254   : > { %v7436_v12 = vadd.f32 %v2367_v53, %v2181_v40  ;;  %v2098_v30 = vpop.f32.mrf.mxu2  ;;  %v1683_v40 = vld [vmem:[%s6698_s14 + $0xfd] sm:$0xff] }
 0x255   : > { %v1901_v32 = vadd.f32 %v7385_v21, %v1620_v61 }
 0x257   : > { %v2182_v49 = vadd.f32 %v7390_v51, %v1901_v32  ;;  %v1682_v51 = vld [vmem:[%s6698_s14 + $0xf5] sm:$0xff] }
 0x258   : > { %v1709_v53 = vpack.c.bf16 %v1683_v40, %v1682_v51 }
 0x259   : > { %2140 = vmatmul.bf16.gmra.mxu2 %v1990_v52  ;;  %v1966_v52 = vld [vmem:[%s6698_s14 + $0x11e] sm:$0xff] }
 0x25a   : > { %v1529_v8 = vpop.f32.mrf.mxu0 }
 0x25b   : > { %v2369_v57 = vpop.f32.mrf.mxu3  ;;  %v1621_v21 = vadd.f32 %v1529_v8, %v6918_v55  ;;  %v1820_v37 = vpop.f32.mrf.mxu1 }
 0x25c   : > { %v7447_v26 = vadd.f32 %v2369_v57, %v2182_v49  ;;  %v7453_v61 = vpop.f32.mrf.mxu2  ;;  %v1399_v49 = vld [vmem:[%s6698_s14 + $0xe4] sm:$0xff] }
 0x25d   : > { %v1902_v63 = vadd.f32 %v1810_v47, %v1621_v21  ;;  %1568 = vmatmul.bf16.gmra.mxu0 %v1426_v15  ;;  %v2243_v15 = vld [vmem:[%s6698_s14 + $0xff] sm:$0xff]  ;;  %v1427_v8 = vpack.c.bf16 %v1400_v17, %v1399_v49 }
 0x25e   : > { %1859 = vmatmul.bf16.gmra.mxu1 %v1709_v53  ;;  %v1685_v53 = vld [vmem:[%s6698_s14 + $0x10d] sm:$0xff] }
 0x25f   : > { %v2183_v10 = vadd.f32 %v7407_v54, %v1902_v63  ;;  %v2242_v54 = vld [vmem:[%s6698_s14 + $0xf7] sm:$0xff] }
 0x260   : > { %2411 = vmatmul.bf16.gmra.mxu3 %v2269_v20  ;;  %v1965_v20 = vld [vmem:[%s6698_s14 + $0x116] sm:$0xff] }
 0x261   : > { %v1991_v63 = vpack.c.bf16 %v1966_v52, %v1965_v20  ;;  %v2245_v20 = vld [vmem:[%s6698_s14 + $0x10f] sm:$0xff] }
 0x262   : > { %v1531_v47 = vpop.f32.mrf.mxu0 }
 0x263   : > { %v2372_v32 = vpop.f32.mrf.mxu3  ;;  %v1622_v60 = vadd.f32 %v1531_v47, %v6929_v48  ;;  %v7461_v13 = vpop.f32.mrf.mxu1 }
 0x264   : > { %v7455_v55 = vadd.f32 %v2372_v32, %v2183_v10  ;;  %v7466_v22 = vpop.f32.mrf.mxu2 }
 0x265   : > { %v1903_v18 = vadd.f32 %v7415_v38, %v1622_v60  ;;  %v2270_v38 = vpack.c.bf16 %v2243_v15, %v2242_v54  ;;  %v1402_v54 = vld [vmem:[%s6698_s14 + $0xfc] sm:$0xff] }
 0x267   : > { %v2184_v57 = vadd.f32 %v7420_v9, %v1903_v18  ;;  %v1684_v9 = vld [vmem:[%s6698_s14 + $0x105] sm:$0xff] }
 0x268   : > { %v1710_v32 = vpack.c.bf16 %v1685_v53, %v1684_v9 }
 0x269   : > { %2145 = vmatmul.bf16.gmra.mxu2 %v1991_v63  ;;  %v1968_v63 = vld [vmem:[%s6698_s14 + $0x12e] sm:$0xff] }
 0x26a   : > { %v1534_v48 = vpop.f32.mrf.mxu0 }
 0x26b   : > { %v2374_v28 = vpop.f32.mrf.mxu3  ;;  %v1623_v51 = vadd.f32 %v1534_v48, %v6936_v29  ;;  %v1825_v10 = vpop.f32.mrf.mxu1 }
 0x26c   : > { %v7470_v21 = vadd.f32 %v2374_v28, %v2184_v57  ;;  %v7476_v60 = vpop.f32.mrf.mxu2  ;;  %v1401_v57 = vld [vmem:[%s6698_s14 + $0xf4] sm:$0xff] }
 0x26d   : > { %v1904_v40 = vadd.f32 %v1815_v33, %v1623_v51  ;;  %1573 = vmatmul.bf16.gmra.mxu0 %v1427_v8  ;;  %v2244_v8 = vld [vmem:[%s6698_s14 + $0x107] sm:$0xff]  ;;  %v1428_v48 = vpack.c.bf16 %v1402_v54, %v1401_v57 }
 0x26e   : > { %1864 = vmatmul.bf16.gmra.mxu1 %v1710_v32  ;;  %v1686_v32 = vld [vmem:[%s6698_s14 + $0x115] sm:$0xff] }
 0x26f   : > { %v2185_v47 = vadd.f32 %v7434_v19, %v1904_v40 }
 0x270   : > { %2416 = vmatmul.bf16.gmra.mxu3 %v2270_v38  ;;  %v1967_v38 = vld [vmem:[%s6698_s14 + $0x126] sm:$0xff] }
 0x271   : > { %v1992_v9 = vpack.c.bf16 %v1968_v63, %v1967_v38  ;;  %v2247_v38 = vld [vmem:[%s6698_s14 + $0x11f] sm:$0xff] }
 0x272   : > { %v1536_v33 = vpop.f32.mrf.mxu0 }
 0x273   : > { %v2377_v18 = vpop.f32.mrf.mxu3  ;;  %v1624_v49 = vadd.f32 %v1536_v33, %v6947_v14  ;;  %v7483_v15 = vpop.f32.mrf.mxu1  ;;  %v2271_v14 = vpack.c.bf16 %v2245_v20, %v2244_v8  ;;  %v1403_v8 = vld [vmem:[%s6698_s14 + $0x104] sm:$0xff]  ;;  %v1404_v20 = vld [vmem:[%s6698_s14 + $0x10c] sm:$0xff] }
 0x274   : > { %v7478_v29 = vadd.f32 %v2377_v18, %v2185_v47  ;;  %v7487_v19 = vpop.f32.mrf.mxu2  ;;  %v1687_v47 = vld [vmem:[%s6698_s14 + $0x11d] sm:$0xff] }
 0x275   : > { %v1905_v17 = vadd.f32 %v1817_v39, %v1624_v49  ;;  %v6464_v39 = vld [vmem:[%s8850_s1 + $0x208] sm:$0xff]  ;;  %v1711_v33 = vpack.c.bf16 %v1687_v47, %v1686_v32 }
 0x276   : > { %2630 = vmatpush.bf16.msrb.mxu0 %v6464_v39  ;;  %v1969_v39 = vld [vmem:[%s6698_s14 + $0x136] sm:$0xff] }
 0x277   : > { %v2186_v28 = vadd.f32 %v2098_v30, %v1905_v17 }
 0x279   : > { %2150 = vmatmul.bf16.gmra.mxu2 %v1992_v9  ;;  %v1970_v9 = vld [vmem:[%s6698_s14 + $0x13e] sm:$0xff] }
 0x27a   : > { %v1539_v40 = vpop.f32.mrf.mxu0 }
 0x27b   : > { %v2379_v52 = vpop.f32.mrf.mxu3  ;;  %v1625_v30 = vadd.f32 %v1539_v40, %v6956_v1  ;;  %v1830_v18 = vpop.f32.mrf.mxu1 }
 0x27c   : > { %v7491_v51 = vadd.f32 %v2379_v52, %v2186_v28  ;;  %v7500_v17 = vpop.f32.mrf.mxu2 }
 0x27d   : > { %v1906_v53 = vadd.f32 %v1820_v37, %v1625_v30  ;;  %1578 = vmatmul.bf16.gmra.mxu0 %v1428_v48 }
 0x27e   : > { %1869 = vmatmul.bf16.gmra.mxu1 %v1711_v33  ;;  %v1689_v33 = vld [vmem:[%s6698_s14 + $0x12d] sm:$0xff] }
 0x27f   : > { %v2187_v49 = vadd.f32 %v7453_v61, %v1906_v53  ;;  %v2246_v61 = vld [vmem:[%s6698_s14 + $0x117] sm:$0xff]  ;;  %v1993_v53 = vpack.c.bf16 %v1970_v9, %v1969_v39  ;;  %v2248_v39 = vld [vmem:[%s6698_s14 + $0x127] sm:$0xff]  ;;  %v2249_v9 = vld [vmem:[%s6698_s14 + $0x12f] sm:$0xff] }
 0x280   : > { %2421 = vmatmul.bf16.gmra.mxu3 %v2271_v14  ;;  %v1429_v14 = vpack.c.bf16 %v1404_v20, %v1403_v8 }
 0x282   : > { %v1541_v37 = vpop.f32.mrf.mxu0 }
 0x283   : > { %v2382_v57 = vpop.f32.mrf.mxu3  ;;  %v1626_v54 = vadd.f32 %v1541_v37, %v6973_v24  ;;  %v7508_v52 = vpop.f32.mrf.mxu1 }
 0x284   : > { %v7502_v1 = vadd.f32 %v2382_v57, %v2187_v49  ;;  %v7513_v63 = vpop.f32.mrf.mxu2 }
 0x285   : > { %v1907_v28 = vadd.f32 %v7461_v13, %v1626_v54  ;;  %v2272_v13 = vpack.c.bf16 %v2247_v38, %v2246_v61  ;;  %v6473_v54 = vld [vmem:[%s8852_s3 + $0x10] sm:$0xff]  ;;  %v1406_v38 = vld [vmem:[%s6698_s14 + $0x11c] sm:$0xff] }
 0x286   : > { %3512 = vmatpush.bf16.msra.mxu2 %v6473_v54  ;;  %v1405_v61 = vld [vmem:[%s6698_s14 + $0x114] sm:$0xff]  ;;  %v1691_v54 = vld [vmem:[%s6698_s14 + $0x13d] sm:$0xff] }
 0x287   : > { %v2188_v48 = vadd.f32 %v7466_v22, %v1907_v28  ;;  %v1688_v22 = vld [vmem:[%s6698_s14 + $0x125] sm:$0xff] }
 0x288   : > { %v1712_v57 = vpack.c.bf16 %v1689_v33, %v1688_v22  ;;  %v2273_v22 = vpack.c.bf16 %v2249_v9, %v2248_v39  ;;  %v1407_v39 = vld [vmem:[%s6698_s14 + $0x124] sm:$0xff]  ;;  %v1408_v9 = vld [vmem:[%s6698_s14 + $0x12c] sm:$0xff] }
 0x289   : > { %2155 = vmatmul.bf16.gmra.mxu2 %v1993_v53  ;;  %v1971_v53 = vld [vmem:[%s6698_s14 + $0x146] sm:$0xff] }
 0x28a   : > { %v1544_v24 = vpop.f32.mrf.mxu0 }
 0x28b   : > { %v2384_v40 = vpop.f32.mrf.mxu3  ;;  %v1627_v32 = vadd.f32 %v1544_v24, %v6982_v44  ;;  %v7522_v49 = vpop.f32.mrf.mxu1 }
 0x28c   : > { %v7517_v30 = vadd.f32 %v2384_v40, %v2188_v48  ;;  %v7528_v44 = vpop.f32.mrf.mxu2 }
 0x28d   : > { %v1908_v47 = vadd.f32 %v1825_v10, %v1627_v32  ;;  %1583 = vmatmul.bf16.gmra.mxu0 %v1429_v14  ;;  %v1972_v32 = vld [vmem:[%s6698_s14 + $0x14e] sm:$0xff] }
 0x28e   : > { %1874 = vmatmul.bf16.gmra.mxu1 %v1712_v57  ;;  %v1994_v33 = vpack.c.bf16 %v1972_v32, %v1971_v53  ;;  %v2251_v53 = vld [vmem:[%s6698_s14 + $0x13f] sm:$0xff] }
 0x28f   : > { %v2189_v37 = vadd.f32 %v7476_v60, %v1908_v47  ;;  %v6477_v60 = vld [vmem:[%s8852_s3 + $0x30] sm:$0xff] }
 0x290   : > { %2426 = vmatmul.bf16.gmra.mxu3 %v2272_v13  ;;  %3375 = vmatpush.bf16.msra.mxu1 %v6477_v60  ;;  %v1430_v13 = vpack.c.bf16 %v1406_v38, %v1405_v61  ;;  %v6463_v38 = vld [vmem:[%s8850_s1 + $0x200] sm:$0xff] }
 0x291   : > { %2631 = vmatpush.bf16.msrb.mxu0 %v6463_v38 }
 0x292   : > { %v1546_v8 = vpop.f32.mrf.mxu0 }
 0x293   : > { %v2387_v10 = vpop.f32.mrf.mxu3  ;;  %v1628_v20 = vadd.f32 %v1546_v8, %v6991_v2  ;;  %v7539_v40 = vpop.f32.mrf.mxu1 }
 0x294   : > { %v7530_v28 = vadd.f32 %v2387_v10, %v2189_v37  ;;  %v7544_v24 = vpop.f32.mrf.mxu2 }
 0x295   : > { %v1909_v48 = vadd.f32 %v7483_v15, %v1628_v20 }
 0x297   : > { %v2190_v14 = vadd.f32 %v7487_v19, %v1909_v48  ;;  %v1690_v19 = vld [vmem:[%s6698_s14 + $0x135] sm:$0xff] }
 0x298   : > { %v1713_v8 = vpack.c.bf16 %v1691_v54, %v1690_v19 }
 0x299   : > { %2160 = vmatmul.bf16.gmra.mxu2 %v1994_v33  ;;  %v1974_v33 = vld [vmem:[%s6698_s14 + $0x15e] sm:$0xff] }
 0x29a   : > { %v1549_v15 = vpop.f32.mrf.mxu0 }
 0x29b   : > { %v2389_v2 = vpop.f32.mrf.mxu3  ;;  %v1629_v57 = vadd.f32 %v1549_v15, %v6999_v35  ;;  %v1840_v10 = vpop.f32.mrf.mxu1  ;;  %v1431_v15 = vpack.c.bf16 %v1408_v9, %v1407_v39  ;;  %v1409_v9 = vld [vmem:[%s6698_s14 + $0x134] sm:$0xff] }
 0x29c   : > { %v7548_v47 = vadd.f32 %v2389_v2, %v2190_v14  ;;  %v2121_v60 = vpop.f32.mrf.mxu2 }
 0x29d   : > { %v1910_v37 = vadd.f32 %v1830_v18, %v1629_v57  ;;  %1588 = vmatmul.bf16.gmra.mxu0 %v1430_v13  ;;  %v2250_v13 = vld [vmem:[%s6698_s14 + $0x137] sm:$0xff] }
 0x29e   : > { %1879 = vmatmul.bf16.gmra.mxu1 %v1713_v8  ;;  %v1692_v8 = vld [vmem:[%s6698_s14 + $0x145] sm:$0xff] }
 0x29f   : > { %v2191_v20 = vadd.f32 %v7500_v17, %v1910_v37  ;;  %v2274_v37 = vpack.c.bf16 %v2251_v53, %v2250_v13  ;;  %v2252_v53 = vld [vmem:[%s6698_s14 + $0x147] sm:$0xff] }
 0x2a0   : > { %2431 = vmatmul.bf16.gmra.mxu3 %v2273_v22  ;;  %v1973_v22 = vld [vmem:[%s6698_s14 + $0x156] sm:$0xff] }
 0x2a1   : > { %v1995_v19 = vpack.c.bf16 %v1974_v33, %v1973_v22  ;;  %v1975_v33 = vld [vmem:[%s6698_s14 + $0x166] sm:$0x1] }
 0x2a2   : > { %v1551_v35 = vpop.f32.mrf.mxu0 }
 0x2a3   : > { %v2392_v48 = vpop.f32.mrf.mxu3  ;;  %v1630_v18 = vadd.f32 %v1551_v35, %v7013_v59  ;;  %v7563_v17 = vpop.f32.mrf.mxu1 }
 0x2a4   : > { %v7554_v61 = vadd.f32 %v2392_v48, %v2191_v20  ;;  %v7568_v32 = vpop.f32.mrf.mxu2  ;;  %v1693_v20 = vld [vmem:[%s6698_s14 + $0x14d] sm:$0xff] }
 0x2a5   : > { %v1911_v14 = vadd.f32 %v7508_v52, %v1630_v18  ;;  %v1714_v35 = vpack.c.bf16 %v1693_v20, %v1692_v8 }
 0x2a7   : > { %v2192_v2 = vadd.f32 %v7513_v63, %v1911_v14 }
 0x2a9   : > { %2165 = vmatmul.bf16.gmra.mxu2 %v1995_v19  ;;  %v1996_v19 = vpack.c.bf16 %v1975_v33, %v1975_v33 }
 0x2aa   : > { %v1554_v52 = vpop.f32.mrf.mxu0 }
 0x2ab   : > { %v2394_v59 = vpop.f32.mrf.mxu3  ;;  %v1631_v54 = vadd.f32 %v1554_v52, %v7035_v58  ;;  %v1845_v48 = vpop.f32.mrf.mxu1 }
 0x2ac   : > { %v7572_v57 = vadd.f32 %v2394_v59, %v2192_v2  ;;  %v2126_v38 = vpop.f32.mrf.mxu2  ;;  %v1410_v2 = vld [vmem:[%s6698_s14 + $0x13c] sm:$0xff]  ;;  %v2253_v59 = vld [vmem:[%s6698_s14 + $0x14f] sm:$0xff] }
 0x2ad   : > { %v1912_v63 = vadd.f32 %v7522_v49, %v1631_v54  ;;  %1593 = vmatmul.bf16.gmra.mxu0 %v1431_v15 }
 0x2ae   : > { %1884 = vmatmul.bf16.gmra.mxu1 %v1714_v35 }
 0x2af   : > { %v2193_v18 = vadd.f32 %v7528_v44, %v1912_v63  ;;  %v1432_v44 = vpack.c.bf16 %v1410_v2, %v1409_v9  ;;  %v1694_v63 = vld [vmem:[%s6698_s14 + $0x155] sm:$0x1] }
 0x2b0   : > { %2436 = vmatmul.bf16.gmra.mxu3 %v2274_v37  ;;  %v2275_v37 = vpack.c.bf16 %v2253_v59, %v2252_v53  ;;  %v1715_v20 = vpack.c.bf16 %v1694_v63, %v1694_v63  ;;  %v2254_v59 = vld [vmem:[%s6698_s14 + $0x157] sm:$0xff] }
 0x2b2   : > { %v1556_v39 = vpop.f32.mrf.mxu0 }
 0x2b3   : > { %v2397_v14 = vpop.f32.mrf.mxu3  ;;  %v7582_v49 = vadd.f32 %v1556_v39, %v7062_v27  ;;  %v7586_v13 = vpop.f32.mrf.mxu1 }
 0x2b4   : > { %v7579_v58 = vadd.f32 %v2397_v14, %v2193_v18  ;;  %v7590_v15 = vpop.f32.mrf.mxu2 }
 0x2b9   : > { %2170 = vmatmul.bf16.gmra.mxu2 %v1996_v19 }
 0x2ba   : > { %v1559_v52 = vpop.f32.mrf.mxu0 }
 0x2bb   : > { %v7592_v22 = vpop.f32.mrf.mxu3  ;;  %v1633_v27 = vadd.f32 %v1559_v52, %v7093_v3  ;;  %v1850_v8 = vpop.f32.mrf.mxu1  ;;  %v1411_v3 = vld [vmem:[%s6698_s14 + $0x144] sm:$0xff] }
 0x2bc   : > { %v2131_v18 = vpop.f32.mrf.mxu2 }
 0x2bd   : > { %v1914_v54 = vadd.f32 %v1840_v10, %v1633_v27  ;;  %1598 = vmatmul.bf16.gmra.mxu0 %v1432_v44  ;;  %v1412_v10 = vld [vmem:[%s6698_s14 + $0x14c] sm:$0xff]  ;;  %v2255_v44 = vld [vmem:[%s6698_s14 + $0x15f] sm:$0xff] }
 0x2be   : > { %1889 = vmatmul.bf16.gmra.mxu1 %v1715_v20  ;;  %v2276_v19 = vpack.c.bf16 %v2255_v44, %v2254_v59 }
 0x2bf   : > { %v2195_v35 = vadd.f32 %v2121_v60, %v1914_v54  ;;  %v1433_v60 = vpack.c.bf16 %v1412_v10, %v1411_v3  ;;  %v2256_v10 = vld [vmem:[%s6698_s14 + $0x167] sm:$0x1] }
 0x2c0   : > { %2441 = vmatmul.bf16.gmra.mxu3 %v2275_v37 }
 0x2c2   : > { %v1561_v9 = vpop.f32.mrf.mxu0 }
 0x2c3   : > { %v2402_v14 = vpop.f32.mrf.mxu3  ;;  %v7600_v2 = vadd.f32 %v1561_v9, %v7131_v43  ;;  %v7604_v53 = vpop.f32.mrf.mxu1 }
 0x2c4   : > { %v7597_v39 = vadd.f32 %v2402_v14, %v2195_v35  ;;  %8882 = vst [vmem:[#allocation12_spill] sm:$0xff] %v7604_v53  ;;  %v7608_v33 = vpop.f32.mrf.mxu2  ;;  %v1413_v53 = vld [vmem:[%s6698_s14 + $0x154] sm:$0x1] }
 0x2c5   : > { %8883 = vst [vmem:[#allocation13_spill] sm:$0xff] %v7608_v33 }
 0x2ca   : > { %v1564_v37 = vpop.f32.mrf.mxu0 }
 0x2cb   : > { %v7610_v52 = vpop.f32.mrf.mxu3  ;;  %v1635_v27 = vadd.f32 %v1564_v37, %v7148_v46  ;;  %v1855_v43 = vpop.f32.mrf.mxu1 }
 0x2cc   : > { %v2136_v20 = vpop.f32.mrf.mxu2 }
 0x2cd   : > { %v1916_v54 = vadd.f32 %v1845_v48, %v1635_v27  ;;  %1603 = vmatmul.bf16.gmra.mxu0 %v1433_v60  ;;  %v1434_v48 = vpack.c.bf16 %v1413_v53, %v1413_v53  ;;  %v6472_v53 = vld [vmem:[%s8852_s3 + $0x8] sm:$0xff] }
 0x2ce   : > { %3513 = vmatpush.bf16.msra.mxu2 %v6472_v53 }
 0x2cf   : > { %v2197_v63 = vadd.f32 %v2126_v38, %v1916_v54  ;;  %v2277_v38 = vpack.c.bf16 %v2256_v10, %v2256_v10  ;;  %v2497_v10 = vld [vmem:[%s6698_s14 + $0x28] sm:$0xff] }
 0x2d0   : > { %2446 = vmatmul.bf16.gmra.mxu3 %v2276_v19 }
 0x2d2   : > { %v1566_v9 = vpop.f32.mrf.mxu0 }
 0x2d3   : > { %v2407_v35 = vpop.f32.mrf.mxu3  ;;  %v7616_v33 = vadd.f32 %v1566_v9, %v7158_v6  ;;  %v7619_v3 = vpop.f32.mrf.mxu1 }
 0x2d4   : > { %v7613_v14 = vadd.f32 %v2407_v35, %v2197_v63  ;;  %8884 = vst [vmem:[#allocation14_spill] sm:$0xff] %v7619_v3  ;;  %v7622_v59 = vpop.f32.mrf.mxu2  ;;  %v8891_v3 = vld [vmem:[#allocation6_spill] sm:$0xff] }
 0x2d5   : > { %8885 = vst [vmem:[#allocation15_spill] sm:$0xff] %v7622_v59 }
 0x2da   : > { %v1569_v44 = vpop.f32.mrf.mxu0 }
 0x2db   : > { %v7624_v46 = vpop.f32.mrf.mxu3  ;;  %v1637_v60 = vadd.f32 %v1569_v44, %v7167_v45  ;;  %v1860_v6 = vpop.f32.mrf.mxu1  ;;  %v2498_v45 = vld [vmem:[%s6698_s14 + $0x30] sm:$0xff] }
 0x2dc   : > { %v2141_v27 = vpop.f32.mrf.mxu2 }
 0x2dd   : > { %v1918_v37 = vadd.f32 %v1850_v8, %v1637_v60  ;;  %1608 = vmatmul.bf16.gmra.mxu0 %v1434_v48 }
 0x2df   : > { %v2199_v19 = vadd.f32 %v2131_v18, %v1918_v37  ;;  %v6476_v18 = vld [vmem:[%s8852_s3 + $0x28] sm:$0xff] }
 0x2e0   : > { %2451 = vmatmul.bf16.gmra.mxu3 %v2277_v38  ;;  %3376 = vmatpush.bf16.msra.mxu1 %v6476_v18 }
 0x2e2   : > { %v1571_v35 = vpop.f32.mrf.mxu0 }
 0x2e3   : > { %v2412_v54 = vpop.f32.mrf.mxu3  ;;  %v7630_v9 = vadd.f32 %v1571_v35, %v7182_v41  ;;  %v7637_v8 = vpop.f32.mrf.mxu1  ;;  %v2538_v41 = vpack.c.bf16 %v2498_v45, %v2497_v10  ;;  %v8895_v45 = vld [vmem:[#allocation7_spill] sm:$0xff] }
 0x2e4   : > { %v7627_v63 = vadd.f32 %v2412_v54, %v2199_v19  ;;  %8888 = vst [vmem:[#allocation18_spill] sm:$0xff] %v7637_v8  ;;  %v7642_v48 = vpop.f32.mrf.mxu2 }
 0x2e5   : > { %8887 = vst [vmem:[#allocation17_spill] sm:$0xff] %v7630_v9  ;;  %v2500_v9 = vld [vmem:[%s6698_s14 + $0x40] sm:$0xff] }
 0x2e6   : > { %8886 = vst [vmem:[#allocation16_spill] sm:$0xff] %v7627_v63 }
 0x2e7   : > { %8889 = vst [vmem:[#allocation19_spill] sm:$0xff] %v7642_v48  ;;  %v2499_v48 = vld [vmem:[%s6698_s14 + $0x38] sm:$0xff] }
 0x2ea   : > { %v1574_v38 = vpop.f32.mrf.mxu0 }
 0x2eb   : > { %v7644_v44 = vpop.f32.mrf.mxu3  ;;  %v1639_v60 = vadd.f32 %v1574_v38, %v7191_v16  ;;  %v1865_v19 = vpop.f32.mrf.mxu1 }
 0x2ec   : > { %8890 = vst [vmem:[#allocation20_spill] sm:$0xff] %v7644_v44  ;;  %v2146_v35 = vpop.f32.mrf.mxu2 }
 0x2ed   : > { %v1920_v37 = vadd.f32 %v1855_v43, %v1639_v60  ;;  %2632 = vmatmul.bf16.vlgmr.msrb.gmra.mxu0 %v2538_v41  ;;  %v2539_v43 = vpack.c.bf16 %v2500_v9, %v2499_v48  ;;  %v2501_v9 = vld [vmem:[%s6698_s14 + $0x48] sm:$0xff]  ;;  %v2502_v48 = vld [vmem:[%s6698_s14 + $0x50] sm:$0xff] }
 0x2ef   : > { %v2201_v54 = vadd.f32 %v2136_v20, %v1920_v37 }
 0x2f2   : > { %v1576_v59 = vpop.f32.mrf.mxu0 }
 0x2f3   : > { %v2417_v53 = vpop.f32.mrf.mxu3  ;;  %v7650_v63 = vadd.f32 %v1576_v59, %v8891_v3  ;;  %v7654_v44 = vpop.f32.mrf.mxu1 }
 0x2f4   : > { %v7647_v8 = vadd.f32 %v2417_v53, %v2201_v54  ;;  %8892 = vst [vmem:[#allocation6_spill] sm:$0xff] %v7654_v44  ;;  %v7656_v10 = vpop.f32.mrf.mxu2  ;;  %v8897_v53 = vld [vmem:[#allocation8_spill] sm:$0xff] }
 0x2f5   : > { %8893 = vst [vmem:[#allocation21_spill] sm:$0xff] %v7656_v10  ;;  %v6482_v10 = vld [vmem:[%s8852_s3 + $0x58] sm:$0xff] }
 0x2f6   : > { %3696 = vmatpush.bf16.msrb.mxu3 %v6482_v10 }
 0x2fa   : > { %v1579_v20 = vpop.f32.mrf.mxu0 }
 0x2fb   : > { %v7658_v16 = vpop.f32.mrf.mxu3  ;;  %v1641_v18 = vadd.f32 %v1579_v20, %v8895_v45  ;;  %v1870_v38 = vpop.f32.mrf.mxu1  ;;  %v8902_v45 = vld [vmem:[#allocation9_spill] sm:$0xff] }
 0x2fc   : > { %8894 = vst [vmem:[#allocation22_spill] sm:$0xff] %v7658_v16  ;;  %v2151_v3 = vpop.f32.mrf.mxu2 }
 0x2fd   : > { %v1922_v41 = vadd.f32 %v1860_v6, %v1641_v18  ;;  %2637 = vmatmul.bf16.gmra.mxu0 %v2539_v43  ;;  %v2540_v43 = vpack.c.bf16 %v2502_v48, %v2501_v9 }
 0x2ff   : > { %v2203_v60 = vadd.f32 %v2141_v27, %v1922_v41 }
 0x302   : > { %v1581_v54 = vpop.f32.mrf.mxu0 }
 0x303   : > { %v2422_v59 = vpop.f32.mrf.mxu3  ;;  %v7664_v44 = vadd.f32 %v1581_v54, %v8897_v53  ;;  %v7671_v16 = vpop.f32.mrf.mxu1 }
 0x304   : > { %v7661_v37 = vadd.f32 %v2422_v59, %v2203_v60  ;;  %8899 = vst [vmem:[#allocation23_spill] sm:$0xff] %v7671_v16  ;;  %v7673_v6 = vpop.f32.mrf.mxu2 }
 0x305   : > { %8898 = vst [vmem:[#allocation8_spill] sm:$0xff] %v7664_v44  ;;  %v2503_v44 = vld [vmem:[%s6698_s14 + $0x58] sm:$0xff] }
 0x306   : > { %8896 = vst [vmem:[#allocation7_spill] sm:$0xff] %v7661_v37 }
 0x307   : > { %8900 = vst [vmem:[#allocation24_spill] sm:$0xff] %v7673_v6  ;;  %v2504_v6 = vld [vmem:[%s6698_s14 + $0x60] sm:$0xff] }
 0x308   : > { %v2541_v48 = vpack.c.bf16 %v2504_v6, %v2503_v44 }
 0x30a   : > { %v1584_v20 = vpop.f32.mrf.mxu0 }
 0x30b   : > { %v7675_v27 = vpop.f32.mrf.mxu3  ;;  %v1643_v18 = vadd.f32 %v1584_v20, %v8902_v45  ;;  %v1875_v60 = vpop.f32.mrf.mxu1 }
 0x30c   : > { %8901 = vst [vmem:[#allocation25_spill] sm:$0xff] %v7675_v27  ;;  %v2156_v54 = vpop.f32.mrf.mxu2 }
 0x30d   : > { %v1924_v41 = vadd.f32 %v1865_v19, %v1643_v18  ;;  %2642 = vmatmul.bf16.gmra.mxu0 %v2540_v43 }
 0x30f   : > { %v2205_v59 = vadd.f32 %v2146_v35, %v1924_v41 }
 0x312   : > { %v1586_v16 = vpop.f32.mrf.mxu0 }
 0x313   : > { %v2427_v53 = vpop.f32.mrf.mxu3  ;;  %v7681_v10 = vadd.f32 %v1586_v16, %v7247_v4  ;;  %v7685_v27 = vpop.f32.mrf.mxu1 }
 0x314   : > { %v7678_v37 = vadd.f32 %v2427_v53, %v2205_v59  ;;  %8903 = vst [vmem:[#allocation9_spill] sm:$0xff] %v7685_v27  ;;  %v7687_v9 = vpop.f32.mrf.mxu2  ;;  %v2505_v27 = vld [vmem:[%s6698_s14 + $0x68] sm:$0xff] }
 0x315   : > { %8904 = vst [vmem:[#allocation26_spill] sm:$0xff] %v7687_v9  ;;  %v2506_v9 = vld [vmem:[%s6698_s14 + $0x70] sm:$0xff] }
 0x31a   : > { %v1589_v35 = vpop.f32.mrf.mxu0 }
 0x31b   : > { %v7689_v19 = vpop.f32.mrf.mxu3  ;;  %v1645_v43 = vadd.f32 %v1589_v35, %v7256_v42  ;;  %v1880_v45 = vpop.f32.mrf.mxu1 }
 0x31c   : > { %8905 = vst [vmem:[#allocation27_spill] sm:$0xff] %v7689_v19  ;;  %v2161_v4 = vpop.f32.mrf.mxu2 }
 0x31d   : > { %v1926_v20 = vadd.f32 %v1870_v38, %v1645_v43  ;;  %2647 = vmatmul.bf16.gmra.mxu0 %v2541_v48  ;;  %v2542_v38 = vpack.c.bf16 %v2506_v9, %v2505_v27 }
 0x31f   : > { %v2207_v18 = vadd.f32 %v2151_v3, %v1926_v20 }
 0x322   : > { %v1591_v59 = vpop.f32.mrf.mxu0 }
 0x323   : > { %v2432_v16 = vpop.f32.mrf.mxu3  ;;  %v7695_v53 = vadd.f32 %v1591_v59, %v7268_v31  ;;  %v7699_v19 = vpop.f32.mrf.mxu1 }
 0x324   : > { %v7692_v41 = vadd.f32 %v2432_v16, %v2207_v18  ;;  %8907 = vst [vmem:[#allocation29_spill] sm:$0xff] %v7699_v19  ;;  %v7701_v44 = vpop.f32.mrf.mxu2  ;;  %v2507_v19 = vld [vmem:[%s6698_s14 + $0x78] sm:$0xff] }
 0x325   : > { %8908 = vst [vmem:[#allocation30_spill] sm:$0xff] %v7701_v44  ;;  %v2508_v44 = vld [vmem:[%s6698_s14 + $0x80] sm:$0xff] }
 0x326   : > { %8906 = vst [vmem:[#allocation28_spill] sm:$0xff] %v7692_v41 }
 0x32a   : > { %v1594_v3 = vpop.f32.mrf.mxu0 }
 0x32b   : > { %v7703_v42 = vpop.f32.mrf.mxu3  ;;  %v1647_v6 = vadd.f32 %v1594_v3, %v7276_v7  ;;  %v1885_v35 = vpop.f32.mrf.mxu1  ;;  %v6471_v7 = vld [vmem:[%s8852_s3] sm:$0xff] }
 0x32c   : > { %v2166_v31 = vpop.f32.mrf.mxu2  ;;  %3514 = vmatpush.bf16.msra.mxu2 %v6471_v7 }
 0x32d   : > { %v1928_v48 = vadd.f32 %v1875_v60, %v1647_v6  ;;  %2652 = vmatmul.bf16.gmra.mxu0 %v2542_v38  ;;  %v6475_v38 = vld [vmem:[%s8852_s3 + $0x20] sm:$0xff] }
 0x32e   : > { %3377 = vmatpush.bf16.msra.mxu1 %v6475_v38 }
 0x32f   : > { %v2209_v43 = vadd.f32 %v2156_v54, %v1928_v48  ;;  %v2543_v54 = vpack.c.bf16 %v2508_v44, %v2507_v19  ;;  %v2509_v44 = vld [vmem:[%s6698_s14 + $0x88] sm:$0xff] }
 0x332   : > { %v1596_v16 = vpop.f32.mrf.mxu0 }
 0x333   : > { %v2437_v20 = vpop.f32.mrf.mxu3  ;;  %v7709_v59 = vadd.f32 %v1596_v16, %v7285_v34  ;;  %v7713_v41 = vpop.f32.mrf.mxu1 }
 0x334   : > { %v7706_v18 = vadd.f32 %v2437_v20, %v2209_v43  ;;  %8909 = vst [vmem:[#allocation31_spill] sm:$0xff] %v7713_v41  ;;  %v7718_v27 = vpop.f32.mrf.mxu2 }
 0x335   : > { %8910 = vst [vmem:[#allocation32_spill] sm:$0xff] %v7718_v27 }
 0x33a   : > { %v1599_v9 = vpop.f32.mrf.mxu0 }
 0x33b   : > { %v7720_v60 = vpop.f32.mrf.mxu3  ;;  %v1649_v34 = vadd.f32 %v1599_v9, %v7293_v50  ;;  %v1890_v6 = vpop.f32.mrf.mxu1  ;;  %v2510_v50 = vld [vmem:[%s6698_s14 + $0x90] sm:$0xff] }
 0x33c   : > { %v2171_v43 = vpop.f32.mrf.mxu2 }
 0x33d   : > { %v1930_v3 = vadd.f32 %v1880_v45, %v1649_v34  ;;  %2657 = vmatmul.bf16.gmra.mxu0 %v2543_v54  ;;  %v2544_v45 = vpack.c.bf16 %v2510_v50, %v2509_v44 }
 0x33f   : > { %v2211_v48 = vadd.f32 %v2161_v4, %v1930_v3 }
 0x342   : > { %v1601_v27 = vpop.f32.mrf.mxu0 }
 0x343   : > { %v2442_v20 = vpop.f32.mrf.mxu3  ;;  %v7729_v19 = vadd.f32 %v1601_v27, %v7302_v25  ;;  %v1892_v7 = vpop.f32.mrf.mxu1  ;;  %v8913_v27 = vld [vmem:[#allocation10_spill] sm:$0xff] }
 0x344   : > { %v7726_v16 = vadd.f32 %v2442_v20, %v2211_v48  ;;  %v2173_v9 = vpop.f32.mrf.mxu2  ;;  %v2511_v7 = vld [vmem:[%s6698_s14 + $0x98] sm:$0xff] }
 0x345   : > { %v2512_v9 = vld [vmem:[%s6698_s14 + $0xa0] sm:$0xff] }
 0x346   : > { %8911 = vst [vmem:[#allocation33_spill] sm:$0xff] %v7726_v16  ;;  %v2545_v44 = vpack.c.bf16 %v2512_v9, %v2511_v7 }
 0x34a   : > { %v1604_v54 = vpop.f32.mrf.mxu0 }
 0x34b   : > { %v7733_v41 = vpop.f32.mrf.mxu3  ;;  %v1651_v4 = vadd.f32 %v1604_v54, %v7311_v11  ;;  %v6481_v54 = vld [vmem:[%s8852_s3 + $0x50] sm:$0xff] }
 0x34c   : > { %8912 = vst [vmem:[#allocation34_spill] sm:$0xff] %v7733_v41  ;;  %v8914_v41 = vld [vmem:[#allocation11_spill] sm:$0xff]  ;;  %3697 = vmatpush.bf16.msrb.mxu3 %v6481_v54 }
 0x34d   : > { %v1932_v34 = vadd.f32 %v1885_v35, %v1651_v4  ;;  %2662 = vmatmul.bf16.gmra.mxu0 %v2544_v45 }
 0x34f   : > { %v2213_v38 = vadd.f32 %v2166_v31, %v1932_v34 }
 0x352   : > { %v1606_v25 = vpop.f32.mrf.mxu0 }
 0x353   : > { %v2447_v3 = vpop.f32.mrf.mxu3  ;;  %v7739_v20 = vadd.f32 %v1606_v25, %v8913_v27 }
 0x354   : > { %v7736_v48 = vadd.f32 %v2447_v3, %v2213_v38  ;;  %v2513_v38 = vld [vmem:[%s6698_s14 + $0xa8] sm:$0xff]  ;;  %v2514_v3 = vld [vmem:[%s6698_s14 + $0xb0] sm:$0xff] }
 0x35a   : > { %v1609_v50 = vpop.f32.mrf.mxu0 }
 0x35b   : > { %v7743_v16 = vpop.f32.mrf.mxu3  ;;  %v1653_v11 = vadd.f32 %v1609_v50, %v8914_v41  ;;  %v7756_v41 = vld [vmem:[%s8851_s2] ss:$0 sm:$0xff] }
 0x35d   : > { %v1934_v35 = vadd.f32 %v1890_v6, %v1653_v11  ;;  %2667 = vmatmul.bf16.gmra.mxu0 %v2545_v44  ;;  %v2546_v6 = vpack.c.bf16 %v2514_v3, %v2513_v38 }
 0x35f   : > { %v2215_v31 = vadd.f32 %v2171_v43, %v1934_v35  ;;  %v2515_v35 = vld [vmem:[%s6698_s14 + $0xb8] sm:$0xff] }
 0x362   : > { %v1611_v34 = vpop.f32.mrf.mxu0 }
 0x363   : > { %v2452_v45 = vpop.f32.mrf.mxu3 }
 0x364   : > { %v7749_v4 = vadd.f32 %v2452_v45, %v2215_v31  ;;  %v2516_v31 = vld [vmem:[%s6698_s14 + $0xc0] sm:$0xff] }
 0x36a   : > { %v2633_v25 = vpop.f32.mrf.mxu0 }
 0x36b   : > { %v2454_v43 = vpop.f32.mrf.mxu3  ;;  %v2737_v27 = vadd.f32 %v2633_v25, %v7353_v36  ;;  %v2547_v36 = vpack.c.bf16 %v2516_v31, %v2515_v35  ;;  %v2517_v25 = vld [vmem:[%s6698_s14 + $0xc8] sm:$0xff] }
 0x36d   : > { %v2782_v7 = vadd.f32 %v7756_v41, %v2737_v27  ;;  %2672 = vmatmul.bf16.gmra.mxu0 %v2546_v6  ;;  %v2518_v27 = vld [vmem:[%s6698_s14 + $0xd0] sm:$0xff] }
 0x36f   : > { %v2823_v9 = vmax.f32 %v2782_v7, 0.0 }
 0x371   : > { %2865 = vst.msk [vmem:[#allocation2] sm:$0xff] %vm2864_vm0, %v2823_v9  ;;  %v6480_v9 = vld [vmem:[%s8852_s3 + $0x48] sm:$0xff] }
 0x372   : > { %v2635_v44 = vpop.f32.mrf.mxu0  ;;  %3698 = vmatpush.bf16.msrb.mxu3 %v6480_v9 }
 0x373   : > { %v2738_v50 = vadd.f32 %v2635_v44, %v7369_v0 }
 0x375   : > { %v2783_v11 = vadd.f32 %v7756_v41, %v2738_v50 }
 0x377   : > { %v2824_v45 = vmax.f32 %v2783_v11, 0.0 }
 0x379   : > { %2866 = vst.msk [vmem:[#allocation2 + $0x8] sm:$0xff] %vm2864_vm0, %v2824_v45 }
 0x37a   : > { %v2638_v54 = vpop.f32.mrf.mxu0 }
 0x37b   : > { %v2739_v34 = vadd.f32 %v2638_v54, %v7380_v56  ;;  %v2548_v56 = vpack.c.bf16 %v2518_v27, %v2517_v25  ;;  %v2520_v25 = vld [vmem:[%s6698_s14 + $0xe0] sm:$0xff] }
 0x37d   : > { %v2784_v38 = vadd.f32 %v7756_v41, %v2739_v34  ;;  %2677 = vmatmul.bf16.gmra.mxu0 %v2547_v36  ;;  %v2907_v36 = vld [vmem:[#allocation2] sm:$0xff] }
 0x37f   : > { %v2825_v3 = vmax.f32 %v2784_v38, 0.0 }
 0x380   : > { %v2945_v35 = vld [vmem:[#allocation2 + $0x1] sm:$0xff] }
 0x381   : > { %2867 = vst.msk [vmem:[#allocation2 + $0x10] sm:$0xff] %vm2864_vm0, %v2825_v3  ;;  %v2983_v34 = vmax.f32 %v2907_v36, %v2945_v35  ;;  %v6490_v36 = vld [vmem:[%s8852_s3 + $0x98] sm:$0xff] }
 0x382   : > { %v2640_v0 = vpop.f32.mrf.mxu0  ;;  %4118 = vmatpush.bf16.msrb.mxu2 %v6490_v36 }
 0x383   : > { %v2740_v6 = vadd.f32 %v2640_v0, %v7394_v62  ;;  %v6479_v62 = vld [vmem:[%s8852_s3 + $0x40] sm:$0xff] }
 0x384   : > { %3699 = vmatpush.bf16.msrb.mxu3 %v6479_v62 }
 0x385   : > { %v2785_v43 = vadd.f32 %v7756_v41, %v2740_v6 }
 0x387   : > { %v2826_v7 = vmax.f32 %v2785_v43, 0.0  ;;  %v2519_v43 = vld [vmem:[%s6698_s14 + $0xd8] sm:$0xff] }
 0x388   : > { %v2946_v27 = vld [vmem:[#allocation2 + $0x9] sm:$0xff] }
 0x389   : > { %2868 = vst.msk [vmem:[#allocation2 + $0x18] sm:$0xff] %vm2864_vm0, %v2826_v7 }
 0x38a   : > { %v2643_v44 = vpop.f32.mrf.mxu0 }
 0x38b   : > { %v2741_v50 = vadd.f32 %v2643_v44, %v7409_v5 }
 0x38d   : > { %v2786_v11 = vadd.f32 %v7756_v41, %v2741_v50  ;;  %2682 = vmatmul.bf16.gmra.mxu0 %v2548_v56  ;;  %v2908_v56 = vld [vmem:[#allocation2 + $0x8] sm:$0xff]  ;;  %v2549_v50 = vpack.c.bf16 %v2520_v25, %v2519_v43 }
 0x38e   : > { %v2984_v62 = vmax.f32 %v2908_v56, %v2946_v27 }
 0x38f   : > { %v2827_v31 = vmax.f32 %v2786_v11, 0.0 }
 0x390   : > { %v3021_v45 = vld [vmem:[#allocation2 + $0x13] sm:$0xff] }
 0x391   : > { %v3059_v54 = vld [vmem:[#allocation2 + $0x14] sm:$0xff]  ;;  %2869 = vst.msk [vmem:[#allocation2 + $0x20] sm:$0xff] %vm2864_vm0, %v2827_v31 }
 0x392   : > { %v3097_v38 = vmax.f32 %v3021_v45, %v3059_v54  ;;  %v2645_v5 = vpop.f32.mrf.mxu0  ;;  %v6486_v54 = vld [vmem:[%s8852_s3 + $0x78] sm:$0xff] }
 0x393   : > { %v2742_v3 = vadd.f32 %v2645_v5, %v7424_v23  ;;  %3907 = vmatpush.bf16.msrb.mxu1 %v6486_v54 }
 0x394   : > { %v3135_v0 = vmax.f32 %v2983_v34, %v3097_v38  ;;  %v2947_v34 = vld [vmem:[#allocation2 + $0x11] sm:$0xff] }
 0x395   : > { %v2787_v6 = vadd.f32 %v7756_v41, %v2742_v3 }
 0x396   : > { %3173 = vst.msk [vmem:[#allocation3] sm:$0xff] %vm2864_vm0, %v3135_v0 }
 0x397   : > { %v2828_v7 = vmax.f32 %v2787_v6, 0.0 }
 0x398   : > { %v3022_v9 = vld [vmem:[#allocation2 + $0x1b] sm:$0xff] }
 0x399   : > { %v3060_v44 = vld [vmem:[#allocation2 + $0x1c] sm:$0xff]  ;;  %2870 = vst.msk [vmem:[#allocation2 + $0x28] sm:$0xff] %vm2864_vm0, %v2828_v7 }
 0x39a   : > { %v3098_v11 = vmax.f32 %v3022_v9, %v3060_v44  ;;  %v2648_v35 = vpop.f32.mrf.mxu0 }
 0x39b   : > { %v2743_v23 = vadd.f32 %v2648_v35, %v7436_v12  ;;  %v2909_v12 = vld [vmem:[#allocation2 + $0x10] sm:$0xff] }
 0x39c   : > { %v3136_v31 = vmax.f32 %v2984_v62, %v3098_v11  ;;  %v2985_v0 = vmax.f32 %v2909_v12, %v2947_v34  ;;  %v2522_v62 = vld [vmem:[%s6698_s14 + $0xf0] sm:$0xff]  ;;  %v2948_v11 = vld [vmem:[#allocation2 + $0x19] sm:$0xff] }
 0x39d   : > { %v2788_v45 = vadd.f32 %v7756_v41, %v2743_v23  ;;  %2687 = vmatmul.bf16.gmra.mxu0 %v2549_v50  ;;  %v3212_v9 = vld [vmem:[#allocation3] sm:$0xff] }
 0x39e   : > { %3174 = vst.msk [vmem:[#allocation3 + $0x8] sm:$0xff] %vm2864_vm0, %v3136_v31  ;;  %v2521_v50 = vld [vmem:[%s6698_s14 + $0xe8] sm:$0xff]  ;;  %v2910_v31 = vld [vmem:[#allocation2 + $0x18] sm:$0xff] }
 0x39f   : > { %v2829_v38 = vmax.f32 %v2788_v45, 0.0  ;;  %v2986_v36 = vmax.f32 %v2910_v31, %v2948_v11 }
 0x3a0   : > { %v3023_v5 = vld [vmem:[#allocation2 + $0x23] sm:$0xff] }
 0x3a1   : > { %v3061_v3 = vld [vmem:[#allocation2 + $0x24] sm:$0xff]  ;;  %2871 = vst.msk [vmem:[#allocation2 + $0x30] sm:$0xff] %vm2864_vm0, %v2829_v38 }
 0x3a2   : > { %v3099_v6 = vmax.f32 %v3023_v5, %v3061_v3  ;;  %v2650_v43 = vpop.f32.mrf.mxu0 }
 0x3a3   : > { %v2744_v25 = vadd.f32 %v2650_v43, %v7447_v26  ;;  %v2550_v26 = vpack.c.bf16 %v2522_v62, %v2521_v50 }
 0x3a4   : > { %v3137_v27 = vmax.f32 %v2985_v0, %v3099_v6 }
 0x3a5   : > { %v2789_v7 = vadd.f32 %v7756_v41, %v2744_v25  ;;  %v3213_v56 = vld [vmem:[#allocation3 + $0x8] sm:$0xff] }
 0x3a6   : > { %3175 = vst.msk [vmem:[#allocation3 + $0x10] sm:$0xff] %vm2864_vm0, %v3137_v27  ;;  %v3238_v44 = vpack.c.bf16 %v3213_v56, %v3212_v9  ;;  %v3259_v12 = vld [vmem:[#allocation3 + $0x2] sm:$0xff] }
 0x3a7   : > { %v2830_v35 = vmax.f32 %v2789_v7, 0.0  ;;  %v3581_v6 = vld [vmem:[#allocation3 + $0x4] sm:$0xff]  ;;  %v2949_v7 = vld [vmem:[#allocation2 + $0x21] sm:$0xff] }
 0x3a8   : > { %v3024_v23 = vld [vmem:[#allocation2 + $0x2b] sm:$0xff]  ;;  %6052 = vmatmul.msk.bf16.vlgmr.msra.gmra.mxu2 %vm2864_vm0, %v3238_v44 }
 0x3a9   : > { %v3062_v45 = vld [vmem:[#allocation2 + $0x2c] sm:$0xff]  ;;  %2872 = vst.msk [vmem:[#allocation2 + $0x38] sm:$0xff] %vm2864_vm0, %v2830_v35 }
 0x3aa   : > { %v3100_v54 = vmax.f32 %v3024_v23, %v3062_v45  ;;  %v2653_v34 = vpop.f32.mrf.mxu0 }
 0x3ab   : > { %v2745_v38 = vadd.f32 %v2653_v34, %v7455_v55  ;;  %v2911_v55 = vld [vmem:[#allocation2 + $0x20] sm:$0xff] }
 0x3ac   : > { %v3138_v5 = vmax.f32 %v2986_v36, %v3100_v54  ;;  %v2987_v50 = vmax.f32 %v2911_v55, %v2949_v7  ;;  %v2523_v54 = vld [vmem:[%s6698_s14 + $0xf8] sm:$0xff]  ;;  %v2524_v34 = vld [vmem:[%s6698_s14 + $0x100] sm:$0xff] }
 0x3ad   : > { %v2790_v3 = vadd.f32 %v7756_v41, %v2745_v38  ;;  %2692 = vmatmul.bf16.gmra.mxu0 %v2550_v26  ;;  %v3260_v0 = vld [vmem:[#allocation3 + $0xa] sm:$0xff]  ;;  %v2950_v38 = vld [vmem:[#allocation2 + $0x29] sm:$0xff] }
 0x3ae   : > { %v3582_v43 = vld [vmem:[#allocation3 + $0xc] sm:$0xff]  ;;  %3176 = vst.msk [vmem:[#allocation3 + $0x18] sm:$0xff] %vm2864_vm0, %v3138_v5  ;;  %v3285_v25 = vpack.c.bf16 %v3260_v0, %v3259_v12 }
 0x3af   : > { %v3607_v27 = vpack.c.bf16 %v3582_v43, %v3581_v6  ;;  %v2831_v9 = vmax.f32 %v2790_v3, 0.0  ;;  %v3214_v45 = vld [vmem:[#allocation3 + $0x10] sm:$0xff]  ;;  %v2912_v3 = vld [vmem:[#allocation2 + $0x28] sm:$0xff] }
 0x3b0   : > { %v3025_v56 = vld [vmem:[#allocation2 + $0x33] sm:$0xff]  ;;  %6023 = vmatmul.msk.bf16.vlgmr.msra.gmra.mxu1 %vm2864_vm0, %v3285_v25  ;;  %v2988_v6 = vmax.f32 %v2912_v3, %v2950_v38 }
 0x3b1   : > { %6089 = vmatmul.msk.bf16.vlgmr.msrb.gmra.mxu3 %vm2864_vm0, %v3607_v27  ;;  %v3063_v44 = vld [vmem:[#allocation2 + $0x34] sm:$0xff]  ;;  %2873 = vst.msk [vmem:[#allocation2 + $0x40] sm:$0xff] %vm2864_vm0, %v2831_v9 }
 0x3b2   : > { %v3101_v62 = vmax.f32 %v3025_v56, %v3063_v44  ;;  %v2655_v11 = vpop.f32.mrf.mxu0 }
 0x3b3   : > { %v2746_v35 = vadd.f32 %v2655_v11, %v7470_v21  ;;  %v2551_v21 = vpack.c.bf16 %v2524_v34, %v2523_v54 }
 0x3b4   : > { %v3139_v23 = vmax.f32 %v2987_v50, %v3101_v62 }
 0x3b5   : > { %v2791_v31 = vadd.f32 %v7756_v41, %v2746_v35  ;;  %v3215_v26 = vld [vmem:[#allocation3 + $0x18] sm:$0xff]  ;;  %v2951_v35 = vld [vmem:[#allocation2 + $0x31] sm:$0xff] }
 0x3b6   : > { %3177 = vst.msk [vmem:[#allocation3 + $0x20] sm:$0xff] %vm2864_vm0, %v3139_v23  ;;  %v3239_v36 = vpack.c.bf16 %v3215_v26, %v3214_v45  ;;  %v3261_v9 = vld [vmem:[#allocation3 + $0x12] sm:$0xff] }
 0x3b7   : > { %v2832_v5 = vmax.f32 %v2791_v31, 0.0  ;;  %v3583_v44 = vld [vmem:[#allocation3 + $0x14] sm:$0xff] }
 0x3b8   : > { %v3026_v12 = vld [vmem:[#allocation2 + $0x3b] sm:$0xff]  ;;  %6053 = vmatmul.msk.bf16.gmra.mxu2 %vm2864_vm0, %v3239_v36 }
 0x3b9   : > { %v3064_v0 = vld [vmem:[#allocation2 + $0x3c] sm:$0xff]  ;;  %2874 = vst.msk [vmem:[#allocation2 + $0x48] sm:$0xff] %vm2864_vm0, %v2832_v5 }
 0x3ba   : > { %v3102_v43 = vmax.f32 %v3026_v12, %v3064_v0  ;;  %v2658_v25 = vpop.f32.mrf.mxu0 }
 0x3bb   : > { %v2747_v27 = vadd.f32 %v2658_v25, %v7478_v29  ;;  %v2913_v29 = vld [vmem:[#allocation2 + $0x30] sm:$0xff] }
 0x3bc   : > { %v3140_v7 = vmax.f32 %v2988_v6, %v3102_v43  ;;  %v2989_v26 = vmax.f32 %v2913_v29, %v2951_v35  ;;  %v2526_v6 = vld [vmem:[%s6698_s14 + $0x110] sm:$0xff]  ;;  %v2952_v43 = vld [vmem:[#allocation2 + $0x39] sm:$0xff] }
 0x3bd   : > { %v2792_v56 = vadd.f32 %v7756_v41, %v2747_v27  ;;  %2697 = vmatmul.bf16.gmra.mxu0 %v2551_v21  ;;  %v3262_v55 = vld [vmem:[#allocation3 + $0x1a] sm:$0xff] }
 0x3be   : > { %v3584_v50 = vld [vmem:[#allocation3 + $0x1c] sm:$0xff]  ;;  %3178 = vst.msk [vmem:[#allocation3 + $0x28] sm:$0xff] %vm2864_vm0, %v3140_v7  ;;  %v3286_v62 = vpack.c.bf16 %v3262_v55, %v3261_v9  ;;  %v2914_v7 = vld [vmem:[#allocation2 + $0x38] sm:$0xff] }
 0x3bf   : > { %v3608_v11 = vpack.c.bf16 %v3584_v50, %v3583_v44  ;;  %v2833_v23 = vmax.f32 %v2792_v56, 0.0  ;;  %v3216_v12 = vld [vmem:[#allocation3 + $0x20] sm:$0xff]  ;;  %v2990_v56 = vmax.f32 %v2914_v7, %v2952_v43 }
 0x3c0   : > { %v3027_v31 = vld [vmem:[#allocation2 + $0x43] sm:$0xff]  ;;  %6024 = vmatmul.msk.bf16.gmra.mxu1 %vm2864_vm0, %v3286_v62 }
 0x3c1   : > { %6090 = vmatmul.msk.bf16.gmra.mxu3 %vm2864_vm0, %v3608_v11  ;;  %v3065_v45 = vld [vmem:[#allocation2 + $0x44] sm:$0xff]  ;;  %2875 = vst.msk [vmem:[#allocation2 + $0x50] sm:$0xff] %vm2864_vm0, %v2833_v23 }
 0x3c2   : > { %v3103_v36 = vmax.f32 %v3027_v31, %v3065_v45  ;;  %v2660_v54 = vpop.f32.mrf.mxu0  ;;  %v2525_v21 = vld [vmem:[%s6698_s14 + $0x108] sm:$0xff] }
 0x3c3   : > { %v2748_v34 = vadd.f32 %v2660_v54, %v7491_v51  ;;  %v2552_v51 = vpack.c.bf16 %v2526_v6, %v2525_v21  ;;  %v2953_v54 = vld [vmem:[#allocation2 + $0x41] sm:$0xff] }
 0x3c4   : > { %v3141_v38 = vmax.f32 %v2989_v26, %v3103_v36  ;;  %v6489_v36 = vld [vmem:[%s8852_s3 + $0x90] sm:$0xff] }
 0x3c5   : > { %v2793_v5 = vadd.f32 %v7756_v41, %v2748_v34  ;;  %v3217_v3 = vld [vmem:[#allocation3 + $0x28] sm:$0xff]  ;;  %4119 = vmatpush.bf16.msrb.mxu2 %v6489_v36 }
 0x3c6   : > { %3179 = vst.msk [vmem:[#allocation3 + $0x30] sm:$0xff] %vm2864_vm0, %v3141_v38  ;;  %v3240_v0 = vpack.c.bf16 %v3217_v3, %v3216_v12  ;;  %v3263_v11 = vld [vmem:[#allocation3 + $0x22] sm:$0xff] }
 0x3c7   : > { %v2834_v25 = vmax.f32 %v2793_v5, 0.0  ;;  %v3585_v31 = vld [vmem:[#allocation3 + $0x24] sm:$0xff] }
 0x3c8   : > { %v3028_v27 = vld [vmem:[#allocation2 + $0x4b] sm:$0xff]  ;;  %6054 = vmatmul.msk.bf16.gmra.mxu2 %vm2864_vm0, %v3240_v0 }
 0x3c9   : > { %v3066_v9 = vld [vmem:[#allocation2 + $0x4c] sm:$0xff]  ;;  %2876 = vst.msk [vmem:[#allocation2 + $0x58] sm:$0xff] %vm2864_vm0, %v2834_v25 }
 0x3ca   : > { %v3104_v55 = vmax.f32 %v3028_v27, %v3066_v9  ;;  %v2663_v44 = vpop.f32.mrf.mxu0  ;;  %v2527_v9 = vld [vmem:[%s6698_s14 + $0x118] sm:$0xff] }
 0x3cb   : > { %v2749_v50 = vadd.f32 %v2663_v44, %v7502_v1  ;;  %v2915_v1 = vld [vmem:[#allocation2 + $0x40] sm:$0xff] }
 0x3cc   : > { %v3142_v62 = vmax.f32 %v2990_v56, %v3104_v55  ;;  %v2991_v12 = vmax.f32 %v2915_v1, %v2953_v54  ;;  %v6485_v56 = vld [vmem:[%s8852_s3 + $0x70] sm:$0xff] }
 0x3cd   : > { %v2794_v35 = vadd.f32 %v7756_v41, %v2749_v50  ;;  %2702 = vmatmul.bf16.gmra.mxu0 %v2552_v51  ;;  %v3264_v23 = vld [vmem:[#allocation3 + $0x2a] sm:$0xff]  ;;  %v2528_v51 = vld [vmem:[%s6698_s14 + $0x120] sm:$0xff]  ;;  %v2954_v55 = vld [vmem:[#allocation2 + $0x49] sm:$0xff]  ;;  %3908 = vmatpush.bf16.msrb.mxu1 %v6485_v56 }
 0x3ce   : > { %v3586_v29 = vld [vmem:[#allocation3 + $0x2c] sm:$0xff]  ;;  %3180 = vst.msk [vmem:[#allocation3 + $0x38] sm:$0xff] %vm2864_vm0, %v3142_v62  ;;  %v3287_v45 = vpack.c.bf16 %v3264_v23, %v3263_v11  ;;  %v2553_v11 = vpack.c.bf16 %v2528_v51, %v2527_v9 }
 0x3cf   : > { %v3609_v26 = vpack.c.bf16 %v3586_v29, %v3585_v31  ;;  %v2835_v34 = vmax.f32 %v2794_v35, 0.0  ;;  %v3218_v25 = vld [vmem:[#allocation3 + $0x30] sm:$0xff] }
 0x3d0   : > { %v3029_v38 = vld [vmem:[#allocation2 + $0x53] sm:$0xff]  ;;  %6025 = vmatmul.msk.bf16.gmra.mxu1 %vm2864_vm0, %v3287_v45 }
 0x3d1   : > { %6091 = vmatmul.msk.bf16.gmra.mxu3 %vm2864_vm0, %v3609_v26  ;;  %v3067_v5 = vld [vmem:[#allocation2 + $0x54] sm:$0xff]  ;;  %2877 = vst.msk [vmem:[#allocation2 + $0x60] sm:$0xff] %vm2864_vm0, %v2835_v34 }
 0x3d2   : > { %v3105_v3 = vmax.f32 %v3029_v38, %v3067_v5  ;;  %v2665_v0 = vpop.f32.mrf.mxu0 }
 0x3d3   : > { %v2750_v21 = vadd.f32 %v2665_v0, %v7517_v30  ;;  %v2916_v30 = vld [vmem:[#allocation2 + $0x48] sm:$0xff] }
 0x3d4   : > { %v3143_v6 = vmax.f32 %v2991_v12, %v3105_v3  ;;  %v2992_v35 = vmax.f32 %v2916_v30, %v2954_v55  ;;  %v2955_v12 = vld [vmem:[#allocation2 + $0x51] sm:$0xff] }
 0x3d5   : > { %v2795_v43 = vadd.f32 %v7756_v41, %v2750_v21  ;;  %v3219_v27 = vld [vmem:[#allocation3 + $0x38] sm:$0xff] }
 0x3d6   : > { %3181 = vst.msk [vmem:[#allocation3 + $0x40] sm:$0xff] %vm2864_vm0, %v3143_v6  ;;  %v3241_v7 = vpack.c.bf16 %v3219_v27, %v3218_v25  ;;  %v3265_v26 = vld [vmem:[#allocation3 + $0x32] sm:$0xff] }
 0x3d7   : > { %v2836_v44 = vmax.f32 %v2795_v43, 0.0  ;;  %v3587_v34 = vld [vmem:[#allocation3 + $0x34] sm:$0xff] }
 0x3d8   : > { %v3030_v50 = vld [vmem:[#allocation2 + $0x5b] sm:$0xff]  ;;  %6055 = vmatmul.msk.bf16.gmra.mxu2 %vm2864_vm0, %v3241_v7 }
 0x3d9   : > { %v3068_v62 = vld [vmem:[#allocation2 + $0x5c] sm:$0xff]  ;;  %2878 = vst.msk [vmem:[#allocation2 + $0x68] sm:$0xff] %vm2864_vm0, %v2836_v44  ;;  %v2529_v44 = vld [vmem:[%s6698_s14 + $0x128] sm:$0xff] }
 0x3da   : > { %v3106_v23 = vmax.f32 %v3030_v50, %v3068_v62  ;;  %v2668_v31 = vpop.f32.mrf.mxu0  ;;  %v2530_v50 = vld [vmem:[%s6698_s14 + $0x130] sm:$0xff]  ;;  %v2956_v30 = vld [vmem:[#allocation2 + $0x59] sm:$0xff] }
 0x3db   : > { %v2751_v29 = vadd.f32 %v2668_v31, %v7530_v28  ;;  %v2917_v28 = vld [vmem:[#allocation2 + $0x50] sm:$0xff] }
 0x3dc   : > { %v3144_v45 = vmax.f32 %v2992_v35, %v3106_v23  ;;  %v2993_v6 = vmax.f32 %v2917_v28, %v2955_v12  ;;  %v2918_v35 = vld [vmem:[#allocation2 + $0x58] sm:$0xff] }
 0x3dd   : > { %v2796_v36 = vadd.f32 %v7756_v41, %v2751_v29  ;;  %2707 = vmatmul.bf16.gmra.mxu0 %v2553_v11  ;;  %v3266_v54 = vld [vmem:[#allocation3 + $0x3a] sm:$0xff]  ;;  %v2994_v31 = vmax.f32 %v2918_v35, %v2956_v30 }
 0x3de   : > { %v3588_v38 = vld [vmem:[#allocation3 + $0x3c] sm:$0xff]  ;;  %3182 = vst.msk [vmem:[#allocation3 + $0x48] sm:$0xff] %vm2864_vm0, %v3144_v45  ;;  %v3288_v1 = vpack.c.bf16 %v3266_v54, %v3265_v26 }
 0x3df   : > { %v3610_v5 = vpack.c.bf16 %v3588_v38, %v3587_v34  ;;  %v2837_v3 = vmax.f32 %v2796_v36, 0.0  ;;  %v3220_v51 = vld [vmem:[#allocation3 + $0x40] sm:$0xff] }
 0x3e0   : > { %v3031_v0 = vld [vmem:[#allocation2 + $0x63] sm:$0xff]  ;;  %6026 = vmatmul.msk.bf16.gmra.mxu1 %vm2864_vm0, %v3288_v1 }
 0x3e1   : > { %6092 = vmatmul.msk.bf16.gmra.mxu3 %vm2864_vm0, %v3610_v5  ;;  %v3069_v21 = vld [vmem:[#allocation2 + $0x64] sm:$0xff]  ;;  %2879 = vst.msk [vmem:[#allocation2 + $0x70] sm:$0xff] %vm2864_vm0, %v2837_v3 }
 0x3e2   : > { %v3107_v43 = vmax.f32 %v3031_v0, %v3069_v21  ;;  %v2670_v25 = vpop.f32.mrf.mxu0  ;;  %v6498_v0 = vld [vmem:[%s8852_s3 + $0xd8] sm:$0xff] }
 0x3e3   : > { %v2752_v27 = vadd.f32 %v2670_v25, %v7548_v47  ;;  %v2554_v47 = vpack.c.bf16 %v2530_v50, %v2529_v44  ;;  %4540 = vmatpush.bf16.msra.mxu0 %v6498_v0 }
 0x3e4   : > { %v3145_v7 = vmax.f32 %v2993_v6, %v3107_v43  ;;  %v2919_v6 = vld [vmem:[#allocation2 + $0x60] sm:$0xff] }
 0x3e5   : > { %v2797_v9 = vadd.f32 %v7756_v41, %v2752_v27  ;;  %v3221_v56 = vld [vmem:[#allocation3 + $0x48] sm:$0xff] }
 0x3e6   : > { %3183 = vst.msk [vmem:[#allocation3 + $0x50] sm:$0xff] %vm2864_vm0, %v3145_v7  ;;  %v3242_v55 = vpack.c.bf16 %v3221_v56, %v3220_v51  ;;  %v3267_v54 = vld [vmem:[#allocation3 + $0x42] sm:$0xff]  ;;  %v2531_v56 = vld [vmem:[%s6698_s14 + $0x138] sm:$0xff] }
 0x3e7   : > { %v2838_v62 = vmax.f32 %v2797_v9, 0.0  ;;  %v3589_v1 = vld [vmem:[#allocation3 + $0x44] sm:$0xff] }
 0x3e8   : > { %v3032_v11 = vld [vmem:[#allocation2 + $0x6b] sm:$0xff]  ;;  %6056 = vmatmul.msk.bf16.gmra.mxu2 %vm2864_vm0, %v3242_v55  ;;  %v2532_v55 = vld [vmem:[%s6698_s14 + $0x140] sm:$0xff] }
 0x3e9   : > { %v3070_v23 = vld [vmem:[#allocation2 + $0x6c] sm:$0xff]  ;;  %2880 = vst.msk [vmem:[#allocation2 + $0x78] sm:$0xff] %vm2864_vm0, %v2838_v62 }
 0x3ea   : > { %v3108_v29 = vmax.f32 %v3032_v11, %v3070_v23  ;;  %v2673_v45 = vpop.f32.mrf.mxu0 }
 0x3eb   : > { %v2753_v26 = vadd.f32 %v2673_v45, %v7554_v61  ;;  %v2957_v61 = vld [vmem:[#allocation2 + $0x61] sm:$0xff] }
 0x3ec   : > { %v3146_v36 = vmax.f32 %v2994_v31, %v3108_v29  ;;  %v2995_v25 = vmax.f32 %v2919_v6, %v2957_v61  ;;  %v2958_v31 = vld [vmem:[#allocation2 + $0x69] sm:$0xff] }
 0x3ed   : > { %v2798_v34 = vadd.f32 %v7756_v41, %v2753_v26  ;;  %2712 = vmatmul.bf16.gmra.mxu0 %v2554_v47  ;;  %v3268_v38 = vld [vmem:[#allocation3 + $0x4a] sm:$0xff] }
 0x3ee   : > { %v7866_v5 = vld [vmem:[#allocation3 + $0x4c] sm:$0xff]  ;;  %3184 = vst.msk [vmem:[#allocation3 + $0x58] sm:$0xff] %vm2864_vm0, %v3146_v36  ;;  %v3289_v12 = vpack.c.bf16 %v3268_v38, %v3267_v54  ;;  %v1913_v36 = vadd.f32 %v7539_v40, %v7582_v49  ;;  %v2920_v54 = vld [vmem:[#allocation2 + $0x68] sm:$0xff]  ;;  %v2555_v38 = vpack.c.bf16 %v2532_v55, %v2531_v56 }
 0x3ef   : > { %v3611_v3 = vpack.c.bf16 %v7866_v5, %v3589_v1  ;;  %v2839_v28 = vmax.f32 %v2798_v34, 0.0  ;;  %v3222_v50 = vld [vmem:[#allocation3 + $0x50] sm:$0xff]  ;;  %v2996_v1 = vmax.f32 %v2920_v54, %v2958_v31  ;;  %v2533_v31 = vld [vmem:[%s6698_s14 + $0x148] sm:$0xff] }
 0x3f0   : > { %v3033_v21 = vld [vmem:[#allocation2 + $0x73] sm:$0xff]  ;;  %6027 = vmatmul.msk.bf16.gmra.mxu1 %vm2864_vm0, %v3289_v12 }
 0x3f1   : > { %6093 = vmatmul.msk.bf16.gmra.mxu3 %vm2864_vm0, %v3611_v3  ;;  %v3071_v43 = vld [vmem:[#allocation2 + $0x74] sm:$0xff]  ;;  %2881 = vst.msk [vmem:[#allocation2 + $0x80] sm:$0xff] %vm2864_vm0, %v2839_v28 }
 0x3f2   : > { %v3109_v27 = vmax.f32 %v3033_v21, %v3071_v43  ;;  %v2675_v7 = vpop.f32.mrf.mxu0  ;;  %v7880_v62 = vld [vmem:[#allocation3 + $0x50] sm:$0xff]  ;;  %v2194_v21 = vadd.f32 %v7544_v24, %v1913_v36 }
 0x3f3   : > { %v2754_v9 = vadd.f32 %v2675_v7, %v7572_v57  ;;  %v7883_v35 = vld [vmem:[#allocation3 + $0x4e] sm:$0xff] }
 0x3f4   : > { %v3147_v51 = vmax.f32 %v2995_v25, %v3109_v27  ;;  %8915 = vst [vmem:[#allocation10_spill] sm:$0xff] %v7883_v35  ;;  %v2475_v24 = vadd.f32 %v7592_v22, %v2194_v21  ;;  %v6488_v22 = vld [vmem:[%s8852_s3 + $0x88] sm:$0xff] }
 0x3f5   : > { %v2799_v44 = vadd.f32 %v7756_v41, %v2754_v9  ;;  %v3223_v30 = vld [vmem:[#allocation3 + $0x58] sm:$0xff]  ;;  %4120 = vmatpush.bf16.msrb.mxu2 %v6488_v22 }
 0x3f6   : > { %3185 = vst.msk [vmem:[#allocation3 + $0x60] sm:$0xff] %vm2864_vm0, %v3147_v51  ;;  %v3243_v11 = vpack.c.bf16 %v3223_v30, %v3222_v50  ;;  %v7885_v23 = vld [vmem:[#allocation3 + $0x58] sm:$0xff]  ;;  %v2921_v51 = vld [vmem:[#allocation2 + $0x70] sm:$0xff] }
 0x3f7   : > { %v7887_v47 = vld [vmem:[#allocation3 + $0x56] sm:$0xff]  ;;  %v2840_v57 = vmax.f32 %v2799_v44, 0.0 }
 0x3f8   : > { %8916 = vst [vmem:[#allocation11_spill] sm:$0xff] %v7887_v47  ;;  %v3034_v26 = vld [vmem:[#allocation2 + $0x7b] sm:$0xff]  ;;  %6057 = vmatmul.msk.bf16.gmra.mxu2 %vm2864_vm0, %v3243_v11 }
 0x3f9   : > { %v3072_v34 = vld [vmem:[#allocation2 + $0x7c] sm:$0xff]  ;;  %2882 = vst.msk [vmem:[#allocation2 + $0x88] sm:$0xff] %vm2864_vm0, %v2840_v57  ;;  %v2534_v57 = vld [vmem:[%s6698_s14 + $0x150] sm:$0xff] }
 0x3fa   : > { %v3110_v12 = vmax.f32 %v3034_v26, %v3072_v34  ;;  %v2678_v3 = vpop.f32.mrf.mxu0  ;;  %v3269_v28 = vld [vmem:[#allocation3 + $0x52] sm:$0xff] }
 0x3fb   : > { %v2755_v0 = vadd.f32 %v2678_v3, %v7579_v58  ;;  %v7900_v25 = vld [vmem:[#allocation3 + $0x54] sm:$0xff]  ;;  %v2959_v58 = vld [vmem:[#allocation2 + $0x71] sm:$0xff] }
 0x3fc   : > { %v3148_v61 = vmax.f32 %v2996_v1, %v3110_v12  ;;  %v2997_v55 = vmax.f32 %v2921_v51, %v2959_v58  ;;  %v2960_v26 = vld [vmem:[#allocation2 + $0x79] sm:$0xff]  ;;  %v6484_v1 = vld [vmem:[%s8852_s3 + $0x68] sm:$0xff] }
 0x3fd   : > { %v2800_v6 = vadd.f32 %v7756_v41, %v2755_v0  ;;  %2717 = vmatmul.bf16.gmra.mxu0 %v2555_v38  ;;  %v3270_v43 = vld [vmem:[#allocation3 + $0x5a] sm:$0xff]  ;;  %3909 = vmatpush.bf16.msrb.mxu1 %v6484_v1 }
 0x3fe   : > { %v7902_v40 = vld [vmem:[#allocation3 + $0x5c] sm:$0xff]  ;;  %3186 = vst.msk [vmem:[#allocation3 + $0x68] sm:$0xff] %vm2864_vm0, %v3148_v61  ;;  %v3290_v49 = vpack.c.bf16 %v3270_v43, %v3269_v28 }
 0x3ff   : > { %v3612_v27 = vpack.c.bf16 %v7902_v40, %v7900_v25  ;;  %v2841_v7 = vmax.f32 %v2800_v6, 0.0  ;;  %v3224_v54 = vld [vmem:[#allocation3 + $0x60] sm:$0xff] }
 0x400   : > { %v3035_v9 = vld [vmem:[#allocation2 + $0x83] sm:$0xff]  ;;  %6028 = vmatmul.msk.bf16.gmra.mxu1 %vm2864_vm0, %v3290_v49  ;;  %v1915_v49 = vadd.f32 %v7563_v17, %v7600_v2 }
 0x401   : > { %6094 = vmatmul.msk.bf16.gmra.mxu3 %vm2864_vm0, %v3612_v27  ;;  %v3073_v56 = vld [vmem:[#allocation2 + $0x84] sm:$0xff]  ;;  %2883 = vst.msk [vmem:[#allocation2 + $0x90] sm:$0xff] %vm2864_vm0, %v2841_v7  ;;  %v2922_v27 = vld [vmem:[#allocation2 + $0x78] sm:$0xff]  ;;  %v2556_v7 = vpack.c.bf16 %v2534_v57, %v2533_v31 }
 0x402   : > { %v3111_v44 = vmax.f32 %v3035_v9, %v3073_v56  ;;  %v2680_v50 = vpop.f32.mrf.mxu0  ;;  %v7921_v12 = vld [vmem:[#allocation3 + $0x60] sm:$0xff]  ;;  %v2998_v9 = vmax.f32 %v2922_v27, %v2960_v26  ;;  %v2535_v27 = vld [vmem:[%s6698_s14 + $0x158] sm:$0xff] }
 0x403   : > { %v2756_v30 = vadd.f32 %v2680_v50, %v2475_v24  ;;  %8917 = vst [vmem:[#allocation35_spill] sm:$0xff] %v7921_v12  ;;  %v7923_v0 = vld [vmem:[#allocation3 + $0x5e] sm:$0xff]  ;;  %v2196_v50 = vadd.f32 %v7568_v32, %v1915_v49 }
 0x404   : > { %v3149_v11 = vmax.f32 %v2997_v55, %v3111_v44  ;;  %8918 = vst [vmem:[#allocation36_spill] sm:$0xff] %v7923_v0  ;;  %v2961_v26 = vld [vmem:[#allocation2 + $0x81] sm:$0xff] }
 0x405   : > { %v2801_v36 = vadd.f32 %v7756_v41, %v2756_v30  ;;  %v3225_v34 = vld [vmem:[#allocation3 + $0x68] sm:$0xff]  ;;  %v2477_v32 = vadd.f32 %v7610_v52, %v2196_v50  ;;  %v2536_v52 = vld [vmem:[%s6698_s14 + $0x160] sm:$0xff] }
 0x406   : > { %3187 = vst.msk [vmem:[#allocation3 + $0x70] sm:$0xff] %vm2864_vm0, %v3149_v11  ;;  %v3244_v38 = vpack.c.bf16 %v3225_v34, %v3224_v54  ;;  %v7925_v61 = vld [vmem:[#allocation3 + $0x68] sm:$0xff]  ;;  %v2923_v54 = vld [vmem:[#allocation2 + $0x80] sm:$0xff] }
 0x407   : > { %v2842_v3 = vmax.f32 %v2801_v36, 0.0  ;;  %8919 = vst [vmem:[#allocation37_spill] sm:$0xff] %v7925_v61  ;;  %v7927_v28 = vld [vmem:[#allocation3 + $0x66] sm:$0xff]  ;;  %v2999_v22 = vmax.f32 %v2923_v54, %v2961_v26  ;;  %v2557_v54 = vpack.c.bf16 %v2536_v52, %v2535_v27 }
 0x408   : > { %8920 = vst [vmem:[#allocation38_spill] sm:$0xff] %v7927_v28  ;;  %v3036_v21 = vld [vmem:[#allocation2 + $0x8b] sm:$0xff]  ;;  %6058 = vmatmul.msk.bf16.gmra.mxu2 %vm2864_vm0, %v3244_v38 }
 0x409   : > { %v3074_v58 = vld [vmem:[#allocation2 + $0x8c] sm:$0xff]  ;;  %2884 = vst.msk [vmem:[#allocation2 + $0x98] sm:$0xff] %vm2864_vm0, %v2842_v3 }
 0x40a   : > { %v3112_v24 = vmax.f32 %v3036_v21, %v3074_v58  ;;  %v2683_v51 = vpop.f32.mrf.mxu0  ;;  %v3271_v44 = vld [vmem:[#allocation3 + $0x62] sm:$0xff] }
 0x40b   : > { %v2757_v56 = vadd.f32 %v2683_v51, %v7597_v39  ;;  %v7940_v17 = vld [vmem:[#allocation3 + $0x64] sm:$0xff] }
 0x40c   : > { %v3150_v55 = vmax.f32 %v2998_v9, %v3112_v24  ;;  %v6497_v38 = vld [vmem:[%s8852_s3 + $0xd0] sm:$0xff]  ;;  %v6496_v51 = vld [vmem:[%s8852_s3 + $0xc8] sm:$0xff] }
 0x40d   : > { %v2802_v30 = vadd.f32 %v7756_v41, %v2757_v56  ;;  %2722 = vmatmul.bf16.gmra.mxu0 %v2556_v7  ;;  %v3272_v11 = vld [vmem:[#allocation3 + $0x6a] sm:$0xff] }
 0x40e   : > { %v7942_v2 = vld [vmem:[#allocation3 + $0x6c] sm:$0xff]  ;;  %3188 = vst.msk [vmem:[#allocation3 + $0x78] sm:$0xff] %vm2864_vm0, %v3150_v55  ;;  %v3291_v31 = vpack.c.bf16 %v3272_v11, %v3271_v44  ;;  %4541 = vmatpush.bf16.msra.mxu0 %v6497_v38  ;;  %v2962_v44 = vld [vmem:[#allocation2 + $0x89] sm:$0xff] }
 0x40f   : > { %v3613_v57 = vpack.c.bf16 %v7942_v2, %v7940_v17  ;;  %v2843_v39 = vmax.f32 %v2802_v30, 0.0  ;;  %v3226_v7 = vld [vmem:[#allocation3 + $0x70] sm:$0xff] }
 0x410   : > { %v3037_v36 = vld [vmem:[#allocation2 + $0x93] sm:$0xff]  ;;  %6029 = vmatmul.msk.bf16.gmra.mxu1 %vm2864_vm0, %v3291_v31 }
 0x411   : > { %6095 = vmatmul.msk.bf16.gmra.mxu3 %vm2864_vm0, %v3613_v57  ;;  %v3075_v34 = vld [vmem:[#allocation2 + $0x94] sm:$0xff]  ;;  %2885 = vst.msk [vmem:[#allocation2 + $0xa0] sm:$0xff] %vm2864_vm0, %v2843_v39  ;;  %v1917_v39 = vadd.f32 %v7586_v13, %v7616_v33 }
 0x412   : > { %v3113_v1 = vmax.f32 %v3037_v36, %v3075_v34  ;;  %v2685_v3 = vpop.f32.mrf.mxu0  ;;  %v7961_v56 = vld [vmem:[#allocation3 + $0x70] sm:$0xff]  ;;  %4542 = vmatpush.bf16.msra.mxu0 %v6496_v51  ;;  %v2924_v36 = vld [vmem:[#allocation2 + $0x88] sm:$0xff]  ;;  %v6495_v34 = vld [vmem:[%s8852_s3 + $0xc0] sm:$0xff] }
 0x413   : > { %v2758_v21 = vadd.f32 %v2685_v3, %v2477_v32  ;;  %8921 = vst [vmem:[#allocation39_spill] sm:$0xff] %v7961_v56  ;;  %v7965_v30 = vld [vmem:[#allocation3 + $0x6e] sm:$0xff]  ;;  %v3000_v38 = vmax.f32 %v2924_v36, %v2962_v44 }
 0x414   : > { %v3151_v49 = vmax.f32 %v2999_v22, %v3113_v1  ;;  %8923 = vst [vmem:[#allocation41_spill] sm:$0xff] %v7965_v30  ;;  %v2963_v52 = vld [vmem:[#allocation2 + $0x91] sm:$0xff] }
 0x415   : > { %v2803_v58 = vadd.f32 %v7756_v41, %v2758_v21  ;;  %v3227_v9 = vld [vmem:[#allocation3 + $0x78] sm:$0xff]  ;;  %v2925_v44 = vld [vmem:[#allocation2 + $0x90] sm:$0xff] }
 0x416   : > { %3189 = vst.msk [vmem:[#allocation3 + $0x80] sm:$0xff] %vm2864_vm0, %v3151_v49  ;;  %v3245_v24 = vpack.c.bf16 %v3227_v9, %v3226_v7  ;;  %v7963_v55 = vld [vmem:[#allocation3 + $0x78] sm:$0xff]  ;;  %4543 = vmatpush.bf16.msra.mxu0 %v6495_v34  ;;  %v2537_v34 = vld [vmem:[%s6698_s14 + $0x168] sm:$0x1] }
 0x417   : > { %8922 = vst [vmem:[#allocation40_spill] sm:$0xff] %v7963_v55  ;;  %v2844_v50 = vmax.f32 %v2803_v58, 0.0  ;;  %v7967_v11 = vld [vmem:[#allocation3 + $0x76] sm:$0xff]  ;;  %v2198_v58 = vadd.f32 %v7590_v15, %v1917_v39 }
 0x418   : > { %8924 = vst [vmem:[#allocation42_spill] sm:$0xff] %v7967_v11  ;;  %v3038_v57 = vld [vmem:[#allocation2 + $0x9b] sm:$0xff]  ;;  %6059 = vmatmul.msk.bf16.gmra.mxu2 %vm2864_vm0, %v3245_v24 }
 0x419   : > { %v3076_v32 = vld [vmem:[#allocation2 + $0x9c] sm:$0xff]  ;;  %2886 = vst.msk [vmem:[#allocation2 + $0xa8] sm:$0xff] %vm2864_vm0, %v2844_v50  ;;  %v2479_v15 = vadd.f32 %v7624_v46, %v2198_v58 }
 0x41a   : > { %v3114_v22 = vmax.f32 %v3038_v57, %v3076_v32  ;;  %v2688_v1 = vpop.f32.mrf.mxu0  ;;  %v3273_v49 = vld [vmem:[#allocation3 + $0x72] sm:$0xff]  ;;  %v3001_v57 = vmax.f32 %v2925_v44, %v2963_v52 }
 0x41b   : > { %v2759_v3 = vadd.f32 %v2688_v1, %v7613_v14  ;;  %v7983_v7 = vld [vmem:[#allocation3 + $0x74] sm:$0xff] }
 0x41c   : > { %v3152_v21 = vmax.f32 %v3000_v38, %v3114_v22  ;;  %v2926_v44 = vld [vmem:[#allocation2 + $0x98] sm:$0xff] }
 0x41d   : > { %v2804_v13 = vadd.f32 %v7756_v41, %v2759_v3  ;;  %2727 = vmatmul.bf16.gmra.mxu0 %v2557_v54  ;;  %v3274_v33 = vld [vmem:[#allocation3 + $0x7a] sm:$0xff] }
 0x41e   : > { %v7985_v27 = vld [vmem:[#allocation3 + $0x7c] sm:$0xff]  ;;  %3190 = vst.msk [vmem:[#allocation3 + $0x88] sm:$0xff] %vm2864_vm0, %v3152_v21  ;;  %v3292_v9 = vpack.c.bf16 %v3274_v33, %v3273_v49 }
 0x41f   : > { %v3614_v14 = vpack.c.bf16 %v7985_v27, %v7983_v7  ;;  %v2845_v24 = vmax.f32 %v2804_v13, 0.0  ;;  %v3228_v22 = vld [vmem:[#allocation3 + $0x80] sm:$0xff]  ;;  %v2964_v13 = vld [vmem:[#allocation2 + $0x99] sm:$0xff] }
 0x420   : > { %v3039_v51 = vld [vmem:[#allocation2 + $0xa3] sm:$0xff]  ;;  %6030 = vmatmul.msk.bf16.gmra.mxu1 %vm2864_vm0, %v3292_v9 }
 0x421   : > { %6096 = vmatmul.msk.bf16.gmra.mxu3 %vm2864_vm0, %v3614_v14  ;;  %v3077_v50 = vld [vmem:[#allocation2 + $0xa4] sm:$0xff]  ;;  %2887 = vst.msk [vmem:[#allocation2 + $0xb0] sm:$0xff] %vm2864_vm0, %v2845_v24 }
 0x422   : > { %v3115_v39 = vmax.f32 %v3039_v51, %v3077_v50  ;;  %v2690_v36 = vpop.f32.mrf.mxu0  ;;  %v7996_v3 = vld [vmem:[#allocation3 + $0x80] sm:$0xff]  ;;  %v8930_v51 = vld [vmem:[#allocation12_spill] sm:$0xff] }
 0x423   : > { %v2760_v32 = vadd.f32 %v2690_v36, %v2479_v15  ;;  %8925 = vst [vmem:[#allocation43_spill] sm:$0xff] %v7996_v3  ;;  %v7999_v46 = vld [vmem:[#allocation3 + $0x7e] sm:$0xff] }
 0x424   : > { %v3153_v54 = vmax.f32 %v3001_v57, %v3115_v39  ;;  %8926 = vst [vmem:[#allocation44_spill] sm:$0xff] %v7999_v46  ;;  %v8929_v24 = vld [vmem:[#allocation17_spill] sm:$0xff]  ;;  %v2558_v57 = vpack.c.bf16 %v2537_v34, %v2537_v34  ;;  %v3002_v39 = vmax.f32 %v2926_v44, %v2964_v13 }
 0x425   : > { %v2805_v38 = vadd.f32 %v7756_v41, %v2760_v32  ;;  %v3229_v1 = vld [vmem:[#allocation3 + $0x88] sm:$0xff]  ;;  %v1919_v15 = vadd.f32 %v8930_v51, %v8929_v24  ;;  %v8932_v14 = vld [vmem:[#allocation13_spill] sm:$0xff] }
 0x426   : > { %3191 = vst.msk [vmem:[#allocation3 + $0x90] sm:$0xff] %vm2864_vm0, %v3153_v54  ;;  %v3246_v21 = vpack.c.bf16 %v3229_v1, %v3228_v22  ;;  %v8001_v49 = vld [vmem:[#allocation3 + $0x88] sm:$0xff]  ;;  %v8931_v54 = vld [vmem:[#allocation16_spill] sm:$0xff] }
 0x427   : > { %8927 = vst [vmem:[#allocation45_spill] sm:$0xff] %v8001_v49  ;;  %v8003_v58 = vld [vmem:[#allocation3 + $0x86] sm:$0xff]  ;;  %v2846_v33 = vmax.f32 %v2805_v38, 0.0  ;;  %v2200_v26 = vadd.f32 %v8932_v14, %v1919_v15  ;;  %v2927_v15 = vld [vmem:[#allocation2 + $0xa0] sm:$0xff] }
 0x428   : > { %8928 = vst [vmem:[#allocation46_spill] sm:$0xff] %v8003_v58  ;;  %v3040_v52 = vld [vmem:[#allocation2 + $0xab] sm:$0xff]  ;;  %6060 = vmatmul.msk.bf16.gmra.mxu2 %vm2864_vm0, %v3246_v21 }
 0x429   : > { %v3078_v50 = vld [vmem:[#allocation2 + $0xac] sm:$0xff]  ;;  %2888 = vst.msk [vmem:[#allocation2 + $0xb8] sm:$0xff] %vm2864_vm0, %v2846_v33 }
 0x42a   : > { %v3116_v36 = vmax.f32 %v3040_v52, %v3078_v50  ;;  %v2693_v32 = vpop.f32.mrf.mxu0  ;;  %v3275_v9 = vld [vmem:[#allocation3 + $0x82] sm:$0xff]  ;;  %v2965_v52 = vld [vmem:[#allocation2 + $0xa1] sm:$0xff] }
 0x42b   : > { %v2761_v38 = vadd.f32 %v2693_v32, %v8931_v54  ;;  %v3516_v22 = vpop.f32.mrf.mxu2  ;;  %v8016_v51 = vld [vmem:[#allocation3 + $0x84] sm:$0xff] }
 0x42c   : > { %v3154_v1 = vmax.f32 %v3002_v39, %v3116_v36  ;;  %v3003_v39 = vmax.f32 %v2927_v15, %v2965_v52 }
 0x42d   : > { %v2806_v21 = vadd.f32 %v7756_v41, %v2761_v38  ;;  %v3379_v31 = vpop.f32.mrf.mxu1  ;;  %2732 = vmatmul.bf16.gmra.mxu0 %v2558_v57  ;;  %v3276_v24 = vld [vmem:[#allocation3 + $0x8a] sm:$0xff] }
 0x42e   : > { %v8018_v43 = vld [vmem:[#allocation3 + $0x8c] sm:$0xff]  ;;  %3192 = vst.msk [vmem:[#allocation3 + $0x98] sm:$0xff] %vm2864_vm0, %v3154_v1  ;;  %v3517_v34 = vadd.f32 %v3516_v22, %v3379_v31  ;;  %v3293_v13 = vpack.c.bf16 %v3276_v24, %v3275_v9  ;;  %v8032_v1 = vld [vmem:[%s8851_s2] ss:$0 sm:$0xff] }
 0x42f   : > { %v3615_v33 = vpack.c.bf16 %v8018_v43, %v8016_v51  ;;  %v2847_v44 = vmax.f32 %v2806_v21, 0.0  ;;  %v8933_v41 = vld [vmem:[#allocation20_spill] sm:$0xff] }
 0x430   : > { %v3041_v50 = vld [vmem:[#allocation2 + $0xb3] sm:$0xff]  ;;  %6031 = vmatmul.msk.bf16.gmra.mxu1 %vm2864_vm0, %v3293_v13  ;;  %v2481_v14 = vadd.f32 %v8933_v41, %v2200_v26  ;;  %v2966_v41 = vld [vmem:[#allocation2 + $0xa9] sm:$0xff] }
 0x431   : > { %6097 = vmatmul.msk.bf16.gmra.mxu3 %vm2864_vm0, %v3615_v33  ;;  %v3079_v57 = vld [vmem:[#allocation2 + $0xb4] sm:$0xff]  ;;  %2889 = vst.msk [vmem:[#allocation2 + $0xc0] sm:$0xff] %vm2864_vm0, %v2847_v44  ;;  %v6487_v44 = vld [vmem:[%s8852_s3 + $0x80] sm:$0xff] }
 0x432   : > { %v3117_v36 = vmax.f32 %v3041_v50, %v3079_v57  ;;  %v2695_v31 = vpop.f32.mrf.mxu0  ;;  %v3230_v24 = vld [vmem:[#allocation3 + $0x90] sm:$0xff]  ;;  %4121 = vmatpush.bf16.msrb.mxu2 %v6487_v44 }
 0x433   : > { %v2762_v9 = vadd.f32 %v2695_v31, %v2481_v14  ;;  %v3518_v32 = vpop.f32.mrf.mxu2  ;;  %v2928_v31 = vld [vmem:[#allocation2 + $0xa8] sm:$0xff] }
 0x434   : > { %v3701_v54 = vpop.f32.mrf.mxu3  ;;  %v3155_v38 = vmax.f32 %v3003_v39, %v3117_v36  ;;  %v8936_v39 = vld [vmem:[#allocation14_spill] sm:$0xff] }
 0x435   : > { %v8027_v22 = vadd.f32 %v3701_v54, %v3517_v34  ;;  %v2807_v26 = vadd.f32 %v8032_v1, %v2762_v9  ;;  %v3381_v21 = vpop.f32.mrf.mxu1  ;;  %v3231_v13 = vld [vmem:[#allocation3 + $0x98] sm:$0xff]  ;;  %v8039_v34 = vld [vmem:[#allocation3 + $0x8e] sm:$0xff]  ;;  %v1921_v36 = vadd.f32 %v8936_v39, %v7650_v63 }
 0x436   : > { %3193 = vst.msk [vmem:[#allocation3 + $0xa0] sm:$0xff] %vm2864_vm0, %v3155_v38  ;;  %v3519_v33 = vadd.f32 %v3518_v32, %v3381_v21  ;;  %v3247_v52 = vpack.c.bf16 %v3231_v13, %v3230_v24  ;;  %v8041_v50 = vld [vmem:[#allocation3 + $0x96] sm:$0xff]  ;;  %v3004_v32 = vmax.f32 %v2928_v31, %v2966_v41  ;;  %v4451_v13 = vpack.c.bf16 %v7900_v25, %v7866_v5  ;;  %v8937_v63 = vld [vmem:[#allocation15_spill] sm:$0xff] }
 0x437   : > { %8934 = vst [vmem:[#allocation17_spill] sm:$0xff] %v8039_v34  ;;  %v2848_v14 = vmax.f32 %v2807_v26, 0.0  ;;  %v8054_v6 = vld [vmem:[#allocation3 + $0x92] sm:$0xff]  ;;  %v2202_v39 = vadd.f32 %v8937_v63, %v1921_v36  ;;  %v2967_v36 = vld [vmem:[#allocation2 + $0xb1] sm:$0xff] }
 0x438   : > { %8935 = vst [vmem:[#allocation12_spill] sm:$0xff] %v8041_v50  ;;  %v3042_v57 = vld [vmem:[#allocation2 + $0xbb] sm:$0xff]  ;;  %6061 = vmatmul.msk.bf16.gmra.mxu2 %vm2864_vm0, %v3247_v52 }
 0x439   : > { %v3080_v9 = vld [vmem:[#allocation2 + $0xbc] sm:$0xff]  ;;  %2890 = vst.msk [vmem:[#allocation2 + $0xc8] sm:$0xff] %vm2864_vm0, %v2848_v14 }
 0x43a   : > { %v3118_v54 = vmax.f32 %v3042_v57, %v3080_v9  ;;  %v2698_v38 = vpop.f32.mrf.mxu0  ;;  %v8059_v57 = vld [vmem:[#allocation3 + $0x94] sm:$0xff] }
 0x43b   : > { %v2763_v21 = vadd.f32 %v2698_v38, %v7647_v8  ;;  %v3521_v26 = vpop.f32.mrf.mxu2  ;;  %v2929_v38 = vld [vmem:[#allocation2 + $0xb0] sm:$0xff] }
 0x43c   : > { %v3703_v24 = vpop.f32.mrf.mxu3  ;;  %v3156_v15 = vmax.f32 %v3004_v32, %v3118_v54  ;;  %v8938_v32 = vld [vmem:[#allocation22_spill] sm:$0xff] }
 0x43d   : > { %v8052_v52 = vadd.f32 %v3703_v24, %v3519_v33  ;;  %v2808_v14 = vadd.f32 %v8032_v1, %v2763_v21  ;;  %v3384_v44 = vpop.f32.mrf.mxu1  ;;  %6237 = vmatmul.msk.bf16.vlgmr.msra.gmra.mxu0 %vm2864_vm0, %v4451_v13  ;;  %v3278_v41 = vld [vmem:[#allocation3 + $0x9a] sm:$0xff]  ;;  %v2483_v54 = vadd.f32 %v8938_v32, %v2202_v39  ;;  %v3005_v21 = vmax.f32 %v2929_v38, %v2967_v36 }
 0x43e   : > { %v8061_v8 = vld [vmem:[#allocation3 + $0x9c] sm:$0xff]  ;;  %3194 = vst.msk [vmem:[#allocation3 + $0xa8] sm:$0xff] %vm2864_vm0, %v3156_v15  ;;  %v3294_v5 = vpack.c.bf16 %v3278_v41, %v8054_v6  ;;  %v4452_v32 = vpack.c.bf16 %v7940_v17, %v7902_v40 }
 0x43f   : > { %v3616_v25 = vpack.c.bf16 %v8061_v8, %v8059_v57  ;;  %v6483_v33 = vld [vmem:[%s8852_s3 + $0x60] sm:$0xff]  ;;  %v2849_v31 = vmax.f32 %v2808_v14, 0.0  ;;  %v8941_v38 = vld [vmem:[#allocation18_spill] sm:$0xff] }
 0x440   : > { %v3043_v9 = vld [vmem:[#allocation2 + $0xc3] sm:$0xff]  ;;  %6032 = vmatmul.msk.bf16.gmra.mxu1 %vm2864_vm0, %v3294_v5 }
 0x441   : > { %6098 = vmatmul.msk.bf16.gmra.mxu3 %vm2864_vm0, %v3616_v25  ;;  %v3081_v15 = vld [vmem:[#allocation2 + $0xc4] sm:$0xff]  ;;  %2891 = vst.msk [vmem:[#allocation2 + $0xd0] sm:$0xff] %vm2864_vm0, %v2849_v31  ;;  %3910 = vmatpush.bf16.msrb.mxu1 %v6483_v33  ;;  %v2968_v31 = vld [vmem:[#allocation2 + $0xb9] sm:$0xff] }
 0x442   : > { %v3119_v26 = vmax.f32 %v3043_v9, %v3081_v15  ;;  %v2700_v24 = vpop.f32.mrf.mxu0  ;;  %v8075_v5 = vld [vmem:[#allocation3 + $0xa0] sm:$0xff] }
 0x443   : > { %v2764_v13 = vadd.f32 %v2700_v24, %v2483_v54  ;;  %v3523_v63 = vpop.f32.mrf.mxu2  ;;  %v8082_v33 = vld [vmem:[#allocation3 + $0x9e] sm:$0xff] }
 0x444   : > { %v3706_v44 = vpop.f32.mrf.mxu3  ;;  %v3157_v41 = vmax.f32 %v3005_v21, %v3119_v26  ;;  %v2930_v21 = vld [vmem:[#allocation2 + $0xb8] sm:$0xff] }
 0x445   : > { %v2809_v14 = vadd.f32 %v8032_v1, %v2764_v13  ;;  %v3386_v45 = vpop.f32.mrf.mxu1  ;;  %v8077_v25 = vld [vmem:[#allocation3 + $0xa8] sm:$0xff]  ;;  %v3006_v24 = vmax.f32 %v2930_v21, %v2968_v31 }
 0x446   : > { %3195 = vst.msk [vmem:[#allocation3 + $0xb0] sm:$0xff] %vm2864_vm0, %v3157_v41  ;;  %v3248_v39 = vpack.c.bf16 %v8077_v25, %v8075_v5  ;;  %v8084_v36 = vld [vmem:[#allocation3 + $0xa6] sm:$0xff]  ;;  %v8940_v45 = vld [vmem:[#allocation8_spill] sm:$0xff] }
 0x447   : > { %8939 = vst [vmem:[#allocation16_spill] sm:$0xff] %v8084_v36  ;;  %v2850_v9 = vmax.f32 %v2809_v14, 0.0  ;;  %v1923_v15 = vadd.f32 %v8941_v38, %v8940_v45  ;;  %v8942_v44 = vld [vmem:[#allocation7_spill] sm:$0xff] }
 0x448   : > { %v3044_v54 = vld [vmem:[#allocation2 + $0xcb] sm:$0xff]  ;;  %6062 = vmatmul.msk.bf16.gmra.mxu2 %vm2864_vm0, %v3248_v39 }
 0x449   : > { %v3082_v26 = vld [vmem:[#allocation2 + $0xcc] sm:$0xff]  ;;  %2892 = vst.msk [vmem:[#allocation2 + $0xd8] sm:$0xff] %vm2864_vm0, %v2850_v9 }
 0x44a   : > { %v3120_v13 = vmax.f32 %v3044_v54, %v3082_v26  ;;  %v2703_v63 = vpop.f32.mrf.mxu0  ;;  %v8095_v34 = vld [vmem:[#allocation3 + $0xa2] sm:$0xff] }
 0x44b   : > { %v2765_v41 = vadd.f32 %v2703_v63, %v8942_v44  ;;  %v3526_v29 = vpop.f32.mrf.mxu2  ;;  %v8097_v39 = vld [vmem:[#allocation3 + $0xa4] sm:$0xff]  ;;  %v8944_v63 = vld [vmem:[#allocation25_spill] sm:$0xff] }
 0x44c   : > { %v3708_v14 = vpop.f32.mrf.mxu3  ;;  %v3158_v36 = vmax.f32 %v3006_v24, %v3120_v13  ;;  %v8943_v45 = vld [vmem:[#allocation19_spill] sm:$0xff]  ;;  %v2969_v24 = vld [vmem:[#allocation2 + $0xc1] sm:$0xff] }
 0x44d   : > { %v2204_v38 = vadd.f32 %v8943_v45, %v1923_v15  ;;  %v2810_v50 = vadd.f32 %v8032_v1, %v2765_v41  ;;  %v3389_v9 = vpop.f32.mrf.mxu1  ;;  %6238 = vmatmul.msk.bf16.gmra.mxu0 %vm2864_vm0, %v4452_v32  ;;  %v8102_v31 = vld [vmem:[#allocation3 + $0xaa] sm:$0xff] }
 0x44e   : > { %v8104_v54 = vld [vmem:[#allocation3 + $0xac] sm:$0xff]  ;;  %3196 = vst.msk [vmem:[#allocation3 + $0xb8] sm:$0xff] %vm2864_vm0, %v3158_v36  ;;  %v3527_v40 = vadd.f32 %v3526_v29, %v3389_v9  ;;  %v3295_v17 = vpack.c.bf16 %v8102_v31, %v8095_v34  ;;  %v2931_v36 = vld [vmem:[#allocation2 + $0xc0] sm:$0xff] }
 0x44f   : > { %v8106_v21 = vld [vmem:[#allocation3 + $0xb0] sm:$0xff]  ;;  %v3617_v15 = vpack.c.bf16 %v8104_v54, %v8097_v39  ;;  %v2851_v32 = vmax.f32 %v2810_v50, 0.0  ;;  %v2485_v44 = vadd.f32 %v8944_v63, %v2204_v38  ;;  %v3007_v14 = vmax.f32 %v2931_v36, %v2969_v24  ;;  %v6493_v38 = vld [vmem:[%s8852_s3 + $0xb0] sm:$0xff] }
 0x450   : > { %v3045_v13 = vld [vmem:[#allocation2 + $0xd3] sm:$0xff]  ;;  %6033 = vmatmul.msk.bf16.gmra.mxu1 %vm2864_vm0, %v3295_v17  ;;  %v2970_v36 = vld [vmem:[#allocation2 + $0xc9] sm:$0xff] }
 0x451   : > { %6099 = vmatmul.msk.bf16.gmra.mxu3 %vm2864_vm0, %v3617_v15  ;;  %v3083_v29 = vld [vmem:[#allocation2 + $0xd4] sm:$0xff]  ;;  %2893 = vst.msk [vmem:[#allocation2 + $0xe0] sm:$0xff] %vm2864_vm0, %v2851_v32 }
 0x452   : > { %v6494_v41 = vld [vmem:[%s8852_s3 + $0xb8] sm:$0xff]  ;;  %v3121_v45 = vmax.f32 %v3045_v13, %v3083_v29  ;;  %v2705_v9 = vpop.f32.mrf.mxu0 }
 0x453   : > { %v2766_v26 = vadd.f32 %v2705_v9, %v2485_v44  ;;  %v3528_v50 = vpop.f32.mrf.mxu2  ;;  %4329 = vmatpush.bf16.msra.mxu3 %v6494_v41  ;;  %v8135_v44 = vld [vmem:[#allocation3 + $0xae] sm:$0xff]  ;;  %v2932_v9 = vld [vmem:[#allocation2 + $0xc8] sm:$0xff] }
 0x454   : > { %v3711_v46 = vpop.f32.mrf.mxu3  ;;  %v3159_v17 = vmax.f32 %v3007_v14, %v3121_v45  ;;  %v8945_v14 = vld [vmem:[#allocation6_spill] sm:$0xff] }
 0x455   : > { %v8122_v58 = vadd.f32 %v3711_v46, %v3527_v40  ;;  %v2811_v15 = vadd.f32 %v8032_v1, %v2766_v26  ;;  %v3391_v32 = vpop.f32.mrf.mxu1  ;;  %v8128_v63 = vld [vmem:[#allocation3 + $0xb8] sm:$0xff]  ;;  %v1925_v45 = vadd.f32 %v8945_v14, %v7681_v10 }
 0x456   : > { %v8130_v3 = vld [vmem:[#allocation3 + $0xb2] sm:$0xff]  ;;  %3197 = vst.msk [vmem:[#allocation3 + $0xc0] sm:$0xff] %vm2864_vm0, %v3159_v17  ;;  %v3529_v24 = vadd.f32 %v3528_v50, %v3391_v32  ;;  %v3249_v13 = vpack.c.bf16 %v8128_v63, %v8106_v21  ;;  %v6492_v17 = vld [vmem:[%s8852_s3 + $0xa8] sm:$0xff]  ;;  %v3008_v32 = vmax.f32 %v2932_v9, %v2970_v36 }
 0x457   : > { %v8139_v40 = vld [vmem:[#allocation3 + $0xb6] sm:$0xff]  ;;  %v2852_v26 = vmax.f32 %v2811_v15, 0.0  ;;  %4330 = vmatpush.bf16.msra.mxu3 %v6493_v38 }
 0x458   : > { %v3046_v41 = vld [vmem:[#allocation2 + $0xdb] sm:$0xff]  ;;  %6063 = vmatmul.msk.bf16.gmra.mxu2 %vm2864_vm0, %v3249_v13  ;;  %v4453_v13 = vpack.c.bf16 %v7983_v7, %v7942_v2 }
 0x459   : > { %v3084_v50 = vld [vmem:[#allocation2 + $0xdc] sm:$0xff]  ;;  %2894 = vst.msk [vmem:[#allocation2 + $0xe8] sm:$0xff] %vm2864_vm0, %v2852_v26 }
 0x45a   : > { %v3122_v15 = vmax.f32 %v3046_v41, %v3084_v50  ;;  %v2708_v38 = vpop.f32.mrf.mxu0  ;;  %v8155_v30 = vld [vmem:[#allocation3 + $0xb4] sm:$0xff] }
 0x45b   : > { %v2767_v46 = vadd.f32 %v2708_v38, %v7678_v37  ;;  %v3531_v29 = vpop.f32.mrf.mxu2  ;;  %4331 = vmatpush.bf16.msra.mxu3 %v6492_v17  ;;  %v6491_v26 = vld [vmem:[%s8852_s3 + $0xa0] sm:$0xff]  ;;  %v2971_v17 = vld [vmem:[#allocation2 + $0xd1] sm:$0xff] }
 0x45c   : > { %v3713_v49 = vpop.f32.mrf.mxu3  ;;  %v3160_v10 = vmax.f32 %v3008_v32, %v3122_v15  ;;  %v8946_v36 = vld [vmem:[#allocation21_spill] sm:$0xff]  ;;  %v8947_v38 = vld [vmem:[#allocation27_spill] sm:$0xff] }
 0x45d   : > { %v8153_v14 = vadd.f32 %v3713_v49, %v3529_v24  ;;  %v2206_v41 = vadd.f32 %v8946_v36, %v1925_v45  ;;  %v2812_v9 = vadd.f32 %v8032_v1, %v2767_v46  ;;  %v3394_v37 = vpop.f32.mrf.mxu1  ;;  %6239 = vmatmul.msk.bf16.gmra.mxu0 %vm2864_vm0, %v4453_v13  ;;  %v8163_v50 = vld [vmem:[#allocation3 + $0xba] sm:$0xff] }
 0x45e   : > { %v8165_v2 = vld [vmem:[#allocation3 + $0xbc] sm:$0xff]  ;;  %3198 = vst.msk [vmem:[#allocation3 + $0xc8] sm:$0xff] %vm2864_vm0, %v3160_v10  ;;  %v3532_v49 = vadd.f32 %v3531_v29, %v3394_v37  ;;  %v3296_v24 = vpack.c.bf16 %v8163_v50, %v8130_v3  ;;  %v2933_v29 = vld [vmem:[#allocation2 + $0xd0] sm:$0xff] }
 0x45f   : > { %v8167_v7 = vld [vmem:[#allocation3 + $0xc0] sm:$0xff]  ;;  %v3618_v45 = vpack.c.bf16 %v8165_v2, %v8155_v30  ;;  %v2853_v32 = vmax.f32 %v2812_v9, 0.0  ;;  %4332 = vmatpush.bf16.msra.mxu3 %v6491_v26  ;;  %v2487_v13 = vadd.f32 %v8947_v38, %v2206_v41  ;;  %v3009_v36 = vmax.f32 %v2933_v29, %v2971_v17  ;;  %v2934_v38 = vld [vmem:[#allocation2 + $0xd8] sm:$0xff] }
 0x460   : > { %v3047_v15 = vld [vmem:[#allocation2 + $0xe3] sm:$0xff]  ;;  %6034 = vmatmul.msk.bf16.gmra.mxu1 %vm2864_vm0, %v3296_v24 }
 0x461   : > { %6100 = vmatmul.msk.bf16.gmra.mxu3 %vm2864_vm0, %v3618_v45  ;;  %v3085_v10 = vld [vmem:[#allocation2 + $0xe4] sm:$0xff]  ;;  %2895 = vst.msk [vmem:[#allocation2 + $0xf0] sm:$0xff] %vm2864_vm0, %v2853_v32  ;;  %v2972_v32 = vld [vmem:[#allocation2 + $0xd9] sm:$0xff] }
 0x462   : > { %v3123_v37 = vmax.f32 %v3047_v15, %v3085_v10  ;;  %v2710_v11 = vpop.f32.mrf.mxu0 }
 0x463   : > { %v2768_v56 = vadd.f32 %v2710_v11, %v2487_v13  ;;  %v3533_v55 = vpop.f32.mrf.mxu2  ;;  %v3010_v13 = vmax.f32 %v2934_v38, %v2972_v32 }
 0x464   : > { %v3716_v46 = vpop.f32.mrf.mxu3  ;;  %v3161_v0 = vmax.f32 %v3009_v36, %v3123_v37  ;;  %v8189_v55 = vld [vmem:[#allocation3 + $0xbe] sm:$0xff]  ;;  %v8949_v36 = vld [vmem:[#allocation28_spill] sm:$0xff] }
 0x465   : > { %v8180_v9 = vadd.f32 %v3716_v46, %v3532_v49  ;;  %v2813_v26 = vadd.f32 %v8032_v1, %v2768_v56  ;;  %v3396_v24 = vpop.f32.mrf.mxu1  ;;  %v3237_v28 = vld [vmem:[#allocation3 + $0xc8] sm:$0x1]  ;;  %v8948_v46 = vld [vmem:[#allocation23_spill] sm:$0xff] }
 0x466   : > { %v8183_v45 = vld [vmem:[#allocation3 + $0xc2] sm:$0xff]  ;;  %3199 = vst.msk [vmem:[#allocation3 + $0xd0] sm:$0xff] %vm2864_vm0, %v3161_v0  ;;  %v3250_v41 = vpack.c.bf16 %v3237_v28, %v8167_v7  ;;  %v1927_v0 = vadd.f32 %v8948_v46, %v7695_v53  ;;  %v3284_v17 = vld [vmem:[#allocation3 + $0xca] sm:$0x1]  ;;  %v3606_v56 = vld [vmem:[#allocation3 + $0xcc] sm:$0x1] }
 0x467   : > { %v2854_v11 = vmax.f32 %v2813_v26, 0.0  ;;  %v8191_v15 = vld [vmem:[#allocation3 + $0xc6] sm:$0xff]  ;;  %v8950_v53 = vld [vmem:[#allocation24_spill] sm:$0xff]  ;;  %v3297_v32 = vpack.c.bf16 %v3284_v17, %v8183_v45 }
 0x468   : > { %v3048_v49 = vld [vmem:[#allocation2 + $0xeb] sm:$0xff]  ;;  %6064 = vmatmul.msk.bf16.gmra.mxu2 %vm2864_vm0, %v3250_v41  ;;  %v4454_v41 = vpack.c.bf16 %v8016_v51, %v7985_v27  ;;  %v2208_v46 = vadd.f32 %v8950_v53, %v1927_v0  ;;  %v6506_v27 = vld [vmem:[%s8852_s3 + $0x118] sm:$0xff]  ;;  %v2973_v0 = vld [vmem:[#allocation2 + $0xe1] sm:$0xff] }
 0x469   : > { %v3086_v28 = vld [vmem:[#allocation2 + $0xec] sm:$0xff]  ;;  %2896 = vst.msk [vmem:[#allocation2 + $0xf8] sm:$0xff] %vm2864_vm0, %v2854_v11  ;;  %v6502_v51 = vld [vmem:[%s8852_s3 + $0xf8] sm:$0xff]  ;;  %v2935_v17 = vld [vmem:[#allocation2 + $0xe0] sm:$0xff]  ;;  %4962 = vmatpush.bf16.msra.mxu2 %v6506_v27 }
 0x46a   : > { %v3124_v29 = vmax.f32 %v3048_v49, %v3086_v28  ;;  %v2713_v10 = vpop.f32.mrf.mxu0  ;;  %v8202_v12 = vld [vmem:[#allocation3 + $0xc4] sm:$0xff]  ;;  %4751 = vmatpush.bf16.msra.mxu1 %v6502_v51 }
 0x46b   : > { %v2769_v37 = vadd.f32 %v2713_v10, %v8949_v36  ;;  %v3536_v26 = vpop.f32.mrf.mxu2  ;;  %v3619_v49 = vpack.c.bf16 %v3606_v56, %v8202_v12  ;;  %v3011_v56 = vmax.f32 %v2935_v17, %v2973_v0 }
 0x46c   : > { %v3718_v24 = vpop.f32.mrf.mxu3  ;;  %v3162_v61 = vmax.f32 %v3010_v13, %v3124_v29 }
 0x46d   : > { %v2814_v35 = vadd.f32 %v8032_v1, %v2769_v37  ;;  %v3399_v11 = vpop.f32.mrf.mxu1  ;;  %6240 = vmatmul.msk.bf16.gmra.mxu0 %vm2864_vm0, %v4454_v41  ;;  %v8226_v27 = vld [vmem:[#allocation3 + $0xce] sm:$0xff] }
 0x46e   : > { %3200 = vst.msk [vmem:[#allocation3 + $0xd8] sm:$0xff] %vm2864_vm0, %v3162_v61  ;;  %v2489_v61 = vadd.f32 %v7703_v42, %v2208_v46  ;;  %v4003_v11 = vld [vmem:[#allocation3 + $0x28] sm:$0xff] }
 0x46f   : > { %v2855_v38 = vmax.f32 %v2814_v35, 0.0  ;;  %v4004_v35 = vld [vmem:[#allocation3 + $0x30] sm:$0xff] }
 0x470   : > { %v3049_v28 = vld [vmem:[#allocation2 + $0xf3] sm:$0xff]  ;;  %6035 = vmatmul.msk.bf16.gmra.mxu1 %vm2864_vm0, %v3297_v32 }
 0x471   : > { %6101 = vmatmul.msk.bf16.gmra.mxu3 %vm2864_vm0, %v3619_v49  ;;  %v3087_v13 = vld [vmem:[#allocation2 + $0xf4] sm:$0xff]  ;;  %2897 = vst.msk [vmem:[#allocation2 + $0x100] sm:$0xff] %vm2864_vm0, %v2855_v38  ;;  %v4029_v49 = vpack.c.bf16 %v4004_v35, %v4003_v11  ;;  %v2974_v38 = vld [vmem:[#allocation2 + $0xe9] sm:$0xff] }
 0x472   : > { %v3125_v29 = vmax.f32 %v3049_v28, %v3087_v13  ;;  %v2715_v10 = vpop.f32.mrf.mxu0  ;;  %v8221_v32 = vld [vmem:[#allocation3 + $0xd0] sm:$0xff]  ;;  %v8951_v13 = vld [vmem:[#allocation9_spill] sm:$0xff] }
 0x473   : > { %v2770_v36 = vadd.f32 %v2715_v10, %v2489_v61  ;;  %v3538_v37 = vpop.f32.mrf.mxu2  ;;  %v3793_v11 = vld [vmem:[#allocation3 + $0x2e] sm:$0xff] }
 0x474   : > { %v3721_v26 = vpop.f32.mrf.mxu3  ;;  %v3163_v24 = vmax.f32 %v3011_v56, %v3125_v29  ;;  %v1929_v56 = vadd.f32 %v8951_v13, %v7709_v59  ;;  %v2936_v29 = vld [vmem:[#allocation2 + $0xe8] sm:$0xff]  ;;  %v4215_v61 = vld [vmem:[#allocation3 + $0x32] sm:$0xff] }
 0x475   : > { %v2815_v41 = vadd.f32 %v8032_v1, %v2770_v36  ;;  %v3401_v53 = vpop.f32.mrf.mxu1  ;;  %v8223_v42 = vld [vmem:[#allocation3 + $0xd8] sm:$0xff]  ;;  %v3012_v36 = vmax.f32 %v2936_v29, %v2974_v38  ;;  %v8952_v59 = vld [vmem:[#allocation26_spill] sm:$0xff] }
 0x476   : > { %3201 = vst.msk [vmem:[#allocation3 + $0xe0] sm:$0xff] %vm2864_vm0, %v3163_v24  ;;  %v3539_v46 = vadd.f32 %v3538_v37, %v3401_v53  ;;  %v8228_v51 = vld [vmem:[#allocation3 + $0xd6] sm:$0xff]  ;;  %v4455_v53 = vpack.c.bf16 %v8059_v57, %v8018_v43  ;;  %v2210_v13 = vadd.f32 %v8952_v59, %v1929_v56  ;;  %v3792_v38 = vld [vmem:[#allocation3 + $0x26] sm:$0xff] }
 0x477   : > { %v2856_v28 = vmax.f32 %v2815_v41, 0.0  ;;  %v3818_v29 = vpack.c.bf16 %v3793_v11, %v3792_v38  ;;  %v2975_v43 = vld [vmem:[#allocation2 + $0xf1] sm:$0xff]  ;;  %v4005_v38 = vld [vmem:[#allocation3 + $0x38] sm:$0xff] }
 0x478   : > { %v3050_v17 = vld [vmem:[#allocation2 + $0xfb] sm:$0xff]  ;;  %6163 = vmatmul.msk.bf16.vlgmr.msrb.gmra.mxu2 %vm2864_vm0, %v4029_v49  ;;  %v2937_v56 = vld [vmem:[#allocation2 + $0xf0] sm:$0xff] }
 0x479   : > { %v3088_v10 = vld [vmem:[#allocation2 + $0xfc] sm:$0xff]  ;;  %2898 = vst.msk [vmem:[#allocation2 + $0x108] sm:$0xff] %vm2864_vm0, %v2856_v28 }
 0x47a   : > { %v3126_v37 = vmax.f32 %v3050_v17, %v3088_v10  ;;  %v2718_v26 = vpop.f32.mrf.mxu0  ;;  %v4214_v17 = vld [vmem:[#allocation3 + $0x2a] sm:$0xff] }
 0x47b   : > { %v2771_v35 = vadd.f32 %v2718_v26, %v7706_v18  ;;  %v3541_v24 = vpop.f32.mrf.mxu2  ;;  %v4240_v10 = vpack.c.bf16 %v4215_v61, %v4214_v17  ;;  %v4006_v61 = vld [vmem:[#allocation3 + $0x40] sm:$0xff] }
 0x47c   : > { %v3723_v41 = vpop.f32.mrf.mxu3  ;;  %v3164_v49 = vmax.f32 %v3012_v36, %v3126_v37  ;;  %v3013_v37 = vmax.f32 %v2937_v56, %v2975_v43  ;;  %v8954_v56 = vld [vmem:[#allocation29_spill] sm:$0xff]  ;;  %v8956_v43 = vld [vmem:[#allocation30_spill] sm:$0xff] }
 0x47d   : > { %v8241_v0 = vadd.f32 %v3723_v41, %v3539_v46  ;;  %v2816_v47 = vadd.f32 %v8032_v1, %v2771_v35  ;;  %v3404_v28 = vpop.f32.mrf.mxu1  ;;  %6241 = vmatmul.msk.bf16.gmra.mxu0 %vm2864_vm0, %v4455_v53  ;;  %v2491_v46 = vadd.f32 %v7720_v60, %v2210_v13  ;;  %v8254_v17 = vld [vmem:[#allocation3 + $0xe0] sm:$0xff]  ;;  %v4030_v13 = vpack.c.bf16 %v4006_v61, %v4005_v38 }
 0x47e   : > { %3202 = vst.msk [vmem:[#allocation3 + $0xe8] sm:$0xff] %vm2864_vm0, %v3164_v49  ;;  %v3542_v18 = vadd.f32 %v3541_v24, %v3404_v28  ;;  %v3795_v38 = vld [vmem:[#allocation3 + $0x3e] sm:$0xff] }
 0x47f   : > { %v2857_v57 = vmax.f32 %v2816_v47, 0.0 }
 0x480   : > { %v3051_v26 = vld [vmem:[#allocation2 + $0x103] sm:$0xff]  ;;  %6126 = vmatmul.msk.bf16.vlgmr.msrb.gmra.mxu1 %vm2864_vm0, %v3818_v29 }
 0x481   : > { %6200 = vmatmul.msk.bf16.vlgmr.msra.gmra.mxu3 %vm2864_vm0, %v4240_v10  ;;  %v3089_v36 = vld [vmem:[#allocation2 + $0x104] sm:$0xff]  ;;  %2899 = vst.msk [vmem:[#allocation2 + $0x110] sm:$0xff] %vm2864_vm0, %v2857_v57 }
 0x482   : > { %v3127_v35 = vmax.f32 %v3051_v26, %v3089_v36  ;;  %v2720_v41 = vpop.f32.mrf.mxu0  ;;  %v8259_v29 = vld [vmem:[#allocation3 + $0xde] sm:$0xff]  ;;  %v1931_v36 = vadd.f32 %v8954_v56, %v7729_v19 }
 0x483   : > { %v2772_v53 = vadd.f32 %v2720_v41, %v2491_v46  ;;  %v3543_v24 = vpop.f32.mrf.mxu2  ;;  %v4217_v26 = vld [vmem:[#allocation3 + $0x42] sm:$0xff] }
 0x484   : > { %v3726_v11 = vpop.f32.mrf.mxu3  ;;  %v3165_v49 = vmax.f32 %v3013_v37, %v3127_v35  ;;  %v2938_v37 = vld [vmem:[#allocation2 + $0xf8] sm:$0xff] }
 0x485   : > { %v8251_v47 = vadd.f32 %v3726_v11, %v3542_v18  ;;  %v2817_v59 = vadd.f32 %v8032_v1, %v2772_v53  ;;  %v3406_v28 = vpop.f32.mrf.mxu1  ;;  %v8256_v60 = vld [vmem:[#allocation3 + $0xe8] sm:$0xff]  ;;  %v2976_v18 = vld [vmem:[#allocation2 + $0xf9] sm:$0xff]  ;;  %v8955_v11 = vld [vmem:[#allocation33_spill] sm:$0xff] }
 0x486   : > { %3203 = vst.msk [vmem:[#allocation3 + $0xf0] sm:$0xff] %vm2864_vm0, %v3165_v49  ;;  %v8261_v10 = vld [vmem:[#allocation3 + $0xe6] sm:$0xff]  ;;  %v3014_v41 = vmax.f32 %v2938_v37, %v2976_v18  ;;  %v4456_v28 = vpack.c.bf16 %v8097_v39, %v8061_v8  ;;  %v3794_v18 = vld [vmem:[#allocation3 + $0x36] sm:$0xff] }
 0x487   : > { %8953 = vst [vmem:[#allocation13_spill] sm:$0xff] %v8251_v47  ;;  %v2858_v57 = vmax.f32 %v2817_v59, 0.0  ;;  %v2212_v47 = vadd.f32 %v8956_v43, %v1931_v36  ;;  %v8957_v8 = vld [vmem:[#allocation34_spill] sm:$0xff]  ;;  %v2939_v43 = vld [vmem:[#allocation2 + $0x100] sm:$0xff] }
 0x488   : > { %v3052_v46 = vld [vmem:[#allocation2 + $0x10b] sm:$0xff]  ;;  %6164 = vmatmul.msk.bf16.gmra.mxu2 %vm2864_vm0, %v4030_v13 }
 0x489   : > { %v3090_v35 = vld [vmem:[#allocation2 + $0x10c] sm:$0xff]  ;;  %2900 = vst.msk [vmem:[#allocation2 + $0x118] sm:$0xff] %vm2864_vm0, %v2858_v57  ;;  %v4216_v57 = vld [vmem:[#allocation3 + $0x3a] sm:$0xff]  ;;  %v2493_v39 = vadd.f32 %v8957_v8, %v2212_v47 }
 0x48a   : > { %v3128_v53 = vmax.f32 %v3052_v46, %v3090_v35  ;;  %v2723_v24 = vpop.f32.mrf.mxu0  ;;  %v3819_v46 = vpack.c.bf16 %v3795_v38, %v3794_v18  ;;  %v4241_v37 = vpack.c.bf16 %v4217_v26, %v4216_v57  ;;  %v2977_v35 = vld [vmem:[#allocation2 + $0x101] sm:$0xff]  ;;  %v2978_v47 = vld [vmem:[#allocation2 + $0x109] sm:$0xff] }
 0x48b   : > { %v2773_v61 = vadd.f32 %v2723_v24, %v8955_v11  ;;  %v3546_v49 = vpop.f32.mrf.mxu2 }
 0x48c   : > { %v3728_v59 = vpop.f32.mrf.mxu3  ;;  %v3166_v13 = vmax.f32 %v3014_v41, %v3128_v53  ;;  %v3015_v41 = vmax.f32 %v2939_v43, %v2977_v35 }
 0x48d   : > { %v2818_v19 = vadd.f32 %v8032_v1, %v2773_v61  ;;  %v3409_v56 = vpop.f32.mrf.mxu1  ;;  %6242 = vmatmul.msk.bf16.gmra.mxu0 %vm2864_vm0, %v4456_v28 }
 0x48e   : > { %3204 = vst.msk [vmem:[#allocation3 + $0xf8] sm:$0xff] %vm2864_vm0, %v3166_v13  ;;  %v6539_v56 = vld [vmem:[#allocation3 + $0x50] sm:$0xff] }
 0x48f   : > { %v2859_v24 = vmax.f32 %v2818_v19, 0.0  ;;  %v4007_v19 = vld [vmem:[#allocation3 + $0x48] sm:$0xff] }
 0x490   : > { %v3053_v11 = vld [vmem:[#allocation2 + $0x113] sm:$0xff]  ;;  %6127 = vmatmul.msk.bf16.gmra.mxu1 %vm2864_vm0, %v3819_v46  ;;  %v4031_v18 = vpack.c.bf16 %v6539_v56, %v4007_v19 }
 0x491   : > { %6201 = vmatmul.msk.bf16.gmra.mxu3 %vm2864_vm0, %v4241_v37  ;;  %v3091_v36 = vld [vmem:[#allocation2 + $0x114] sm:$0xff]  ;;  %2901 = vst.msk [vmem:[#allocation2 + $0x120] sm:$0xff] %vm2864_vm0, %v2859_v24  ;;  %v2940_v24 = vld [vmem:[#allocation2 + $0x108] sm:$0xff] }
 0x492   : > { %v3129_v53 = vmax.f32 %v3053_v11, %v3091_v36  ;;  %v2725_v61 = vpop.f32.mrf.mxu0  ;;  %v8958_v37 = vld [vmem:[#allocation31_spill] sm:$0xff]  ;;  %v3016_v8 = vmax.f32 %v2940_v24, %v2978_v47 }
 0x493   : > { %v2774_v49 = vadd.f32 %v2725_v61, %v2493_v39  ;;  %v3548_v59 = vpop.f32.mrf.mxu2  ;;  %v1933_v35 = vadd.f32 %v8958_v37, %v7739_v20  ;;  %v4457_v61 = vpack.c.bf16 %v8155_v30, %v8104_v54  ;;  %v4218_v19 = vld [vmem:[#allocation3 + $0x4a] sm:$0xff] }
 0x494   : > { %v3731_v28 = vpop.f32.mrf.mxu3  ;;  %v3167_v26 = vmax.f32 %v3015_v41, %v3129_v53  ;;  %v6501_v56 = vld [vmem:[%s8852_s3 + $0xf0] sm:$0xff] }
 0x495   : > { %v2819_v38 = vadd.f32 %v8032_v1, %v2774_v49  ;;  %v3411_v13 = vpop.f32.mrf.mxu1  ;;  %v4219_v49 = vld [vmem:[#allocation3 + $0x52] sm:$0xff]  ;;  %v3796_v28 = vld [vmem:[#allocation3 + $0x46] sm:$0xff]  ;;  %4752 = vmatpush.bf16.msra.mxu1 %v6501_v56 }
 0x496   : > { %3205 = vst.msk [vmem:[#allocation3 + $0x100] sm:$0xff] %vm2864_vm0, %v3167_v26  ;;  %v8959_v26 = vld [vmem:[#allocation32_spill] sm:$0xff]  ;;  %v4242_v47 = vpack.c.bf16 %v4219_v49, %v4218_v19 }
 0x497   : > { %v2860_v57 = vmax.f32 %v2819_v38, 0.0  ;;  %v2214_v38 = vadd.f32 %v8959_v26, %v1933_v35  ;;  %v6540_v54 = vld [vmem:[#allocation3 + $0x4e] sm:$0xff] }
 0x498   : > { %v3054_v46 = vld [vmem:[#allocation2 + $0x11b] sm:$0xff]  ;;  %6165 = vmatmul.msk.bf16.gmra.mxu2 %vm2864_vm0, %v4031_v18  ;;  %v3820_v18 = vpack.c.bf16 %v6540_v54, %v3796_v28  ;;  %v2941_v35 = vld [vmem:[#allocation2 + $0x110] sm:$0xff] }
 0x499   : > { %v3092_v11 = vld [vmem:[#allocation2 + $0x11c] sm:$0xff]  ;;  %2902 = vst.msk [vmem:[#allocation2 + $0x128] sm:$0xff] %vm2864_vm0, %v2860_v57  ;;  %v2979_v57 = vld [vmem:[#allocation2 + $0x111] sm:$0xff]  ;;  %v2495_v37 = vadd.f32 %v7743_v16, %v2214_v38 }
 0x49a   : > { %v3130_v39 = vmax.f32 %v3054_v46, %v3092_v11  ;;  %v2728_v43 = vpop.f32.mrf.mxu0  ;;  %v2980_v26 = vld [vmem:[#allocation2 + $0x119] sm:$0xff] }
 0x49b   : > { %v2775_v36 = vadd.f32 %v2728_v43, %v7736_v48  ;;  %v3551_v41 = vpop.f32.mrf.mxu2  ;;  %v6505_v48 = vld [vmem:[%s8852_s3 + $0x110] sm:$0xff]  ;;  %v6541_v38 = vld [vmem:[#allocation3 + $0x58] sm:$0xff] }
 0x49c   : > { %v3733_v53 = vpop.f32.mrf.mxu3  ;;  %v3168_v59 = vmax.f32 %v3016_v8, %v3130_v39  ;;  %4963 = vmatpush.bf16.msra.mxu2 %v6505_v48  ;;  %v3017_v8 = vmax.f32 %v2941_v35, %v2979_v57  ;;  %v2942_v48 = vld [vmem:[#allocation2 + $0x118] sm:$0xff] }
 0x49d   : > { %v2820_v20 = vadd.f32 %v8032_v1, %v2775_v36  ;;  %v3414_v13 = vpop.f32.mrf.mxu1  ;;  %6243 = vmatmul.msk.bf16.gmra.mxu0 %vm2864_vm0, %v4457_v61 }
 0x49e   : > { %3206 = vst.msk [vmem:[#allocation3 + $0x108] sm:$0xff] %vm2864_vm0, %v3168_v59  ;;  %v3552_v30 = vadd.f32 %v3551_v41, %v3414_v13 }
 0x49f   : > { %v2861_v46 = vmax.f32 %v2820_v20, 0.0  ;;  %v6542_v20 = vld [vmem:[#allocation3 + $0x60] sm:$0xff] }
 0x4a0   : > { %6128 = vmatmul.msk.bf16.gmra.mxu1 %vm2864_vm0, %v3820_v18  ;;  %v3055_v24 = vld [vmem:[#allocation2 + $0x123] sm:$0xff]  ;;  %v4032_v13 = vpack.c.bf16 %v6542_v20, %v6541_v38  ;;  %v3018_v18 = vmax.f32 %v2942_v48, %v2980_v26  ;;  %v6545_v26 = vld [vmem:[#allocation3 + $0x68] sm:$0xff] }
 0x4a1   : > { %6202 = vmatmul.msk.bf16.gmra.mxu3 %vm2864_vm0, %v4242_v47  ;;  %v3093_v11 = vld [vmem:[#allocation2 + $0x124] sm:$0xff]  ;;  %2903 = vst.msk [vmem:[#allocation2 + $0x130] sm:$0xff] %vm2864_vm0, %v2861_v46  ;;  %v4442_v20 = vld [vmem:[#allocation3 + $0xd4] sm:$0xff] }
 0x4a2   : > { %v3131_v39 = vmax.f32 %v3055_v24, %v3093_v11  ;;  %v2730_v43 = vpop.f32.mrf.mxu0  ;;  %v4458_v24 = vpack.c.bf16 %v8202_v12, %v8165_v2  ;;  %v4221_v11 = vld [vmem:[#allocation3 + $0x62] sm:$0xff] }
 0x4a3   : > { %v2776_v36 = vadd.f32 %v2730_v43, %v2495_v37  ;;  %v3553_v41 = vpop.f32.mrf.mxu2 }
 0x4a4   : > { %v3736_v53 = vpop.f32.mrf.mxu3  ;;  %v3169_v61 = vmax.f32 %v3017_v8, %v3131_v39 }
 0x4a5   : > { %v8305_v49 = vadd.f32 %v3736_v53, %v3552_v30  ;;  %v2821_v59 = vadd.f32 %v8032_v1, %v2776_v36  ;;  %v3416_v28 = vpop.f32.mrf.mxu1  ;;  %v4220_v36 = vld [vmem:[#allocation3 + $0x5a] sm:$0xff] }
 0x4a6   : > { %3207 = vst.msk [vmem:[#allocation3 + $0x110] sm:$0xff] %vm2864_vm0, %v3169_v61  ;;  %v3554_v16 = vadd.f32 %v3553_v41, %v3416_v28  ;;  %v6543_v41 = vld [vmem:[#allocation3 + $0x56] sm:$0xff]  ;;  %v6544_v53 = vld [vmem:[#allocation3 + $0x5e] sm:$0xff]  ;;  %v4243_v61 = vpack.c.bf16 %v4221_v11, %v4220_v36 }
 0x4a7   : > { %v2862_v19 = vmax.f32 %v2821_v59, 0.0  ;;  %v6504_v11 = vld [vmem:[%s8852_s3 + $0x108] sm:$0xff]  ;;  %v6549_v36 = vld [vmem:[#allocation3 + $0x78] sm:$0xff] }
 0x4a8   : > { %v3056_v56 = vld [vmem:[#allocation2 + $0x12b] sm:$0xff]  ;;  %6166 = vmatmul.msk.bf16.gmra.mxu2 %vm2864_vm0, %v4032_v13  ;;  %v4441_v13 = vld [vmem:[#allocation3 + $0xcc] sm:$0xff] }
 0x4a9   : > { %v3094_v54 = vld [vmem:[#allocation2 + $0x12c] sm:$0xff]  ;;  %2904 = vst.msk [vmem:[#allocation2 + $0x138] sm:$0xff] %vm2864_vm0, %v2862_v19  ;;  %4964 = vmatpush.bf16.msra.mxu2 %v6504_v11 }
 0x4aa   : > { %v3132_v47 = vmax.f32 %v3056_v56, %v3094_v54  ;;  %v2733_v30 = vpop.f32.mrf.mxu0  ;;  %v4459_v56 = vpack.c.bf16 %v4442_v20, %v4441_v13  ;;  %v4223_v54 = vld [vmem:[#allocation3 + $0x72] sm:$0xff] }
 0x4ab   : > { %v2777_v46 = vadd.f32 %v2733_v30, %v7749_v4  ;;  %v3556_v37 = vpop.f32.mrf.mxu2  ;;  %v3821_v4 = vpack.c.bf16 %v6544_v53, %v6543_v41  ;;  %v6547_v30 = vld [vmem:[#allocation3 + $0x66] sm:$0xff]  ;;  %v6551_v13 = vld [vmem:[#allocation3 + $0x76] sm:$0xff] }
 0x4ac   : > { %v3170_v57 = vmax.f32 %v3018_v18, %v3132_v47  ;;  %v3738_v35 = vpop.f32.mrf.mxu3  ;;  %v4222_v47 = vld [vmem:[#allocation3 + $0x6a] sm:$0xff]  ;;  %v6550_v41 = vld [vmem:[#allocation3 + $0x80] sm:$0xff] }
 0x4ad   : > { %v8314_v8 = vadd.f32 %v3738_v35, %v3554_v16  ;;  %v2822_v39 = vadd.f32 %v8032_v1, %v2777_v46  ;;  %v3419_v43 = vpop.f32.mrf.mxu1  ;;  %6244 = vmatmul.msk.bf16.gmra.mxu0 %vm2864_vm0, %v4458_v24  ;;  %v6546_v16 = vld [vmem:[#allocation3 + $0x70] sm:$0xff]  ;;  %v4244_v37 = vpack.c.bf16 %v4223_v54, %v4222_v47  ;;  %v4034_v53 = vpack.c.bf16 %v6550_v41, %v6549_v36 }
 0x4ae   : > { %3208 = vst.msk [vmem:[#allocation3 + $0x118] sm:$0xff] %vm2864_vm0, %v3170_v57  ;;  %v4033_v38 = vpack.c.bf16 %v6546_v16, %v6545_v26  ;;  %v6548_v57 = vld [vmem:[#allocation3 + $0x6e] sm:$0xff] }
 0x4af   : > { %v2863_v59 = vmax.f32 %v2822_v39, 0.0  ;;  %v3822_v46 = vpack.c.bf16 %v6548_v57, %v6547_v30  ;;  %v6553_v57 = vld [vmem:[#allocation3 + $0x88] sm:$0xff] }
 0x4b0   : > { %6129 = vmatmul.msk.bf16.gmra.mxu1 %vm2864_vm0, %v3821_v4  ;;  %v4444_v4 = vld [vmem:[#allocation3 + $0xe4] sm:$0xff] }
 0x4b1   : > { %6203 = vmatmul.msk.bf16.gmra.mxu3 %vm2864_vm0, %v4243_v61  ;;  %2906 = vst.msk [vmem:[#allocation2 + $0x140] sm:$0x1] %vm2905_vm1, %v2863_v59  ;;  %v6500_v61 = vld [vmem:[%s8852_s3 + $0xe8] sm:$0xff]  ;;  %v4226_v41 = vld [vmem:[#allocation3 + $0x8a] sm:$0xff] }
 0x4b2   : > { %v2735_v12 = vpop.f32.mrf.mxu0  ;;  %v4443_v59 = vld [vmem:[#allocation3 + $0xdc] sm:$0xff]  ;;  %4753 = vmatpush.bf16.msra.mxu1 %v6500_v61 }
 0x4b3   : > { %v3558_v2 = vpop.f32.mrf.mxu2 }
 0x4b4   : > { %v3741_v28 = vpop.f32.mrf.mxu3 }
 0x4b5   : > { %v3421_v1 = vpop.f32.mrf.mxu1  ;;  %v4460_v28 = vpack.c.bf16 %v4444_v4, %v4443_v59  ;;  %v6556_v4 = vld [vmem:[#allocation3 + $0x8e] sm:$0xff]  ;;  %v4246_v59 = vpack.c.bf16 %v8054_v6, %v4226_v41 }
 0x4b6   : > { %v4225_v1 = vld [vmem:[#allocation3 + $0x82] sm:$0xff]  ;;  %v4449_v41 = vld [vmem:[#allocation3 + $0x10c] sm:$0xff] }
 0x4b8   : > { %6167 = vmatmul.msk.bf16.gmra.mxu2 %vm2864_vm0, %v4033_v38  ;;  %v4224_v38 = vld [vmem:[#allocation3 + $0x7a] sm:$0xff] }
 0x4bb   : > { %v3561_v19 = vpop.f32.mrf.mxu2 }
 0x4bc   : > { %v3743_v48 = vpop.f32.mrf.mxu3  ;;  %v6552_v19 = vld [vmem:[#allocation3 + $0x7e] sm:$0xff] }
 0x4bd   : > { %v3424_v18 = vpop.f32.mrf.mxu1  ;;  %6245 = vmatmul.msk.bf16.gmra.mxu0 %vm2864_vm0, %v4459_v56  ;;  %v3823_v48 = vpack.c.bf16 %v6552_v19, %v6551_v13  ;;  %v4245_v56 = vpack.c.bf16 %v4225_v1, %v4224_v38  ;;  %v8345_v1 = vld [vmem:[#allocation3 + $0x98] sm:$0xff] }
 0x4be   : > { %v4036_v38 = vpack.c.bf16 %v8075_v5, %v8345_v1  ;;  %v4447_v13 = vld [vmem:[#allocation3 + $0xfc] sm:$0xff]  ;;  %v8357_v5 = vpop.f32.mrf.mxu0 }
 0x4c0   : > { %6130 = vmatmul.msk.bf16.gmra.mxu1 %vm2864_vm0, %v3822_v46  ;;  %v6554_v46 = vld [vmem:[#allocation3 + $0x90] sm:$0xff] }
 0x4c1   : > { %6204 = vmatmul.msk.bf16.gmra.mxu3 %vm2864_vm0, %v4244_v37  ;;  %v4035_v37 = vpack.c.bf16 %v6554_v46, %v6553_v57  ;;  %v6557_v57 = vld [vmem:[#allocation3 + $0x96] sm:$0xff] }
 0x4c2   : > { %v3825_v46 = vpack.c.bf16 %v8082_v33, %v6557_v57 }
 0x4c3   : > { %v3563_v35 = vpop.f32.mrf.mxu2 }
 0x4c4   : > { %v3746_v24 = vpop.f32.mrf.mxu3 }
 0x4c5   : > { %v3426_v39 = vpop.f32.mrf.mxu1  ;;  %v4445_v24 = vld [vmem:[#allocation3 + $0xec] sm:$0xff] }
 0x4c6   : > { %v3564_v43 = vadd.f32 %v3563_v35, %v3426_v39  ;;  %v4446_v35 = vld [vmem:[#allocation3 + $0xf4] sm:$0xff] }
 0x4c8   : > { %6168 = vmatmul.msk.bf16.gmra.mxu2 %vm2864_vm0, %v4034_v53  ;;  %v6555_v53 = vld [vmem:[#allocation3 + $0x86] sm:$0xff] }
 0x4c9   : > { %v3824_v61 = vpack.c.bf16 %v6556_v4, %v6555_v53  ;;  %v4450_v53 = vld [vmem:[#allocation3 + $0x114] sm:$0x1] }
 0x4cb   : > { %v3566_v12 = vpop.f32.mrf.mxu2 }
 0x4cc   : > { %v3748_v2 = vpop.f32.mrf.mxu3 }
 0x4cd   : > { %v8333_v26 = vadd.f32 %v3748_v2, %v3564_v43  ;;  %v3429_v16 = vpop.f32.mrf.mxu1  ;;  %6246 = vmatmul.msk.bf16.gmra.mxu0 %vm2864_vm0, %v4460_v28  ;;  %v4461_v43 = vpack.c.bf16 %v4446_v35, %v4445_v24 }
 0x4ce   : > { %v3567_v20 = vadd.f32 %v3566_v12, %v3429_v16 }
 0x4d0   : > { %6131 = vmatmul.msk.bf16.gmra.mxu1 %vm2864_vm0, %v3823_v48 }
 0x4d1   : > { %6205 = vmatmul.msk.bf16.gmra.mxu3 %vm2864_vm0, %v4245_v56 }
 0x4d3   : > { %v3568_v54 = vpop.f32.mrf.mxu2 }
 0x4d4   : > { %v3751_v18 = vpop.f32.mrf.mxu3 }
 0x4d5   : > { %v8338_v47 = vadd.f32 %v3751_v18, %v3567_v20  ;;  %v3431_v30 = vpop.f32.mrf.mxu1  ;;  %v4448_v20 = vld [vmem:[#allocation3 + $0x104] sm:$0xff]  ;;  %v4228_v18 = vld [vmem:[#allocation3 + $0x9a] sm:$0xff] }
 0x4d6   : > { %v4462_v6 = vpack.c.bf16 %v4448_v20, %v4447_v13  ;;  %v8961_v20 = vpack.c.bf16 %v8130_v3, %v8102_v31  ;;  %v3827_v31 = vpack.c.bf16 %v8189_v55, %v8139_v40 }
 0x4d8   : > { %6169 = vmatmul.msk.bf16.gmra.mxu2 %vm2864_vm0, %v4035_v37  ;;  %v4247_v37 = vpack.c.bf16 %v8095_v34, %v4228_v18  ;;  %v6503_v34 = vld [vmem:[%s8852_s3 + $0x100] sm:$0xff] }
 0x4d9   : > { %4965 = vmatpush.bf16.msra.mxu2 %v6503_v34 }
 0x4db   : > { %v3571_v11 = vpop.f32.mrf.mxu2 }
 0x4dc   : > { %v3753_v39 = vpop.f32.mrf.mxu3 }
 0x4dd   : > { %v3434_v36 = vpop.f32.mrf.mxu1  ;;  %6247 = vmatmul.msk.bf16.gmra.mxu0 %vm2864_vm0, %v4461_v43 }
 0x4de   : > { %v8960_v36 = vpack.c.bf16 %v8106_v21, %v8077_v25 }
 0x4e0   : > { %6132 = vmatmul.msk.bf16.gmra.mxu1 %vm2864_vm0, %v3824_v61 }
 0x4e1   : > { %6206 = vmatmul.msk.bf16.gmra.mxu3 %vm2864_vm0, %v4246_v59  ;;  %v4463_v59 = vpack.c.bf16 %v4450_v53, %v4449_v41  ;;  %v4234_v41 = vld [vmem:[#allocation3 + $0xca] sm:$0xff] }
 0x4e3   : > { %v3573_v12 = vpop.f32.mrf.mxu2 }
 0x4e4   : > { %v3756_v2 = vpop.f32.mrf.mxu3 }
 0x4e5   : > { %v3436_v28 = vpop.f32.mrf.mxu1  ;;  %v6499_v2 = vld [vmem:[%s8852_s3 + $0xe0] sm:$0xff] }
 0x4e6   : > { %v3574_v16 = vadd.f32 %v3573_v12, %v3436_v28  ;;  %v8373_v28 = vpop.f32.mrf.mxu0  ;;  %4754 = vmatpush.bf16.msra.mxu1 %v6499_v2  ;;  %v4040_v2 = vpack.c.bf16 %v8254_v17, %v8223_v42 }
 0x4e8   : > { %6170 = vmatmul.msk.bf16.gmra.mxu2 %vm2864_vm0, %v4036_v38 }
 0x4eb   : > { %v3576_v19 = vpop.f32.mrf.mxu2 }
 0x4ec   : > { %v3758_v48 = vpop.f32.mrf.mxu3 }
 0x4ed   : > { %v8350_v56 = vadd.f32 %v3758_v48, %v3574_v16  ;;  %v3439_v54 = vpop.f32.mrf.mxu1  ;;  %6248 = vmatmul.msk.bf16.gmra.mxu0 %vm2864_vm0, %v4462_v6  ;;  %v6558_v16 = vld [vmem:[#allocation3 + $0xa6] sm:$0xff] }
 0x4ee   : > { %v3577_v30 = vadd.f32 %v3576_v19, %v3439_v54  ;;  %v3826_v38 = vpack.c.bf16 %v8135_v44, %v6558_v16 }
 0x4f0   : > { %6133 = vmatmul.msk.bf16.gmra.mxu1 %vm2864_vm0, %v3825_v46 }
 0x4f1   : > { %6207 = vmatmul.msk.bf16.gmra.mxu3 %vm2864_vm0, %v4247_v37 }
 0x4f3   : > { %v3578_v35 = vpop.f32.mrf.mxu2 }
 0x4f4   : > { %v3761_v24 = vpop.f32.mrf.mxu3 }
 0x4f5   : > { %v8359_v11 = vadd.f32 %v3761_v24, %v3577_v30  ;;  %v3441_v39 = vpop.f32.mrf.mxu1 }
 0x4f6   : > { %v3579_v43 = vadd.f32 %v3578_v35, %v3441_v39  ;;  %v8963_v35 = vpack.c.bf16 %v8183_v45, %v8163_v50  ;;  %v3828_v50 = vpack.c.bf16 %v8226_v27, %v8191_v15 }
 0x4f8   : > { %6171 = vmatmul.msk.bf16.gmra.mxu2 %vm2864_vm0, %v8960_v36 }
 0x4fb   : > { %v4123_v61 = vpop.f32.mrf.mxu2 }
 0x4fc   : > { %v3763_v4 = vpop.f32.mrf.mxu3 }
 0x4fd   : > { %v8368_v12 = vadd.f32 %v3763_v4, %v3579_v43  ;;  %v3912_v25 = vpop.f32.mrf.mxu1  ;;  %6249 = vmatmul.msk.bf16.gmra.mxu0 %vm2864_vm0, %v4463_v59  ;;  %v4235_v43 = vld [vmem:[#allocation3 + $0xd2] sm:$0xff] }
 0x4fe   : > { %v3977_v21 = vadd.f32 %v3912_v25, %v8027_v22  ;;  %v8962_v22 = vpack.c.bf16 %v8167_v7, %v8128_v63  ;;  %v8399_v7 = vld [vmem:[#allocation3 + $0xc8] sm:$0xff]  ;;  %v4250_v45 = vpack.c.bf16 %v4235_v43, %v4234_v41 }
 0x4ff   : > { %v4039_v24 = vpack.c.bf16 %v8221_v32, %v8399_v7 }
 0x500   : > { %6134 = vmatmul.msk.bf16.gmra.mxu1 %vm2864_vm0, %v3826_v38  ;;  %v4188_v13 = vadd.f32 %v4123_v61, %v3977_v21  ;;  %v4237_v21 = vld [vmem:[#allocation3 + $0xe2] sm:$0xff]  ;;  %v4236_v38 = vld [vmem:[#allocation3 + $0xda] sm:$0xff] }
 0x501   : > { %6208 = vmatmul.msk.bf16.gmra.mxu3 %vm2864_vm0, %v8961_v20 }
 0x503   : > { %v4125_v19 = vpop.f32.mrf.mxu2 }
 0x504   : > { %v4334_v48 = vpop.f32.mrf.mxu3 }
 0x505   : > { %v8383_v6 = vadd.f32 %v4334_v48, %v4188_v13  ;;  %v3914_v54 = vpop.f32.mrf.mxu1  ;;  %v3829_v13 = vpack.c.bf16 %v8259_v29, %v8228_v51 }
 0x506   : > { %v3978_v18 = vadd.f32 %v3914_v54, %v8052_v52  ;;  %v4028_v54 = vld [vmem:[#allocation3 + $0xf0] sm:$0x1] }
 0x508   : > { %6172 = vmatmul.msk.bf16.gmra.mxu2 %vm2864_vm0, %v8962_v22  ;;  %v4189_v30 = vadd.f32 %v4125_v19, %v3978_v18  ;;  %v4251_v19 = vpack.c.bf16 %v4237_v21, %v4236_v38  ;;  %v4041_v22 = vpack.c.bf16 %v4028_v54, %v8256_v60  ;;  %v8970_v21 = vld [vmem:[#allocation35_spill] sm:$0xff]  ;;  %v8972_v38 = vld [vmem:[#allocation38_spill] sm:$0xff]  ;;  %v8975_v54 = vld [vmem:[#allocation40_spill] sm:$0xff] }
 0x50b   : > { %v4128_v57 = vpop.f32.mrf.mxu2 }
 0x50c   : > { %v4336_v46 = vpop.f32.mrf.mxu3  ;;  %v3817_v57 = vld [vmem:[#allocation3 + $0xee] sm:$0x1] }
 0x50d   : > { %v8390_v37 = vadd.f32 %v4336_v46, %v4189_v30  ;;  %v3917_v3 = vpop.f32.mrf.mxu1  ;;  %v4239_v46 = vld [vmem:[#allocation3 + $0xf2] sm:$0x1] }
 0x510   : > { %6135 = vmatmul.msk.bf16.gmra.mxu1 %vm2864_vm0, %v3827_v31  ;;  %v3830_v31 = vpack.c.bf16 %v3817_v57, %v8261_v10 }
 0x511   : > { %6209 = vmatmul.msk.bf16.gmra.mxu3 %vm2864_vm0, %v8963_v35 }
 0x513   : > { %v4130_v52 = vpop.f32.mrf.mxu2 }
 0x515   : > { %v3919_v63 = vpop.f32.mrf.mxu1 }
 0x518   : > { %6173 = vmatmul.msk.bf16.gmra.mxu2 %vm2864_vm0, %v4039_v24 }
 0x51b   : > { %v4133_v39 = vpop.f32.mrf.mxu2 }
 0x51d   : > { %v3922_v36 = vpop.f32.mrf.mxu1 }
 0x51e   : > { %v3981_v53 = vadd.f32 %v3922_v36, %v8122_v58 }
 0x520   : > { %v8407_v34 = vadd.f32 %v4133_v39, %v3981_v53  ;;  %6136 = vmatmul.msk.bf16.gmra.mxu1 %vm2864_vm0, %v3828_v50  ;;  %v8964_v39 = vpack.c.bf16 %v7885_v23, %v7880_v62  ;;  %v8965_v53 = vld [vmem:[#allocation13_spill] sm:$0xff] }
 0x521   : > { %6210 = vmatmul.msk.bf16.gmra.mxu3 %vm2864_vm0, %v4250_v45  ;;  %v8966_v45 = vld [vmem:[#allocation11_spill] sm:$0xff] }
 0x523   : > { %v4135_v4 = vpop.f32.mrf.mxu2 }
 0x525   : > { %v3924_v61 = vpop.f32.mrf.mxu1 }
 0x526   : > { %v3982_v59 = vadd.f32 %v3924_v61, %v8153_v14 }
 0x528   : > { %6174 = vmatmul.msk.bf16.gmra.mxu2 %vm2864_vm0, %v4040_v2  ;;  %v8415_v58 = vadd.f32 %v4135_v4, %v3982_v59  ;;  %v8967_v4 = vld [vmem:[#allocation10_spill] sm:$0xff] }
 0x529   : > { %v8968_v61 = vpack.c.bf16 %v8966_v45, %v8967_v4  ;;  %v8984_v45 = vld [vmem:[#allocation46_spill] sm:$0xff]  ;;  %v8985_v4 = vld [vmem:[#allocation44_spill] sm:$0xff] }
 0x52b   : > { %v4138_v25 = vpop.f32.mrf.mxu2 }
 0x52d   : > { %v3927_v16 = vpop.f32.mrf.mxu1 }
 0x52e   : > { %v3983_v20 = vadd.f32 %v3927_v16, %v8180_v9  ;;  %v4238_v9 = vld [vmem:[#allocation3 + $0xea] sm:$0xff] }
 0x52f   : > { %v4252_v35 = vpack.c.bf16 %v4239_v46, %v4238_v9  ;;  %v8978_v46 = vld [vmem:[#allocation42_spill] sm:$0xff] }
 0x530   : > { %v8420_v48 = vadd.f32 %v4138_v25, %v3983_v20  ;;  %6137 = vmatmul.msk.bf16.gmra.mxu1 %vm2864_vm0, %v3829_v13  ;;  %v8969_v25 = vld [vmem:[#allocation37_spill] sm:$0xff]  ;;  %v8973_v20 = vld [vmem:[#allocation36_spill] sm:$0xff] }
 0x531   : > { %6211 = vmatmul.msk.bf16.gmra.mxu3 %vm2864_vm0, %v4251_v19  ;;  %v8971_v62 = vpack.c.bf16 %v8969_v25, %v8970_v21  ;;  %v8974_v13 = vpack.c.bf16 %v8972_v38, %v8973_v20  ;;  %v4855_v25 = vld [vmem:[#allocation3 + $0x90] sm:$0xff]  ;;  %v8988_v38 = vld [vmem:[#allocation17_spill] sm:$0xff] }
 0x532   : > { %v4877_v21 = vpack.c.bf16 %v8345_v1, %v4855_v25 }
 0x533   : > { %v4140_v14 = vpop.f32.mrf.mxu2 }
 0x535   : > { %v3929_v18 = vpop.f32.mrf.mxu1 }
 0x536   : > { %v8976_v18 = vld [vmem:[#allocation39_spill] sm:$0xff] }
 0x538   : > { %6175 = vmatmul.msk.bf16.gmra.mxu2 %vm2864_vm0, %v4041_v22  ;;  %v8977_v22 = vpack.c.bf16 %v8975_v54, %v8976_v18  ;;  %v4857_v54 = vld [vmem:[#allocation3 + $0xa0] sm:$0xff] }
 0x53b   : > { %v4143_v30 = vpop.f32.mrf.mxu2 }
 0x53d   : > { %v3932_v3 = vpop.f32.mrf.mxu1 }
 0x53e   : > { %v8979_v3 = vld [vmem:[#allocation41_spill] sm:$0xff] }
 0x540   : > { %6138 = vmatmul.msk.bf16.gmra.mxu1 %vm2864_vm0, %v3830_v31  ;;  %v8980_v31 = vpack.c.bf16 %v8978_v46, %v8979_v3  ;;  %v8990_v3 = vld [vmem:[#allocation16_spill] sm:$0xff] }
 0x541   : > { %6212 = vmatmul.msk.bf16.gmra.mxu3 %vm2864_vm0, %v4252_v35 }
 0x543   : > { %v4145_v52 = vpop.f32.mrf.mxu2 }
 0x545   : > { %v3934_v63 = vpop.f32.mrf.mxu1 }
 0x546   : > { %v3986_v24 = vadd.f32 %v3934_v63, %v8241_v0 }
 0x548   : > { %6311 = vmatmul.msk.bf16.vlgmr.msra.gmra.mxu2 %vm2864_vm0, %v8964_v39  ;;  %v8434_v43 = vadd.f32 %v4145_v52, %v3986_v24  ;;  %v8981_v39 = vld [vmem:[#allocation45_spill] sm:$0xff] }
 0x54b   : > { %v4148_v36 = vpop.f32.mrf.mxu2 }
 0x54d   : > { %v3937_v41 = vpop.f32.mrf.mxu1 }
 0x54e   : > { %v3987_v50 = vadd.f32 %v3937_v41, %v8965_v53 }
 0x550   : > { %6274 = vmatmul.msk.bf16.vlgmr.msra.gmra.mxu1 %vm2864_vm0, %v8968_v61  ;;  %v8441_v59 = vadd.f32 %v4148_v36, %v3987_v50  ;;  %v8982_v36 = vld [vmem:[#allocation43_spill] sm:$0xff]  ;;  %v8986_v61 = vpack.c.bf16 %v8984_v45, %v8985_v4 }
 0x551   : > { %v8983_v41 = vpack.c.bf16 %v8981_v39, %v8982_v36  ;;  %v4859_v39 = vld [vmem:[#allocation3 + $0xb0] sm:$0xff]  ;;  %v4339_v36 = vpop.f32.mrf.mxu3 }
 0x553   : > { %v4150_v2 = vpop.f32.mrf.mxu2 }
 0x554   : > { %v5155_v2 = vld [vmem:[%s8854_s5 + $0x38] sm:$0xff] }
 0x555   : > { %v3939_v0 = vpop.f32.mrf.mxu1  ;;  %5167 = vmatpush.msrb.mxu3 %v5155_v2  ;;  %v4861_v2 = vld [vmem:[#allocation3 + $0xc0] sm:$0xff] }
 0x558   : > { %6312 = vmatmul.msk.bf16.gmra.mxu2 %vm2864_vm0, %v8971_v62 }
 0x559   : > { %v4341_v4 = vpop.f32.mrf.mxu3 }
 0x55a   : > { %v6394_v4 = vld [vmem:[%s8854_s5 + $0x230] sm:$0xff] }
 0x55b   : > { %v4153_v23 = vpop.f32.mrf.mxu2 }
 0x55d   : > { %v3942_v16 = vpop.f32.mrf.mxu1 }
 0x55e   : > { %v8987_v16 = vld [vmem:[#allocation12_spill] sm:$0xff] }
 0x55f   : > { %v8989_v20 = vpack.c.bf16 %v8987_v16, %v8988_v38 }
 0x560   : > { %6275 = vmatmul.msk.bf16.gmra.mxu1 %vm2864_vm0, %v8974_v13 }
 0x563   : > { %v4155_v19 = vpop.f32.mrf.mxu2 }
 0x564   : > { %v4858_v19 = vld [vmem:[#allocation3 + $0xa8] sm:$0xff] }
 0x565   : > { %v3944_v14 = vpop.f32.mrf.mxu1 }
 0x568   : > { %6313 = vmatmul.msk.bf16.gmra.mxu2 %vm2864_vm0, %v8977_v22  ;;  %v4878_v22 = vpack.c.bf16 %v4858_v19, %v4857_v54 }
 0x56b   : > { %v4158_v30 = vpop.f32.mrf.mxu2 }
 0x56d   : > { %v3947_v57 = vpop.f32.mrf.mxu1 }
 0x56e   : > { %v3991_v9 = vadd.f32 %v3947_v57, %v8305_v49  ;;  %v5154_v57 = vld [vmem:[%s8854_s5 + $0x30] sm:$0xff] }
 0x56f   : > { %5168 = vmatpush.msrb.mxu3 %v5154_v57 }
 0x570   : > { %6276 = vmatmul.msk.bf16.gmra.mxu1 %vm2864_vm0, %v8980_v31  ;;  %v8460_v35 = vadd.f32 %v4158_v30, %v3991_v9  ;;  %v8991_v31 = vpack.c.bf16 %v8990_v3, %v8082_v33 }
 0x573   : > { %v4160_v52 = vpop.f32.mrf.mxu2 }
 0x575   : > { %v3949_v63 = vpop.f32.mrf.mxu1 }
 0x576   : > { %v3992_v24 = vadd.f32 %v3949_v63, %v8314_v8  ;;  %v4860_v63 = vld [vmem:[#allocation3 + $0xb8] sm:$0xff] }
 0x578   : > { %6314 = vmatmul.msk.bf16.gmra.mxu2 %vm2864_vm0, %v8983_v41  ;;  %v8467_v53 = vadd.f32 %v4160_v52, %v3992_v24  ;;  %v4879_v41 = vpack.c.bf16 %v4860_v63, %v4859_v39 }
 0x57b   : > { %v4163_v50 = vpop.f32.mrf.mxu2 }
 0x57d   : > { %v3952_v49 = vpop.f32.mrf.mxu1 }
 0x57e   : > { %v4550_v49 = vpop.f32.mrf.mxu0 }
 0x580   : > { %6277 = vmatmul.msk.bf16.gmra.mxu1 %vm2864_vm0, %v8986_v61 }
 0x583   : > { %v4165_v8 = vpop.f32.mrf.mxu2 }
 0x585   : > { %v3954_v0 = vpop.f32.mrf.mxu1 }
 0x586   : > { %v4880_v0 = vpack.c.bf16 %v8399_v7, %v4861_v2  ;;  %v4552_v25 = vpop.f32.mrf.mxu0  ;;  %v6330_v2 = vld [vmem:[%s8854_s5 + $0x68] sm:$0xff] }
 0x587   : > { %v4868_v25 = vld [vmem:[#allocation3 + $0xf8] sm:$0xff] }
 0x588   : > { %6315 = vmatmul.msk.bf16.gmra.mxu2 %vm2864_vm0, %v4877_v21 }
 0x58b   : > { %v4168_v62 = vpop.f32.mrf.mxu2 }
 0x58c   : > { %v8506_v62 = vpop.f32.mrf.mxu3 }
 0x58d   : > { %v3957_v23 = vpop.f32.mrf.mxu1 }
 0x58e   : > { %v8518_v38 = vpop.f32.mrf.mxu0 }
 0x590   : > { %6278 = vmatmul.msk.bf16.gmra.mxu1 %vm2864_vm0, %v8989_v20 }
 0x593   : > { %v4170_v13 = vpop.f32.mrf.mxu2 }
 0x595   : > { %v3959_v14 = vpop.f32.mrf.mxu1 }
 0x596   : > { %v3996_v18 = vadd.f32 %v3959_v14, %v8333_v26  ;;  %v6395_v14 = vld [vmem:[%s8854_s5 + $0x238] sm:$0xff]  ;;  %v8532_v54 = vpop.f32.mrf.mxu0 }
 0x597   : > { %5487 = vmatpush.msrb.mxu0 %v6395_v14  ;;  %v4657_v14 = vld [vmem:[#allocation3 + $0xf6] sm:$0xff] }
 0x598   : > { %6316 = vmatmul.msk.bf16.gmra.mxu2 %vm2864_vm0, %v4878_v22  ;;  %v8484_v30 = vadd.f32 %v4170_v13, %v3996_v18  ;;  %v8520_v13 = vpop.f32.mrf.mxu3  ;;  %v4610_v22 = vadd.f32 %v8357_v5, %v8383_v6  ;;  %v4611_v5 = vadd.f32 %v8373_v28, %v8390_v37  ;;  %v5152_v6 = vld [vmem:[%s8854_s5 + $0x20] sm:$0xff]  ;;  %v8996_v28 = vpack.c.bf16 %v8256_v60, %v8254_v17  ;;  %v5150_v37 = vld [vmem:[%s8854_s5 + $0x10] sm:$0xff] }
 0x599   : > { %v5148_v17 = vld [vmem:[%s8854_s5] sm:$0xff]  ;;  %5488 = vmatpush.msrb.mxu0 %v6394_v4 }
 0x59b   : > { %v4173_v1 = vpop.f32.mrf.mxu2 }
 0x59d   : > { %v3962_v9 = vpop.f32.mrf.mxu1 }
 0x59e   : > { %v3997_v46 = vadd.f32 %v3962_v9, %v8338_v47  ;;  %v8992_v47 = vpack.c.bf16 %v8139_v40, %v8135_v44  ;;  %v5153_v40 = vld [vmem:[%s8854_s5 + $0x28] sm:$0xff]  ;;  %v8541_v9 = vld [vmem:[%s8853_s4] ss:$0 sm:$0xff] }
 0x59f   : > { %5169 = vmatpush.msrb.mxu3 %v5153_v40  ;;  %v6327_v40 = vld [vmem:[%s8854_s5 + $0x50] sm:$0xff] }
 0x5a0   : > { %6279 = vmatmul.msk.bf16.gmra.mxu1 %vm2864_vm0, %v8991_v31  ;;  %v8494_v26 = vadd.f32 %v4173_v1, %v3997_v46 }
 0x5a1   : > { %5170 = vmatpush.msrb.mxu3 %v5152_v6 }
 0x5a3   : > { %v4175_v52 = vpop.f32.mrf.mxu2 }
 0x5a4   : > { %v8553_v52 = vpop.f32.mrf.mxu0 }
 0x5a5   : > { %v3964_v24 = vpop.f32.mrf.mxu1 }
 0x5a8   : > { %6317 = vmatmul.msk.bf16.gmra.mxu2 %vm2864_vm0, %v4879_v41  ;;  %v5149_v41 = vld [vmem:[%s8854_s5 + $0x8] sm:$0xff] }
 0x5ab   : > { %v4178_v50 = vpop.f32.mrf.mxu2 }
 0x5ad   : > { %v3967_v45 = vpop.f32.mrf.mxu1 }
 0x5ae   : > { %v6332_v45 = vld [vmem:[%s8854_s5 + $0x78] sm:$0xff] }
 0x5b0   : > { %6280 = vmatmul.msk.bf16.gmra.mxu1 %vm2864_vm0, %v8992_v47  ;;  %v4562_v47 = vpop.f32.mrf.mxu0 }
 0x5b3   : > { %v4180_v33 = vpop.f32.mrf.mxu2 }
 0x5b5   : > { %v3969_v61 = vpop.f32.mrf.mxu1 }
 0x5b6   : > { %v4000_v8 = vadd.f32 %v3969_v61, %v8350_v56  ;;  %v8993_v56 = vpack.c.bf16 %v8191_v15, %v8189_v55  ;;  %v8994_v55 = vpack.c.bf16 %v8223_v42, %v8221_v32  ;;  %v8995_v42 = vpack.c.bf16 %v8228_v51, %v8226_v27  ;;  %v5151_v51 = vld [vmem:[%s8854_s5 + $0x18] sm:$0xff] }
 0x5b7   : > { %5171 = vmatpush.msrb.mxu3 %v5151_v51  ;;  %v8997_v61 = vpack.c.bf16 %v8261_v10, %v8259_v29  ;;  %v6328_v29 = vld [vmem:[%s8854_s5 + $0x58] sm:$0xff] }
 0x5b8   : > { %6318 = vmatmul.msk.bf16.gmra.mxu2 %vm2864_vm0, %v4880_v0  ;;  %v8504_v21 = vadd.f32 %v4180_v33, %v4000_v8  ;;  %v6331_v33 = vld [vmem:[%s8854_s5 + $0x70] sm:$0xff] }
 0x5b9   : > { %5172 = vmatpush.msrb.mxu3 %v5150_v37 }
 0x5bb   : > { %v4183_v23 = vpop.f32.mrf.mxu2  ;;  %5173 = vmatpush.msrb.mxu3 %v5149_v41 }
 0x5bd   : > { %v3972_v16 = vpop.f32.mrf.mxu1  ;;  %5174 = vmatpush.msrb.mxu3 %v5148_v17  ;;  %v4658_v17 = vld [vmem:[#allocation3 + $0xfe] sm:$0xff] }
 0x5be   : > { %v4001_v44 = vadd.f32 %v3972_v16, %v8359_v11 }
 0x5bf   : > { %5207 = vmatpush.msra.mxu3 %v6332_v45 }
 0x5c0   : > { %6281 = vmatmul.msk.bf16.gmra.mxu1 %vm2864_vm0, %v8993_v56  ;;  %v8516_v7 = vadd.f32 %v4183_v23, %v4001_v44  ;;  %v6329_v23 = vld [vmem:[%s8854_s5 + $0x60] sm:$0xff]  ;;  %v4867_v44 = vld [vmem:[#allocation3 + $0xf0] sm:$0xff]  ;;  %v4403_v56 = vadd.f32 %v8506_v62, %v8407_v34 }
 0x5c1   : > { %5208 = vmatpush.msra.mxu3 %v6331_v33  ;;  %v4883_v10 = vpack.c.bf16 %v4868_v25, %v4867_v44  ;;  %v4656_v62 = vld [vmem:[#allocation3 + $0xee] sm:$0xff]  ;;  %v4872_v33 = vld [vmem:[#allocation3 + $0x118] sm:$0x1] }
 0x5c2   : > { %v4871_v25 = vld [vmem:[#allocation3 + $0x110] sm:$0xff] }
 0x5c3   : > { %v4185_v20 = vpop.f32.mrf.mxu2  ;;  %5209 = vmatpush.msra.mxu3 %v6330_v2  ;;  %v4885_v44 = vpack.c.bf16 %v4872_v33, %v4871_v25  ;;  %v6349_v33 = vld [vmem:[%s8854_s5 + $0xf0] sm:$0xff] }
 0x5c5   : > { %v3974_v19 = vpop.f32.mrf.mxu1  ;;  %5210 = vmatpush.msra.mxu3 %v6329_v23 }
 0x5c6   : > { %v4002_v11 = vadd.f32 %v3974_v19, %v8368_v12  ;;  %v8536_v12 = vpop.f32.mrf.mxu3  ;;  %v6326_v19 = vld [vmem:[%s8854_s5 + $0x48] sm:$0xff] }
 0x5c7   : > { %5211 = vmatpush.msra.mxu3 %v6328_v29 }
 0x5c8   : > { %6319 = vmatmul.msk.bf16.gmra.mxu2 %vm2864_vm0, %v8994_v55  ;;  %v8530_v15 = vadd.f32 %v4185_v20, %v4002_v11  ;;  %v4565_v20 = vpop.f32.mrf.mxu0  ;;  %v6325_v55 = vld [vmem:[%s8854_s5 + $0x40] sm:$0xff] }
 0x5c9   : > { %5212 = vmatpush.msra.mxu3 %v6327_v40  ;;  %v6341_v20 = vld [vmem:[%s8854_s5 + $0xb8] sm:$0xff] }
 0x5cb   : > { %v4967_v18 = vpop.f32.mrf.mxu2  ;;  %5213 = vmatpush.msra.mxu3 %v6326_v19 }
 0x5cd   : > { %v4756_v1 = vpop.f32.mrf.mxu1  ;;  %5214 = vmatpush.msra.mxu3 %v6325_v55  ;;  %v6340_v55 = vld [vmem:[%s8854_s5 + $0xb0] sm:$0xff] }
 0x5ce   : > { %v4821_v57 = vadd.f32 %v4756_v1, %v4610_v22  ;;  %v4351_v24 = vpop.f32.mrf.mxu3  ;;  %v4614_v22 = vadd.f32 %v8518_v38, %v4403_v56 }
 0x5d0   : > { %v5032_v32 = vadd.f32 %v4967_v18, %v4821_v57  ;;  %6282 = vmatmul.msk.bf16.gmra.mxu1 %vm2864_vm0, %v8995_v42  ;;  %v4672_v57 = vpack.c.bf16 %v4657_v14, %v4656_v62  ;;  %v4661_v62 = vld [vmem:[#allocation3 + $0x116] sm:$0x1] }
 0x5d2   : > { %v5062_v46 = vadd.f32 %v8541_v9, %v5032_v32  ;;  %v4404_v32 = vadd.f32 %v8520_v13, %v8415_v58  ;;  %v4405_v13 = vadd.f32 %v8536_v12, %v8420_v48  ;;  %v6393_v48 = vld [vmem:[%s8854_s5 + $0x228] sm:$0xff] }
 0x5d3   : > { %v4969_v3 = vpop.f32.mrf.mxu2  ;;  %5489 = vmatpush.msrb.mxu0 %v6393_v48  ;;  %v6392_v48 = vld [vmem:[%s8854_s5 + $0x220] sm:$0xff] }
 0x5d4   : > { %v5088_v31 = vmax.f32 %v5062_v46, 0.0  ;;  %v4615_v38 = vadd.f32 %v8532_v54, %v4404_v32  ;;  %v4616_v54 = vadd.f32 %v8553_v52, %v4405_v13  ;;  %v6339_v32 = vld [vmem:[%s8854_s5 + $0xa8] sm:$0xff]  ;;  %v6336_v13 = vld [vmem:[%s8854_s5 + $0x90] sm:$0xff] }
 0x5d5   : > { %v4758_v63 = vpop.f32.mrf.mxu1  ;;  %5490 = vmatpush.msrb.mxu0 %v6392_v48 }
 0x5d6   : > { %5114 = vst.msk [vmem:[#allocation4] sm:$0xff] %vm2864_vm0, %v5088_v31  ;;  %v4822_v27 = vadd.f32 %v4758_v63, %v4611_v5  ;;  %v4354_v8 = vpop.f32.mrf.mxu3  ;;  %v4870_v5 = vld [vmem:[#allocation3 + $0x108] sm:$0xff] }
 0x5d8   : > { %v5033_v39 = vadd.f32 %v4969_v3, %v4822_v27  ;;  %6320 = vmatmul.msk.bf16.gmra.mxu2 %vm2864_vm0, %v8996_v28  ;;  %v8615_v3 = vpop.f32.mrf.mxu0  ;;  %v4869_v27 = vld [vmem:[#allocation3 + $0x100] sm:$0xff] }
 0x5d9   : > { %v4884_v58 = vpack.c.bf16 %v4870_v5, %v4869_v27  ;;  %v6338_v5 = vld [vmem:[%s8854_s5 + $0xa0] sm:$0xff]  ;;  %v6337_v27 = vld [vmem:[%s8854_s5 + $0x98] sm:$0xff] }
 0x5da   : > { %v5063_v36 = vadd.f32 %v8541_v9, %v5033_v39 }
 0x5db   : > { %v4972_v50 = vpop.f32.mrf.mxu2 }
 0x5dc   : > { %v5089_v49 = vmax.f32 %v5063_v36, 0.0  ;;  %v4659_v36 = vld [vmem:[#allocation3 + $0x106] sm:$0xff] }
 0x5dd   : > { %v4761_v60 = vpop.f32.mrf.mxu1  ;;  %v4673_v45 = vpack.c.bf16 %v4659_v36, %v4658_v17  ;;  %v5142_v2 = vld [vmem:[#allocation4 + $0x2] sm:$0x1] }
 0x5de   : > { %5115 = vst.msk [vmem:[#allocation4 + $0x8] sm:$0xff] %vm2864_vm0, %v5089_v49  ;;  %v8608_v18 = vpop.f32.mrf.mxu3 }
 0x5e0   : > { %6283 = vmatmul.msk.bf16.gmra.mxu1 %vm2864_vm0, %v8997_v61  ;;  %v8626_v50 = vpop.f32.mrf.mxu0  ;;  %v5141_v61 = vld [vmem:[#allocation4] sm:$0x1] }
 0x5e1   : > { %v5143_v29 = vmax.f32 %v5141_v61, %v5142_v2 }
 0x5e3   : > { %v4974_v0 = vpop.f32.mrf.mxu2 }
 0x5e5   : > { %v4763_v16 = vpop.f32.mrf.mxu1 }
 0x5e6   : > { %v8618_v51 = vpop.f32.mrf.mxu3 }
 0x5e8   : > { %6321 = vmatmul.msk.bf16.gmra.mxu2 %vm2864_vm0, %v4883_v10  ;;  %v4572_v40 = vpop.f32.mrf.mxu0 }
 0x5eb   : > { %v4977_v11 = vpop.f32.mrf.mxu2 }
 0x5ed   : > { %v4766_v34 = vpop.f32.mrf.mxu1 }
 0x5ee   : > { %v4825_v1 = vadd.f32 %v4766_v34, %v4614_v22  ;;  %v4361_v12 = vpop.f32.mrf.mxu3  ;;  %v4660_v22 = vld [vmem:[#allocation3 + $0x10e] sm:$0xff] }
 0x5f0   : > { %v5036_v42 = vadd.f32 %v4977_v11, %v4825_v1  ;;  %6284 = vmatmul.msk.bf16.gmra.mxu1 %vm2864_vm0, %v4672_v57  ;;  %v5180_v1 = vld [vmem:[#allocation4 + $0x4] sm:$0x1]  ;;  %v5181_v57 = vld [vmem:[#allocation4 + $0x6] sm:$0x1] }
 0x5f2   : > { %v5066_v46 = vadd.f32 %v8541_v9, %v5036_v42 }
 0x5f3   : > { %v4979_v31 = vpop.f32.mrf.mxu2 }
 0x5f4   : > { %v5092_v6 = vmax.f32 %v5066_v46, 0.0 }
 0x5f5   : > { %v4768_v63 = vpop.f32.mrf.mxu1 }
 0x5f6   : > { %5118 = vst.msk [vmem:[#allocation4 + $0x20] sm:$0xff] %vm2864_vm0, %v5092_v6  ;;  %v4826_v24 = vadd.f32 %v4768_v63, %v4615_v38  ;;  %v4364_v14 = vpop.f32.mrf.mxu3  ;;  %v5182_v6 = vmax.f32 %v5180_v1, %v5181_v57  ;;  %v4408_v38 = vadd.f32 %v8608_v18, %v8434_v43  ;;  %v5221_v43 = vld [vmem:[#allocation4 + $0xa] sm:$0x1]  ;;  %v6357_v1 = vld [vmem:[%s8854_s5 + $0x128] sm:$0xff] }
 0x5f7   : > { %v6343_v14 = vld [vmem:[%s8854_s5 + $0xc0] sm:$0xff] }
 0x5f8   : > { %v5037_v39 = vadd.f32 %v4979_v31, %v4826_v24  ;;  %6322 = vmatmul.msk.bf16.gmra.mxu2 %vm2864_vm0, %v4884_v58  ;;  %v4674_v31 = vpack.c.bf16 %v4661_v62, %v4660_v22  ;;  %v4575_v24 = vpop.f32.mrf.mxu0  ;;  %v4619_v36 = vadd.f32 %v8615_v3, %v4408_v38  ;;  %v4409_v3 = vadd.f32 %v8618_v51, %v8441_v59  ;;  %v6348_v51 = vld [vmem:[%s8854_s5 + $0xe8] sm:$0xff] }
 0x5f9   : > { %v6352_v24 = vld [vmem:[%s8854_s5 + $0x100] sm:$0xff] }
 0x5fa   : > { %v5067_v28 = vadd.f32 %v8541_v9, %v5037_v39  ;;  %v4620_v59 = vadd.f32 %v8626_v50, %v4409_v3  ;;  %v6346_v50 = vld [vmem:[%s8854_s5 + $0xd8] sm:$0xff] }
 0x5fb   : > { %v4982_v37 = vpop.f32.mrf.mxu2 }
 0x5fc   : > { %v5093_v41 = vmax.f32 %v5067_v28, 0.0  ;;  %v5220_v28 = vld [vmem:[#allocation4 + $0x8] sm:$0x1] }
 0x5fd   : > { %v4771_v49 = vpop.f32.mrf.mxu1  ;;  %v5144_v23 = vld [vmem:[#allocation4 + $0x26] sm:$0x1] }
 0x5fe   : > { %5119 = vst.msk [vmem:[#allocation4 + $0x28] sm:$0xff] %vm2864_vm0, %v5093_v41  ;;  %v4827_v60 = vadd.f32 %v4771_v49, %v4616_v54  ;;  %v6335_v41 = vld [vmem:[%s8854_s5 + $0x88] sm:$0xff] }
 0x600   : > { %v5038_v4 = vadd.f32 %v4982_v37, %v4827_v60  ;;  %6285 = vmatmul.msk.bf16.gmra.mxu1 %vm2864_vm0, %v4673_v45  ;;  %v4366_v37 = vpop.f32.mrf.mxu3  ;;  %v6334_v60 = vld [vmem:[%s8854_s5 + $0x80] sm:$0xff]  ;;  %v5222_v45 = vmax.f32 %v5220_v28, %v5221_v43  ;;  %v4577_v61 = vpop.f32.mrf.mxu0 }
 0x602   : > { %v5068_v47 = vadd.f32 %v8541_v9, %v5038_v4 }
 0x603   : > { %v4984_v52 = vpop.f32.mrf.mxu2 }
 0x604   : > { %v5094_v8 = vmax.f32 %v5068_v47, 0.0  ;;  %v6350_v47 = vld [vmem:[%s8854_s5 + $0xf8] sm:$0xff] }
 0x605   : > { %v4773_v0 = vpop.f32.mrf.mxu1  ;;  %v5145_v16 = vld [vmem:[#allocation4 + $0x28] sm:$0x1]  ;;  %v5183_v19 = vld [vmem:[#allocation4 + $0x2a] sm:$0x1]  ;;  %v5184_v11 = vld [vmem:[#allocation4 + $0x2c] sm:$0x1] }
 0x606   : > { %5120 = vst.msk [vmem:[#allocation4 + $0x30] sm:$0xff] %vm2864_vm0, %v5094_v8  ;;  %v5146_v10 = vmax.f32 %v5144_v23, %v5145_v16  ;;  %v5185_v42 = vmax.f32 %v5183_v19, %v5184_v11  ;;  %v5223_v18 = vld [vmem:[#allocation4 + $0x2e] sm:$0x1] }
 0x607   : > { %v6347_v16 = vld [vmem:[%s8854_s5 + $0xe0] sm:$0xff] }
 0x608   : > { %6323 = vmatmul.msk.bf16.gmra.mxu2 %vm2864_vm0, %v4885_v44  ;;  %v5147_v56 = vmax.f32 %v5143_v29, %v5146_v10  ;;  %v5186_v63 = vmax.f32 %v5182_v6, %v5185_v42  ;;  %v4369_v25 = vpop.f32.mrf.mxu3  ;;  %v6345_v10 = vld [vmem:[%s8854_s5 + $0xd0] sm:$0xff]  ;;  %v4580_v19 = vpop.f32.mrf.mxu0  ;;  %v6391_v42 = vld [vmem:[%s8854_s5 + $0x218] sm:$0xff] }
 0x609   : > { %5491 = vmatpush.msrb.mxu0 %v6391_v42 }
 0x60a   : > { %6324 = vmatmul.msk.f32.vlgmr.msrb.gmra.mxu3 %vm2864_vm0, %v5147_v56 }
 0x60b   : > { %v4987_v34 = vpop.f32.mrf.mxu2  ;;  %5247 = vmatpush.msrb.mxu3 %v6341_v20  ;;  %v6344_v20 = vld [vmem:[%s8854_s5 + $0xc8] sm:$0xff] }
 0x60c   : > { %v6358_v34 = vld [vmem:[%s8854_s5 + $0x130] sm:$0xff] }
 0x60d   : > { %v4776_v46 = vpop.f32.mrf.mxu1  ;;  %5248 = vmatpush.msrb.mxu3 %v6340_v55  ;;  %v5224_v58 = vld [vmem:[#allocation4 + $0x30] sm:$0x1]  ;;  %v6359_v55 = vld [vmem:[%s8854_s5 + $0x138] sm:$0xff] }
 0x60e   : > { %v5225_v54 = vmax.f32 %v5223_v18, %v5224_v58  ;;  %v4413_v58 = vadd.f32 %v4369_v25, %v8460_v35 }
 0x60f   : > { %5249 = vmatpush.msrb.mxu3 %v6339_v32  ;;  %v6356_v32 = vld [vmem:[%s8854_s5 + $0x120] sm:$0xff] }
 0x610   : > { %6286 = vmatmul.msk.bf16.gmra.mxu1 %vm2864_vm0, %v4674_v31  ;;  %v5226_v4 = vmax.f32 %v5222_v45, %v5225_v54  ;;  %v4371_v22 = vpop.f32.mrf.mxu3  ;;  %v4582_v46 = vpop.f32.mrf.mxu0  ;;  %v6355_v31 = vld [vmem:[%s8854_s5 + $0x118] sm:$0xff]  ;;  %v4624_v43 = vadd.f32 %v4580_v19, %v4413_v58 }
 0x611   : > { %5250 = vmatpush.msrb.mxu3 %v6338_v5  ;;  %v6354_v5 = vld [vmem:[%s8854_s5 + $0x110] sm:$0xff] }
 0x612   : > { %6333 = vmatmul.msk.f32.vlgmr.msra.gmra.mxu3 %vm2864_vm0, %v5186_v63  ;;  %v6353_v63 = vld [vmem:[%s8854_s5 + $0x108] sm:$0xff] }
 0x613   : > { %v4989_v39 = vpop.f32.mrf.mxu2  ;;  %5251 = vmatpush.msrb.mxu3 %v6337_v27 }
 0x615   : > { %v4778_v49 = vpop.f32.mrf.mxu1  ;;  %5252 = vmatpush.msrb.mxu3 %v6336_v13 }
 0x616   : > { %v4830_v17 = vadd.f32 %v4778_v49, %v4619_v36  ;;  %v4414_v36 = vadd.f32 %v4371_v22, %v8467_v53 }
 0x617   : > { %5253 = vmatpush.msrb.mxu3 %v6335_v41 }
 0x618   : > { %v5041_v12 = vadd.f32 %v4989_v39, %v4830_v17  ;;  %v4374_v6 = vpop.f32.mrf.mxu3  ;;  %v4585_v13 = vpop.f32.mrf.mxu0  ;;  %v4625_v45 = vadd.f32 %v4582_v46, %v4414_v36  ;;  %v6363_v46 = vld [vmem:[%s8854_s5 + $0x150] sm:$0xff] }
 0x619   : > { %5254 = vmatpush.msrb.mxu3 %v6334_v60 }
 0x61a   : > { %v5071_v52 = vadd.f32 %v8541_v9, %v5041_v12  ;;  %6342 = vmatmul.msk.f32.vlgmr.msrb.gmra.mxu3 %vm2864_vm0, %v5226_v4  ;;  %v6390_v12 = vld [vmem:[%s8854_s5 + $0x210] sm:$0xff] }
 0x61b   : > { %v4992_v2 = vpop.f32.mrf.mxu2  ;;  %5287 = vmatpush.msra.mxu3 %v6350_v47  ;;  %5492 = vmatpush.msrb.mxu0 %v6390_v12  ;;  %v6377_v12 = vld [vmem:[%s8854_s5 + $0x1b8] sm:$0xff] }
 0x61c   : > { %v5097_v8 = vmax.f32 %v5071_v52, 0.0 }
 0x61d   : > { %v4781_v0 = vpop.f32.mrf.mxu1  ;;  %5288 = vmatpush.msra.mxu3 %v6349_v33 }
 0x61e   : > { %5123 = vst.msk [vmem:[#allocation4 + $0x48] sm:$0xff] %vm2864_vm0, %v5097_v8  ;;  %v4831_v23 = vadd.f32 %v4781_v0, %v4620_v59 }
 0x61f   : > { %5289 = vmatpush.msra.mxu3 %v6348_v51 }
 0x620   : > { %v5042_v44 = vadd.f32 %v4992_v2, %v4831_v23  ;;  %v4376_v28 = vpop.f32.mrf.mxu3  ;;  %v4587_v49 = vpop.f32.mrf.mxu0 }
 0x621   : > { %5290 = vmatpush.msra.mxu3 %v6347_v16 }
 0x622   : > { %v5072_v29 = vadd.f32 %v8541_v9, %v5042_v44  ;;  %v6368_v44 = vld [vmem:[%s8854_s5 + $0x178] sm:$0xff] }
 0x623   : > { %v4994_v40 = vpop.f32.mrf.mxu2  ;;  %5291 = vmatpush.msra.mxu3 %v6346_v50  ;;  %v6367_v50 = vld [vmem:[%s8854_s5 + $0x170] sm:$0xff] }
 0x624   : > { %v5098_v56 = vmax.f32 %v5072_v29, 0.0 }
 0x625   : > { %v4783_v11 = vpop.f32.mrf.mxu1  ;;  %5292 = vmatpush.msra.mxu3 %v6345_v10  ;;  %v5260_v52 = vld [vmem:[#allocation4 + $0x4c] sm:$0x1]  ;;  %v5261_v33 = vld [vmem:[#allocation4 + $0x4e] sm:$0x1] }
 0x626   : > { %5124 = vst.msk [vmem:[#allocation4 + $0x50] sm:$0xff] %vm2864_vm0, %v5098_v56  ;;  %v5262_v0 = vmax.f32 %v5260_v52, %v5261_v33  ;;  %v6366_v56 = vld [vmem:[%s8854_s5 + $0x168] sm:$0xff] }
 0x627   : > { %5293 = vmatpush.msra.mxu3 %v6344_v20  ;;  %v6375_v52 = vld [vmem:[%s8854_s5 + $0x1a8] sm:$0xff] }
 0x628   : > { %v4379_v3 = vpop.f32.mrf.mxu3  ;;  %v4590_v2 = vpop.f32.mrf.mxu0 }
 0x629   : > { %5294 = vmatpush.msra.mxu3 %v6343_v14  ;;  %v6365_v14 = vld [vmem:[%s8854_s5 + $0x160] sm:$0xff] }
 0x62a   : > { %v6374_v2 = vld [vmem:[%s8854_s5 + $0x1a0] sm:$0xff] }
 0x62b   : > { %5327 = vmatpush.msrb.mxu3 %v6359_v55  ;;  %v4997_v62 = vpop.f32.mrf.mxu2 }
 0x62d   : > { %5328 = vmatpush.msrb.mxu3 %v6358_v34  ;;  %v4786_v57 = vpop.f32.mrf.mxu1  ;;  %v5300_v10 = vld [vmem:[#allocation4 + $0x50] sm:$0x1]  ;;  %v5301_v40 = vld [vmem:[#allocation4 + $0x52] sm:$0x1]  ;;  %v5341_v6 = vld [vmem:[#allocation4 + $0x56] sm:$0x1] }
 0x62e   : > { %v5302_v55 = vmax.f32 %v5300_v10, %v5301_v40  ;;  %v6388_v40 = vld [vmem:[%s8854_s5 + $0x200] sm:$0xff] }
 0x62f   : > { %5329 = vmatpush.msrb.mxu3 %v6357_v1  ;;  %v6364_v1 = vld [vmem:[%s8854_s5 + $0x158] sm:$0xff] }
 0x630   : > { %v4381_v23 = vpop.f32.mrf.mxu3  ;;  %v4592_v34 = vpop.f32.mrf.mxu0 }
 0x631   : > { %5330 = vmatpush.msrb.mxu3 %v6356_v32  ;;  %v4418_v13 = vadd.f32 %v4381_v23, %v8484_v30 }
 0x633   : > { %5331 = vmatpush.msrb.mxu3 %v6355_v31  ;;  %v4999_v38 = vpop.f32.mrf.mxu2 }
 0x634   : > { %v6362_v38 = vld [vmem:[%s8854_s5 + $0x148] sm:$0xff] }
 0x635   : > { %5332 = vmatpush.msrb.mxu3 %v6354_v5  ;;  %v4788_v27 = vpop.f32.mrf.mxu1  ;;  %v5340_v5 = vld [vmem:[#allocation4 + $0x54] sm:$0x1] }
 0x636   : > { %v5342_v58 = vmax.f32 %v5340_v5, %v5341_v6 }
 0x637   : > { %5333 = vmatpush.msrb.mxu3 %v6353_v63 }
 0x638   : > { %v4384_v42 = vpop.f32.mrf.mxu3  ;;  %v4595_v28 = vpop.f32.mrf.mxu0 }
 0x639   : > { %5334 = vmatpush.msrb.mxu3 %v6352_v24  ;;  %v6361_v24 = vld [vmem:[%s8854_s5 + $0x140] sm:$0xff]  ;;  %v4419_v49 = vadd.f32 %v4384_v42, %v8494_v26  ;;  %v6376_v26 = vld [vmem:[%s8854_s5 + $0x1b0] sm:$0xff] }
 0x63b   : > { %v5002_v39 = vpop.f32.mrf.mxu2  ;;  %v4630_v3 = vadd.f32 %v4595_v28, %v4419_v49 }
 0x63d   : > { %v4791_v18 = vpop.f32.mrf.mxu1 }
 0x63e   : > { %v4835_v37 = vadd.f32 %v4791_v18, %v4624_v43 }
 0x640   : > { %v5046_v41 = vadd.f32 %v5002_v39, %v4835_v37  ;;  %v4386_v18 = vpop.f32.mrf.mxu3  ;;  %v4629_v37 = vadd.f32 %v4592_v34, %v4418_v13 }
 0x642   : > { %v5076_v54 = vadd.f32 %v8541_v9, %v5046_v41 }
 0x643   : > { %v5004_v17 = vpop.f32.mrf.mxu2 }
 0x644   : > { %v5102_v60 = vmax.f32 %v5076_v54, 0.0  ;;  %v6389_v54 = vld [vmem:[%s8854_s5 + $0x208] sm:$0xff] }
 0x645   : > { %v4793_v48 = vpop.f32.mrf.mxu1  ;;  %5493 = vmatpush.msrb.mxu0 %v6389_v54 }
 0x646   : > { %5128 = vst.msk [vmem:[#allocation4 + $0x70] sm:$0xff] %vm2864_vm0, %v5102_v60  ;;  %v4836_v35 = vadd.f32 %v4793_v48, %v4625_v45  ;;  %v4597_v60 = vpop.f32.mrf.mxu0 }
 0x647   : > { %5494 = vmatpush.msrb.mxu0 %v6388_v40 }
 0x648   : > { %v5047_v4 = vadd.f32 %v5004_v17, %v4836_v35 }
 0x64a   : > { %v5077_v53 = vadd.f32 %v8541_v9, %v5047_v4  ;;  %v4389_v4 = vpop.f32.mrf.mxu3 }
 0x64b   : > { %v5007_v47 = vpop.f32.mrf.mxu2 }
 0x64c   : > { %v5103_v61 = vmax.f32 %v5077_v53, 0.0 }
 0x64d   : > { %v4796_v8 = vpop.f32.mrf.mxu1  ;;  %v5263_v59 = vld [vmem:[#allocation4 + $0x72] sm:$0x1]  ;;  %v5264_v51 = vld [vmem:[#allocation4 + $0x74] sm:$0x1]  ;;  %v5303_v19 = vld [vmem:[#allocation4 + $0x76] sm:$0x1] }
 0x64e   : > { %5129 = vst.msk [vmem:[#allocation4 + $0x78] sm:$0xff] %vm2864_vm0, %v5103_v61  ;;  %v5265_v25 = vmax.f32 %v5263_v59, %v5264_v51  ;;  %v4600_v59 = vpop.f32.mrf.mxu0 }
 0x650   : > { %v5266_v16 = vmax.f32 %v5262_v0, %v5265_v25  ;;  %v6373_v0 = vld [vmem:[%s8854_s5 + $0x198] sm:$0xff]  ;;  %v6372_v25 = vld [vmem:[%s8854_s5 + $0x190] sm:$0xff] }
 0x652   : > { %6351 = vmatmul.msk.f32.vlgmr.msra.gmra.mxu3 %vm2864_vm0, %v5266_v16  ;;  %v4391_v23 = vpop.f32.mrf.mxu3  ;;  %v6371_v16 = vld [vmem:[%s8854_s5 + $0x188] sm:$0xff] }
 0x653   : > { %v5009_v29 = vpop.f32.mrf.mxu2  ;;  %5367 = vmatpush.msra.mxu3 %v6368_v44 }
 0x654   : > { %v6386_v29 = vld [vmem:[%s8854_s5 + $0x1f8] sm:$0xff] }
 0x655   : > { %v4798_v20 = vpop.f32.mrf.mxu1  ;;  %5368 = vmatpush.msra.mxu3 %v6367_v50  ;;  %v5304_v11 = vld [vmem:[#allocation4 + $0x78] sm:$0x1]  ;;  %v5343_v57 = vld [vmem:[#allocation4 + $0x7a] sm:$0x1]  ;;  %v5344_v32 = vld [vmem:[#allocation4 + $0x7c] sm:$0x1] }
 0x656   : > { %v5305_v22 = vmax.f32 %v5303_v19, %v5304_v11  ;;  %v5345_v63 = vmax.f32 %v5343_v57, %v5344_v32  ;;  %v6370_v50 = vld [vmem:[%s8854_s5 + $0x180] sm:$0xff]  ;;  %v6384_v20 = vld [vmem:[%s8854_s5 + $0x1e8] sm:$0xff]  ;;  %v4602_v19 = vpop.f32.mrf.mxu0  ;;  %v4422_v11 = vadd.f32 %v4391_v23, %v8504_v21 }
 0x657   : > { %5369 = vmatpush.msra.mxu3 %v6366_v56  ;;  %v6385_v56 = vld [vmem:[%s8854_s5 + $0x1f0] sm:$0xff]  ;;  %v6380_v32 = vld [vmem:[%s8854_s5 + $0x1c8] sm:$0xff] }
 0x658   : > { %v5306_v62 = vmax.f32 %v5302_v55, %v5305_v22  ;;  %v5346_v39 = vmax.f32 %v5342_v58, %v5345_v63  ;;  %v6382_v22 = vld [vmem:[%s8854_s5 + $0x1d8] sm:$0xff] }
 0x659   : > { %5370 = vmatpush.msra.mxu3 %v6365_v14  ;;  %v6383_v14 = vld [vmem:[%s8854_s5 + $0x1e0] sm:$0xff] }
 0x65a   : > { %6360 = vmatmul.msk.f32.vlgmr.msrb.gmra.mxu3 %vm2864_vm0, %v5306_v62  ;;  %v4394_v55 = vpop.f32.mrf.mxu3  ;;  %v4633_v62 = vadd.f32 %v4602_v19, %v4422_v11 }
 0x65b   : > { %v5012_v31 = vpop.f32.mrf.mxu2  ;;  %5371 = vmatpush.msra.mxu3 %v6364_v1  ;;  %v6381_v1 = vld [vmem:[%s8854_s5 + $0x1d0] sm:$0xff]  ;;  %v4423_v42 = vadd.f32 %v4394_v55, %v8516_v7 }
 0x65c   : > { %v6379_v31 = vld [vmem:[%s8854_s5 + $0x1c0] sm:$0xff] }
 0x65d   : > { %v4801_v27 = vpop.f32.mrf.mxu1  ;;  %5372 = vmatpush.msra.mxu3 %v6363_v46 }
 0x65e   : > { %v4605_v5 = vpop.f32.mrf.mxu0 }
 0x65f   : > { %5373 = vmatpush.msra.mxu3 %v6362_v38  ;;  %v4634_v27 = vadd.f32 %v4605_v5, %v4423_v42  ;;  %v5507_v5 = vld [vmem:[#allocation5] sm:$0x1] }
 0x661   : > { %5374 = vmatpush.msra.mxu3 %v6361_v24 }
 0x662   : > { %6369 = vmatmul.msk.f32.vlgmr.msra.gmra.mxu3 %vm2864_vm0, %v5346_v39  ;;  %v4396_v38 = vpop.f32.mrf.mxu3 }
 0x663   : > { %v5014_v43 = vpop.f32.mrf.mxu2  ;;  %5407 = vmatpush.msrb.mxu3 %v6377_v12  ;;  %v4424_v7 = vadd.f32 %v4396_v38, %v8530_v15 }
 0x665   : > { %v4803_v36 = vpop.f32.mrf.mxu1  ;;  %5408 = vmatpush.msrb.mxu3 %v6376_v26 }
 0x666   : > { %v4840_v41 = vadd.f32 %v4803_v36, %v4629_v37 }
 0x667   : > { %5409 = vmatpush.msrb.mxu3 %v6375_v52 }
 0x668   : > { %v5051_v17 = vadd.f32 %v5014_v43, %v4840_v41  ;;  %v4607_v43 = vpop.f32.mrf.mxu0 }
 0x669   : > { %5410 = vmatpush.msrb.mxu3 %v6374_v2  ;;  %v4635_v37 = vadd.f32 %v4607_v43, %v4424_v7 }
 0x66a   : > { %v5081_v30 = vadd.f32 %v8541_v9, %v5051_v17 }
 0x66b   : > { %v5017_v45 = vpop.f32.mrf.mxu2  ;;  %5411 = vmatpush.msrb.mxu3 %v6373_v0 }
 0x66c   : > { %v5107_v48 = vmax.f32 %v5081_v30, 0.0 }
 0x66d   : > { %v4806_v35 = vpop.f32.mrf.mxu1  ;;  %5412 = vmatpush.msrb.mxu3 %v6372_v25 }
 0x66e   : > { %5133 = vst.msk [vmem:[#allocation4 + $0x98] sm:$0xff] %vm2864_vm0, %v5107_v48  ;;  %v4841_v53 = vadd.f32 %v4806_v35, %v4630_v3 }
 0x66f   : > { %5413 = vmatpush.msrb.mxu3 %v6371_v16 }
 0x670   : > { %v5052_v47 = vadd.f32 %v5017_v45, %v4841_v53 }
 0x671   : > { %5414 = vmatpush.msrb.mxu3 %v6370_v50 }
 0x672   : > { %v5082_v33 = vadd.f32 %v8541_v9, %v5052_v47 }
 0x673   : > { %v5019_v61 = vpop.f32.mrf.mxu2  ;;  %5447 = vmatpush.msra.mxu3 %v6386_v29 }
 0x674   : > { %v5108_v8 = vmax.f32 %v5082_v33, 0.0 }
 0x675   : > { %v4808_v51 = vpop.f32.mrf.mxu1  ;;  %5448 = vmatpush.msra.mxu3 %v6385_v56  ;;  %v5380_v30 = vld [vmem:[#allocation4 + $0x98] sm:$0x1]  ;;  %v5381_v60 = vld [vmem:[#allocation4 + $0x9a] sm:$0x1]  ;;  %v5420_v26 = vld [vmem:[#allocation4 + $0x9c] sm:$0x1] }
 0x676   : > { %5134 = vst.msk [vmem:[#allocation4 + $0xa0] sm:$0xff] %vm2864_vm0, %v5108_v8  ;;  %v5382_v15 = vmax.f32 %v5380_v30, %v5381_v60  ;;  %v5421_v47 = vld [vmem:[#allocation4 + $0x9e] sm:$0x1] }
 0x677   : > { %5449 = vmatpush.msra.mxu3 %v6384_v20  ;;  %v5422_v8 = vmax.f32 %v5420_v26, %v5421_v47 }
 0x679   : > { %5450 = vmatpush.msra.mxu3 %v6383_v14 }
 0x67b   : > { %v5022_v44 = vpop.f32.mrf.mxu2  ;;  %5451 = vmatpush.msra.mxu3 %v6382_v22 }
 0x67d   : > { %v4811_v10 = vpop.f32.mrf.mxu1  ;;  %5452 = vmatpush.msra.mxu3 %v6381_v1  ;;  %v5460_v52 = vld [vmem:[#allocation4 + $0xa0] sm:$0x1]  ;;  %v5461_v33 = vld [vmem:[#allocation4 + $0xa2] sm:$0x1] }
 0x67e   : > { %v5462_v59 = vmax.f32 %v5460_v52, %v5461_v33  ;;  %v5140_v10 = vld [vmem:[%s8855_s6] sm:$0x1] }
 0x67f   : > { %5453 = vmatpush.msra.mxu3 %v6380_v32  ;;  %v5501_v32 = vld [vmem:[%s8856_s7] sm:$0x1] }
 0x681   : > { %5454 = vmatpush.msra.mxu3 %v6379_v31 }
 0x683   : > { %v5024_v34 = vpop.f32.mrf.mxu2 }
 0x685   : > { %v4813_v57 = vpop.f32.mrf.mxu1 }
 0x686   : > { %v4844_v21 = vadd.f32 %v4813_v57, %v4633_v62 }
 0x688   : > { %v5055_v46 = vadd.f32 %v5024_v34, %v4844_v21 }
 0x68a   : > { %v5085_v6 = vadd.f32 %v8541_v9, %v5055_v46 }
 0x68b   : > { %v5027_v24 = vpop.f32.mrf.mxu2 }
 0x68c   : > { %v5111_v63 = vmax.f32 %v5085_v6, 0.0 }
 0x68d   : > { %v4816_v58 = vpop.f32.mrf.mxu1  ;;  %v5176_v23 = vpop.f32.mrf.mxu3 }
 0x68e   : > { %5137 = vst.msk [vmem:[#allocation4 + $0xb8] sm:$0xff] %vm2864_vm0, %v5111_v63  ;;  %v4845_v13 = vadd.f32 %v4816_v58, %v4634_v27  ;;  %v5179_v56 = vadd.f32 %v5176_v23, %v5140_v10 }
 0x690   : > { %v5056_v39 = vadd.f32 %v5027_v24, %v4845_v13 }
 0x692   : > { %v5086_v28 = vadd.f32 %v8541_v9, %v5056_v39 }
 0x693   : > { %v5029_v54 = vpop.f32.mrf.mxu2 }
 0x694   : > { %v5112_v18 = vmax.f32 %v5086_v28, 0.0 }
 0x695   : > { %v4818_v36 = vpop.f32.mrf.mxu1  ;;  %v5383_v48 = vld [vmem:[#allocation4 + $0xbe] sm:$0x1]  ;;  %v5216_v16 = vpop.f32.mrf.mxu3 }
 0x696   : > { %5138 = vst.msk [vmem:[#allocation4 + $0xc0] sm:$0xff] %vm2864_vm0, %v5112_v18  ;;  %v4846_v41 = vadd.f32 %v4818_v36, %v4635_v37  ;;  %v5219_v20 = vadd.f32 %v5216_v16, %v5179_v56 }
 0x698   : > { %v5057_v49 = vadd.f32 %v5029_v54, %v4846_v41 }
 0x69a   : > { %v5087_v17 = vadd.f32 %v8541_v9, %v5057_v49 }
 0x69c   : > { %v5113_v45 = vmax.f32 %v5087_v17, 0.0 }
 0x69d   : > { %v5384_v3 = vld [vmem:[#allocation4 + $0xc0] sm:$0x1]  ;;  %v5423_v4 = vld [vmem:[#allocation4 + $0xc2] sm:$0x1]  ;;  %v5424_v53 = vld [vmem:[#allocation4 + $0xc4] sm:$0x1]  ;;  %v5256_v44 = vpop.f32.mrf.mxu3 }
 0x69e   : > { %5139 = vst.msk [vmem:[#allocation4 + $0xc8] sm:$0x1] %vm2905_vm1, %v5113_v45  ;;  %v5385_v35 = vmax.f32 %v5383_v48, %v5384_v3  ;;  %v5425_v61 = vmax.f32 %v5423_v4, %v5424_v53  ;;  %v5463_v9 = vld [vmem:[#allocation4 + $0xc6] sm:$0x1]  ;;  %v5259_v19 = vadd.f32 %v5256_v44, %v5219_v20 }
 0x6a0   : > { %v5386_v12 = vmax.f32 %v5382_v15, %v5385_v35  ;;  %v5426_v0 = vmax.f32 %v5422_v8, %v5425_v61 }
 0x6a2   : > { %6378 = vmatmul.msk.f32.vlgmr.msrb.gmra.mxu3 %vm2864_vm0, %v5386_v12 }
 0x6a5   : > { %v5464_v2 = vld [vmem:[#allocation4 + $0xc8] sm:$0x1] }
 0x6a6   : > { %v5465_v51 = vmax.f32 %v5463_v9, %v5464_v2 }
 0x6a8   : > { %v5466_v25 = vmax.f32 %v5462_v59, %v5465_v51 }
 0x6aa   : > { %6387 = vmatmul.msk.f32.vlgmr.msra.gmra.mxu3 %vm2864_vm0, %v5426_v0  ;;  %6396 = vmatmul.msk.f32.vlgmr.msrb.gmra.mxu0 %vm2864_vm0, %v5466_v25 }
 0x6d5   : > { %v5296_v50 = vpop.f32.mrf.mxu3 }
 0x6d6   : > { %v5299_v14 = vadd.f32 %v5296_v50, %v5259_v19 }
 0x6dd   : > { %v5336_v29 = vpop.f32.mrf.mxu3 }
 0x6de   : > { %v5339_v55 = vadd.f32 %v5336_v29, %v5299_v14 }
 0x6e5   : > { %v5376_v40 = vpop.f32.mrf.mxu3 }
 0x6e6   : > { %v5379_v22 = vadd.f32 %v5376_v40, %v5339_v55 }
 0x725   : > { %v5416_v11 = vpop.f32.mrf.mxu3 }
 0x726   : > { %v5419_v34 = vadd.f32 %v5416_v11, %v5379_v22 }
 0x727   : > { %v5496_v57 = vpop.f32.mrf.mxu0 }
 0x72d   : > { %v5456_v62 = vpop.f32.mrf.mxu3 }
 0x72e   : > { %v5459_v1 = vadd.f32 %v5456_v62, %v5419_v34 }
 0x730   : > { %v5499_v21 = vadd.f32 %v5496_v57, %v5459_v1 }
 0x732   : > { %v5500_v42 = vmax.f32 %v5499_v21, 0.0 }
 0x734   : > { %v5502_v46 = vmul.f32 %v5501_v32, %v5500_v42 }
 0x736   : > { %v5504_v31 = vsel %vm5503_vm2, %v5502_v46, 0.0 }
 0x737   : > { %5505 = vadd.xlane.f32.xlu0 %v5504_v31 }
 0x7aa   : > { %v5506_v6 = vpop.xlane.xlu0 %5505 }
 0x7ab   : > { %v5508_v38 = vadd.f32 %v5507_v5, %v5506_v6 }
 0x7ad   : > { %v5509_v63 = vsub.f32 0.0, %v5508_v38 }
 0x7af   : > { %v5510_v27 = vmul.f32 1.442695, %v5509_v63 }
 0x7b1   : > { %6534 = vpow2.f32 %v5510_v27 }
 0x7b7   : > { %v6535_v24 = vpop.eup %6534 }
 0x7b8   : > { %v5512_v58 = vadd.f32 1.0, %v6535_v24 }
 0x7ba   : > { %6536 = vrcp.f32 %v5512_v58  ;;  %v5524_v28 = vand.u32 2147483648, %v5512_v58  ;;  %v5522_v18 = vand.u32 2147483647, %v5512_v58  ;;  %vm5518_vm4 = vweird.f32 %v5512_v58 }
 0x7bc   : > { %v5525_v36 = vor.u32 1.1754944e-38, %v5524_v28  ;;  %vm5523_vm7 = vcmp.eq.f32.partialorder %v5522_v18, 8.507059e+37 }
 0x7c0   : > { %v6537_v13 = vpop.eup %6536 }
 0x7c1   : > { %v5514_v7 = vmul.f32 %v6537_v13, %v5512_v58  ;;  %vm5519_vm3 = vweird.f32 %v6537_v13 }
 0x7c2   : > { %vm5520_vm5 = vmor %vm5518_vm4, %vm5519_vm3 }
 0x7c3   : > { %v5515_v39 = vsub.f32 1.0, %v5514_v7 }
 0x7c5   : > { %v5516_v43 = vmul.f32 %v6537_v13, %v5515_v39 }
 0x7c7   : > { %v5517_v37 = vadd.f32 %v6537_v13, %v5516_v43 }
 0x7c9   : > { %v5521_v41 = vsel %vm5520_vm5, %v6537_v13, %v5517_v37 }
 0x7ca   : > { %v5526_v54 = vsel %vm5523_vm7, %v5525_v36, %v5521_v41 }
 0x7cb   : > { %5529 = vst.msk [vmem:[%s330_s15] sm:$0x1] %vm5528_vm6, %v5526_v54 }
 0x7cc PF: > { %s21_s11 = sadd.s32 1, %s6565_s11  }
 0x7cd   : > { %p18_p4 = scmp.ge.s32.totalorder %s21_s11, 4  }
 0x7cf   :  { %20 = sbr.rel (!%p18_p4) target bundleno = 3 (0x3), region = 110 }

</bundles_post_ra>
